<compile_context>
chip_gen: v5e
topology: v5e:2x2
jax: 0.10.0
libtpu: 0.0.40
codegen_flags: <defaults>
</compile_context>

<pallas_src>
import math
import functools

import jax
import jax.numpy as jnp
from jax import lax
from jax.experimental import pallas as pl
from jax.experimental.pallas import tpu as pltpu

PI = math.pi

# ----------------------------------------------------------------------------
# Model hyper-parameters (PyTorch module defaults).
# ----------------------------------------------------------------------------
KERNEL_SIZE = 3
KERNELS = 32
LINEAR_NODES = 64
NUM_CONV_LAYERS = 6
NUM_DENSE_LAYERS = 2
NUM_DOWNSAMPLINGS = 5
NDIM = 2
MAX_ROTATION = 0.5 * PI
MAX_SHEARING = 0.25 * PI
MAX_SCALING = 2.0
LOG_MAX_SCALING = math.log(MAX_SCALING)

# Static conv strides (kept OUT of the jitted params pytree).
CONV_STRIDES = tuple(2 if i < NUM_DOWNSAMPLINGS else 1
                     for i in range(NUM_CONV_LAYERS))

CONV_TILE_M = 2048          # lane-dense M tile for the conv matmuls
WARP_TILE_P = 1024          # output-pixel tile for the warp kernel
VMEM_LIMIT = 32 * 1024 * 1024


def _elu(x):
    # nn.ELU(alpha=1), evaluated in f32
    return jnp.where(x > 0.0, x, jnp.exp(x) - 1.0)


# ----------------------------------------------------------------------------
# Conv matmul kernel (transposed / lane-dense output, bf16 operands, f32 acc)
# ----------------------------------------------------------------------------
def _conv_elu_kernel(w_ref, b_ref, p_ref, o_ref):
    """o = ELU(W @ patches^T + b) for one M-tile; output last dim = M (lane-dense)."""
    y = jnp.dot(w_ref[...], p_ref[...], preferred_element_type=jnp.float32)
    y = _elu(y + b_ref[...])
    o_ref[...] = y.astype(o_ref.dtype)


def conv_elu_pallas(wm, b, patches_t):
    """wm: [Cout, K] bf16, b: [Cout] f32, patches_t: [K, M] bf16 -> bf16 [Cout, M]."""
    cout, k = wm.shape
    _, m = patches_t.shape
    tm = m if m <= CONV_TILE_M else CONV_TILE_M
    return pl.pallas_call(
        _conv_elu_kernel,
        out_shape=jax.ShapeDtypeStruct((cout, m), jnp.bfloat16),
        grid=(pl.cdiv(m, tm),),
        in_specs=[
            pl.BlockSpec((cout, k), lambda i: (0, 0)),
            pl.BlockSpec((cout, 1), lambda i: (0, 0)),
            pl.BlockSpec((k, tm), lambda i: (0, i)),
        ],
        out_specs=pl.BlockSpec((cout, tm), lambda i: (0, i)),
        compiler_params=pltpu.CompilerParams(
            dimension_semantics=("parallel",),
            vmem_limit_bytes=VMEM_LIMIT),
    )(wm.astype(jnp.bfloat16), b.reshape(cout, 1).astype(jnp.float32),
      patches_t.astype(jnp.bfloat16))


# ----------------------------------------------------------------------------
# Fused tail: last ConvBlock + AdaptiveAvgPool2d(1) + dense stack + 4 heads
# ----------------------------------------------------------------------------
def _conv_tail_kernel(*refs, n_extra_dense, n_pairs, hw):
    """patches -> conv+ELU -> global avg pool (fixed/moving split) -> dense -> heads.

    Everything runs in the transposed (feature-major) orientation so no in-kernel
    transpose is needed; output is [7, N] (rows: tx,ty,rot,sx,sy,shx,shy)."""
    wc_ref, bc_ref, p_ref = refs[0], refs[1], refs[2]
    w1a_ref, w1b_ref, b1_ref = refs[3], refs[4], refs[5]
    o_ref = refs[-1]

    # ---- last ConvBlock (bf16 operands, f32 accumulate) ----------------------
    y = jnp.dot(wc_ref[...], p_ref[...], preferred_element_type=jnp.float32)
    y = _elu(y + bc_ref[...])                      # [Cout, M], cols = (image, ho, wo)

    # ---- AdaptiveAvgPool2d(1) + fixed/moving split via in-kernel pool matrices
    m = y.shape[1]
    colm = lax.broadcasted_iota(jnp.int32, (m, n_pairs), 0)   # patch-column index
    tgt = lax.broadcasted_iota(jnp.int32, (m, n_pairs), 1)    # output batch index
    inv_hw = jnp.float32(1.0 / hw)
    lo_f = tgt * hw
    lo_m = (tgt + n_pairs) * hw
    pool_f = jnp.where((colm >= lo_f) & (colm < lo_f + hw), inv_hw, 0.0)  # [M, N]
    pool_m = jnp.where((colm >= lo_m) & (colm < lo_m + hw), inv_hw, 0.0)  # [M, N]
    pf = jnp.dot(y, pool_f, preferred_element_type=jnp.float32)   # fixed  feats [Cout, N]
    pm = jnp.dot(y, pool_m, preferred_element_type=jnp.float32)   # moving feats [Cout, N]

    # ---- dense stack (feature-major) -----------------------------------------
    h = _elu(jnp.dot(w1a_ref[...], pf, preferred_element_type=jnp.float32)
             + jnp.dot(w1b_ref[...], pm, preferred_element_type=jnp.float32)
             + b1_ref[...])
    idx = 6
    for _ in range(n_extra_dense):
        w_ref, b_ref = refs[idx], refs[idx + 1]
        idx += 2
        h = _elu(jnp.dot(w_ref[...], h, preferred_element_type=jnp.float32)
                 + b_ref[...])

    # ---- regression heads -----------------------------------------------------
    wh_ref, bh_ref = refs[idx], refs[idx + 1]
    yh = jnp.dot(wh_ref[...], h, preferred_element_type=jnp.float32) + bh_ref[...]  # [7, N]

    # rows: [0:2]=translation (identity), [2]=rotation ScaledTanH(pi/2),
    #       [3:5]=scaling 2**tanh, [5:7]=shearing ScaledTanH(pi/4)
    row = lax.broadcasted_iota(jnp.int32, yh.shape, 0)
    t = jnp.tanh(yh)
    out = jnp.where(
        row < NDIM, yh,
        jnp.where(row < NDIM + 1, MAX_ROTATION * t,
                  jnp.where(row < 2 * NDIM + 1,
                            jnp.exp(t * jnp.float32(LOG_MAX_SCALING)),
                            MAX_SHEARING * t)))
    o_ref[...] = out


def conv_tail_pallas(wm, b, patches_t, dense_params, head_w, head_b, *, n_pairs, hw):
    cout = wm.shape[0]
    w1, b1 = dense_params[0]
    args = [wm.astype(jnp.bfloat16),
            b.reshape(cout, 1).astype(jnp.float32),
            patches_t.astype(jnp.bfloat16),
            w1[:, :cout].astype(jnp.float32),      # weights for fixed features
            w1[:, cout:].astype(jnp.float32),      # weights for moving features
            b1.reshape(-1, 1).astype(jnp.float32)]
    for w, bb in dense_params[1:]:
        args += [w.astype(jnp.float32), bb.reshape(-1, 1).astype(jnp.float32)]
    args += [head_w.astype(jnp.float32), head_b.reshape(-1, 1).astype(jnp.float32)]
    n_out = head_w.shape[0]
    return pl.pallas_call(
        functools.partial(_conv_tail_kernel,
                          n_extra_dense=len(dense_params) - 1,
                          n_pairs=n_pairs, hw=hw),
        out_shape=jax.ShapeDtypeStruct((n_out, n_pairs), jnp.float32),
        in_specs=[pl.BlockSpec(memory_space=pltpu.MemorySpace.VMEM)] * len(args),
        out_specs=pl.BlockSpec(memory_space=pltpu.MemorySpace.VMEM),
        compiler_params=pltpu.CompilerParams(vmem_limit_bytes=VMEM_LIMIT),
    )(*args)


# ----------------------------------------------------------------------------
# Warp kernel: affine grid_sample, separable bilinear gather, P-tiled
# ----------------------------------------------------------------------------
def _warp_kernel(theta_ref, movt_ref, o_ref, *, H, W, TP):
    b = pl.program_id(0)
    pt = pl.program_id(1)
    t00 = theta_ref[b, 0]; t01 = theta_ref[b, 1]; t02 = theta_ref[b, 2]
    t10 = theta_ref[b, 3]; t11 = theta_ref[b, 4]; t12 = theta_ref[b, 5]

    # flat output-pixel indices of this tile (int32 iota), exact (row, col) decode
    p = (pt * TP + lax.broadcasted_iota(jnp.int32, (1, TP), 1)).astype(jnp.float32)
    oy = jnp.floor(p / W)
    ox = p - oy * W
    # exact correction for any f32 rounding of the division (off-by-one guard)
    oy = jnp.where(ox >= W, oy + 1.0, jnp.where(ox < 0.0, oy - 1.0, oy))
    ox = jnp.where(ox >= W, ox - W, jnp.where(ox < 0.0, ox + W, ox))

    # F.affine_grid base grid (align_corners=False)
    gx = (2.0 * ox + 1.0) / W - 1.0
    gy = (2.0 * oy + 1.0) / H - 1.0
    xs = t00 * gx + t01 * gy + t02
    ys = t10 * gx + t11 * gy + t12
    # F.grid_sample un-normalization (align_corners=False)
    ix = ((xs + 1.0) * W - 1.0) * 0.5
    iy = ((ys + 1.0) * H - 1.0) * 0.5
    ix0 = jnp.floor(ix); iy0 = jnp.floor(iy)
    wx = ix - ix0;       wy = iy - iy0

    # hoisted iota matrices (built once, shared by both one-hot selections)
    rows_h = lax.broadcasted_iota(jnp.int32, (H, TP), 0)
    rows_w = lax.broadcasted_iota(jnp.int32, (W, TP), 0)

    def onehot(rows, idx, weight, size):
        # [size, TP]: row r, col p = weight[p] if r == idx[p] and idx in-bounds
        # (zeros padding outside the image), else 0.
        inb = (idx >= 0.0) & (idx <= size - 1.0)
        wgt = jnp.where(inb, weight, 0.0)
        idc = jnp.clip(idx, 0.0, size - 1.0).astype(jnp.int32)
        return jnp.where(rows == idc, wgt, 0.0)

    rsel = onehot(rows_h, iy0, 1.0 - wy, H) + onehot(rows_h, iy0 + 1.0, wy, H)  # [H, TP]
    csel = onehot(rows_w, ix0, 1.0 - wx, W) + onehot(rows_w, ix0 + 1.0, wx, W)  # [W, TP]

    img_t = movt_ref[0]                                                  # [W, H]
    tmp = jnp.dot(img_t, rsel, preferred_element_type=jnp.float32)       # [W, TP]
    acc = jnp.sum(tmp * csel, axis=0, keepdims=True)                     # [1, TP]
    o_ref[...] = acc.reshape(1, 1, TP)


def warp_pallas(theta, mov_t):
    """theta: [N, 2, 3]; mov_t: [N, W, H] (pre-transposed image) -> [N, 1, H*W]."""
    n, w, h = mov_t.shape
    p = h * w
    tp = p if p <= WARP_TILE_P else WARP_TILE_P
    theta_flat = theta.reshape(n, 6).astype(jnp.float32)
    return pl.pallas_call(
        functools.partial(_warp_kernel, H=h, W=w, TP=tp),
        out_shape=jax.ShapeDtypeStruct((n, 1, p), jnp.float32),
        grid=(n, pl.cdiv(p, tp)),
        in_specs=[
            pl.BlockSpec(memory_space=pltpu.MemorySpace.SMEM),
            pl.BlockSpec((1, w, h), lambda b, pt: (b, 0, 0)),
        ],
        out_specs=pl.BlockSpec((1, 1, tp), lambda b, pt: (b, 0, pt)),
        compiler_params=pltpu.CompilerParams(
            dimension_semantics=("parallel", "parallel"),
            vmem_limit_bytes=VMEM_LIMIT),
    )(theta_flat, mov_t.astype(jnp.float32))


# ----------------------------------------------------------------------------
# Glue: channel-major im2col (no transpose), theta composition, parameter init
# ----------------------------------------------------------------------------
def im2col_T_cm(x_cm, k, stride):
    """Channel-major im2col: x_cm [C, NB, H, W] -> patches [C*k*k, NB*Ho*Wo].
    Row order (c, kh, kw) matches torch weight.reshape(Cout, -1); column order
    (n, ho, wo).  Built with pad + shifted strided slices + reshape ONLY (no
    transpose), so layer-to-layer glue is a single XLA concatenate pass in the
    kernels' native channel-major layout.
    # TODO(synk): fold patch construction into the conv kernel (halo'd VMEM tile
    # + shifted in-kernel views) to remove the remaining k*k HBM write."""
    c, nb, h, w = x_cm.shape
    pad = k // 2
    xp = jnp.pad(x_cm, ((0, 0), (0, 0), (pad, pad), (pad, pad)))
    ho = (h + 2 * pad - k) // stride + 1
    wo = (w + 2 * pad - k) // stride + 1
    views = []
    for ki in range(k):
        for kj in range(k):
            views.append(xp[:, :, ki:ki + stride * ho:stride,
                            kj:kj + stride * wo:stride])
    pat = jnp.stack(views, axis=1)                 # [C, k*k, NB, Ho, Wo]
    return pat.reshape(c * k * k, nb * ho * wo), ho, wo


def build_theta(translation, rotation, scale, shear):
    """theta = [R @ Shear @ Scale | t].
    # TODO(synk): AffineTransformer source not provided; this composition order
    # is assumed (standard TorchIR-style affine transformer)."""
    c = jnp.cos(rotation[:, 0])
    s = jnp.sin(rotation[:, 0])
    one = jnp.ones_like(c)
    zero = jnp.zeros_like(c)
    R = jnp.stack([jnp.stack([c, -s], -1), jnp.stack([s, c], -1)], -2)
    Sh = jnp.stack([jnp.stack([one, shear[:, 0]], -1),
                    jnp.stack([shear[:, 1], one], -1)], -2)
    Sc = jnp.stack([jnp.stack([scale[:, 0], zero], -1),
                    jnp.stack([zero, scale[:, 1]], -1)], -2)
    A = R @ Sh @ Sc
    return jnp.concatenate([A, translation[:, :, None]], axis=-1)   # [N, 2, 3]


def init_params(key):
    keys = jax.random.split(key, NUM_CONV_LAYERS + NUM_DENSE_LAYERS + 4)
    ki = iter(range(len(keys)))

    def linear_init(fan_in, fan_out):
        # torch orientation: weight [out, in]
        w = jax.random.normal(keys[next(ki)], (fan_out, fan_in), jnp.float32)
        return w * (1.0 / math.sqrt(fan_in)), jnp.zeros((fan_out,), jnp.float32)

    params = {}
    convs = []
    in_ch = 1
    for _ in range(NUM_CONV_LAYERS):
        fan_in = in_ch * KERNEL_SIZE * KERNEL_SIZE
        w = jax.random.normal(keys[next(ki)],
                              (KERNELS, in_ch, KERNEL_SIZE, KERNEL_SIZE),
                              jnp.float32) * (1.0 / math.sqrt(fan_in))
        convs.append((w, jnp.zeros((KERNELS,), jnp.float32)))
        in_ch = KERNELS
    params["convs"] = convs

    dense = [linear_init(2 * KERNELS, LINEAR_NODES)]
    for _ in range(1, NUM_DENSE_LAYERS):
        dense.append(linear_init(LINEAR_NODES, LINEAR_NODES))
    params["dense"] = dense

    # Heads stacked along the output dim: [translation(2)|rotation(1)|scaling(2)|shearing(2)]
    tw, tb = linear_init(LINEAR_NODES, NDIM)
    rw, rb = linear_init(LINEAR_NODES, 1)
    sw, sb = linear_init(LINEAR_NODES, NDIM)
    shw, shb = linear_init(LINEAR_NODES, (NDIM - 1) * NDIM)
    params["head_w"] = jnp.concatenate([tw, rw, sw, shw], axis=0)   # [7, L]
    params["head_b"] = jnp.concatenate([tb, rb, sb, shb], axis=0)   # [7]
    return params


# ----------------------------------------------------------------------------
# Full AIRNet forward
# ----------------------------------------------------------------------------
@jax.jit
def airnet_forward(params, fixed, moving):
    nb = fixed.shape[0]
    h, w = moving.shape[2], moving.shape[3]
    nb2 = 2 * nb

    # --- conv feature extractor: fixed & moving batched through ONE pass,
    #     channel-major activations, bf16 streams -----------------------------
    x = jnp.concatenate([fixed, moving], axis=0).astype(jnp.bfloat16)   # [2N,1,H,W]
    x_cm = jnp.transpose(x, (1, 0, 2, 3))        # [1, 2N, H, W] (free: C == 1)

    for i, (cw, cb) in enumerate(params["convs"][:-1]):
        stride = CONV_STRIDES[i]                                         # static int
        patches, ho, wo = im2col_T_cm(x_cm, KERNEL_SIZE, stride)         # bf16 [Cin*9, M]
        cout = cw.shape[0]
        wm = cw.reshape(cout, -1)
        y = conv_elu_pallas(wm, cb, patches)                             # bf16 [Cout, M]
        x_cm = y.reshape(cout, nb2, ho, wo)                              # no transpose

    # --- last ConvBlock + AdaptiveAvgPool2d(1) + dense stack + 4 heads, fused --
    cw, cb = params["convs"][-1]
    patches, ho, wo = im2col_T_cm(x_cm, KERNEL_SIZE, CONV_STRIDES[-1])
    heads_t = conv_tail_pallas(cw.reshape(cw.shape[0], -1), cb, patches,
                               params["dense"], params["head_w"], params["head_b"],
                               n_pairs=nb, hw=ho * wo)                   # [7, N]
    heads = heads_t.T                                                    # [N, 7]
    translation = heads[:, 0:NDIM]
    rotation = heads[:, NDIM:NDIM + 1]
    scale = heads[:, NDIM + 1:2 * NDIM + 1]
    shear = heads[:, 2 * NDIM + 1:]

    # --- affine transformer: warp `moving` under theta ------------------------
    theta = build_theta(translation, rotation, scale, shear)
    mov_t = jnp.swapaxes(moving[:, 0, :, :].astype(jnp.float32), 1, 2)   # [N, W, H]
    warped = warp_pallas(theta, mov_t).reshape(nb, 1, h, w)
    return warped, (translation, rotation, scale, shear)


if __name__ == "__main__":
    key = jax.random.PRNGKey(0)
    kf, km, kp = jax.random.split(key, 3)
    fixed = jax.random.normal(kf, (2, 1, 16, 16), dtype=jnp.float32)
    moving = jax.random.normal(km, (2, 1, 16, 16), dtype=jnp.float32)
    params = init_params(kp)

    warped, (translation, rotation, scale, shear) = airnet_forward(params, fixed, moving)
    jax.block_until_ready(warped)
    jax.block_until_ready(translation)

    assert warped.shape == (2, 1, 16, 16)
    assert translation.shape == (2, NDIM)
    assert rotation.shape == (2, 1)
    assert scale.shape == (2, NDIM)
    assert shear.shape == (2, (NDIM - 1) * NDIM)
    assert bool(jnp.all(jnp.isfinite(warped)))
    assert bool(jnp.all(jnp.isfinite(scale)))
    print("KERNEL_OK")
</pallas_src>

<mosaic_0001>
module attributes {stable_mosaic.version = 11 : i64} {
  func.func @_conv_elu_kernel(%arg0: i32, %arg1: memref<32x9xbf16, #tpu.memory_space<vmem>>, %arg2: memref<32x1xf32, #tpu.memory_space<vmem>>, %arg3: memref<9x256xbf16, #tpu.memory_space<vmem>>, %arg4: memref<32x256xbf16, #tpu.memory_space<vmem>>) attributes {dimension_semantics = [#tpu.dimension_semantics<parallel>], iteration_bounds = array<i64: 1>, scalar_prefetch = 0 : i64, scratch_operands = 0 : i64, tpu.core_type = #tpu.core_type<tc>, window_params = [{pipeline_mode = #tpu.pipeline_mode<synchronous>, transform_indices = @transform_0, window_bounds = array<i64: 32, 9>}, {pipeline_mode = #tpu.pipeline_mode<synchronous>, transform_indices = @transform_1, window_bounds = array<i64: 32, 1>}, {transform_indices = @transform_2, window_bounds = array<i64: 9, 256>}, {transform_indices = @transform_3, window_bounds = array<i64: 32, 256>}]} {
    %c0 = arith.constant 0 : index
    %c0_0 = arith.constant 0 : index
    %0 = vector.load %arg1[%c0, %c0_0] : memref<32x9xbf16, #tpu.memory_space<vmem>>, vector<32x9xbf16>
    %c0_1 = arith.constant 0 : index
    %c0_2 = arith.constant 0 : index
    %1 = vector.load %arg3[%c0_1, %c0_2] : memref<9x256xbf16, #tpu.memory_space<vmem>>, vector<9x256xbf16>
    %cst = arith.constant dense<0.000000e+00> : vector<32x256xf32>
    %2 = tpu.matmul %0, %1, %cst {dimension_numbers = #tpu.dot_dimension_numbers<[1], [0], [0], [1], [0, 0, 1, 1], [], []>} : vector<32x9xbf16>, vector<9x256xbf16>, vector<32x256xf32> -> vector<32x256xf32>
    %c0_3 = arith.constant 0 : index
    %c0_4 = arith.constant 0 : index
    %3 = vector.load %arg2[%c0_3, %c0_4] : memref<32x1xf32, #tpu.memory_space<vmem>>, vector<32x1xf32>
    %4 = vector.broadcast %3 : vector<32x1xf32> to vector<32x256xf32>
    %5 = arith.addf %2, %4 : vector<32x256xf32>
    %cst_5 = arith.constant 0.000000e+00 : f32
    %6 = vector.broadcast %cst_5 : f32 to vector<32x256xf32>
    %7 = arith.cmpf ogt, %5, %6 : vector<32x256xf32>
    %8 = math.exp %5 : vector<32x256xf32>
    %cst_6 = arith.constant 1.000000e+00 : f32
    %9 = vector.broadcast %cst_6 : f32 to vector<32x256xf32>
    %10 = arith.subf %8, %9 : vector<32x256xf32>
    %11 = arith.select %7, %5, %10 : vector<32x256xi1>, vector<32x256xf32>
    %12 = arith.truncf %11 : vector<32x256xf32> to vector<32x256xbf16>
    %c0_7 = arith.constant 0 : index
    %c0_8 = arith.constant 0 : index
    %13 = vector.load %arg4[%c0_7, %c0_8] : memref<32x256xbf16, #tpu.memory_space<vmem>>, vector<32x256xbf16>
    tpu.vector_store %arg4[%c0_7, %c0_8], %12 {strides = array<i32>} : memref<32x256xbf16, #tpu.memory_space<vmem>>, vector<32x256xbf16>,
    return
  }
  func.func @transform_0(%arg0: i32) -> (i32, i32) {
    %c0_i32 = arith.constant 0 : i32
    %c0_i32_0 = arith.constant 0 : i32
    %c0_i32_1 = arith.constant 0 : i32
    return %c0_i32, %c0_i32_0 : i32, i32
  }
  func.func @transform_1(%arg0: i32) -> (i32, i32) {
    %c0_i32 = arith.constant 0 : i32
    %c0_i32_0 = arith.constant 0 : i32
    %c0_i32_1 = arith.constant 0 : i32
    return %c0_i32, %c0_i32_0 : i32, i32
  }
  func.func @transform_2(%arg0: i32) -> (i32, i32) {
    %c0_i32 = arith.constant 0 : i32
    %c0_i32_0 = arith.constant 0 : i32
    return %c0_i32, %arg0 : i32, i32
  }
  func.func @transform_3(%arg0: i32) -> (i32, i32) {
    %c0_i32 = arith.constant 0 : i32
    %c0_i32_0 = arith.constant 0 : i32
    return %c0_i32, %arg0 : i32, i32
  }
}

module attributes {stable_mosaic.version = 11 : i64} {
  func.func @_conv_elu_kernel(%arg0: i32, %arg1: memref<32x288xbf16, #tpu.memory_space<vmem>>, %arg2: memref<32x1xf32, #tpu.memory_space<vmem>>, %arg3: memref<288x64xbf16, #tpu.memory_space<vmem>>, %arg4: memref<32x64xbf16, #tpu.memory_space<vmem>>) attributes {dimension_semantics = [#tpu.dimension_semantics<parallel>], iteration_bounds = array<i64: 1>, scalar_prefetch = 0 : i64, scratch_operands = 0 : i64, tpu.core_type = #tpu.core_type<tc>, window_params = [{pipeline_mode = #tpu.pipeline_mode<synchronous>, transform_indices = @transform_0, window_bounds = array<i64: 32, 288>}, {pipeline_mode = #tpu.pipeline_mode<synchronous>, transform_indices = @transform_1, window_bounds = array<i64: 32, 1>}, {transform_indices = @transform_2, window_bounds = array<i64: 288, 64>}, {transform_indices = @transform_3, window_bounds = array<i64: 32, 64>}]} {
    %c0 = arith.constant 0 : index
    %c0_0 = arith.constant 0 : index
    %0 = vector.load %arg1[%c0, %c0_0] : memref<32x288xbf16, #tpu.memory_space<vmem>>, vector<32x288xbf16>
    %c0_1 = arith.constant 0 : index
    %c0_2 = arith.constant 0 : index
    %1 = vector.load %arg3[%c0_1, %c0_2] : memref<288x64xbf16, #tpu.memory_space<vmem>>, vector<288x64xbf16>
    %cst = arith.constant dense<0.000000e+00> : vector<32x64xf32>
    %2 = tpu.matmul %0, %1, %cst {dimension_numbers = #tpu.dot_dimension_numbers<[1], [0], [0], [1], [0, 0, 1, 1], [], []>} : vector<32x288xbf16>, vector<288x64xbf16>, vector<32x64xf32> -> vector<32x64xf32>
    %c0_3 = arith.constant 0 : index
    %c0_4 = arith.constant 0 : index
    %3 = vector.load %arg2[%c0_3, %c0_4] : memref<32x1xf32, #tpu.memory_space<vmem>>, vector<32x1xf32>
    %4 = vector.broadcast %3 : vector<32x1xf32> to vector<32x64xf32>
    %5 = arith.addf %2, %4 : vector<32x64xf32>
    %cst_5 = arith.constant 0.000000e+00 : f32
    %6 = vector.broadcast %cst_5 : f32 to vector<32x64xf32>
    %7 = arith.cmpf ogt, %5, %6 : vector<32x64xf32>
    %8 = math.exp %5 : vector<32x64xf32>
    %cst_6 = arith.constant 1.000000e+00 : f32
    %9 = vector.broadcast %cst_6 : f32 to vector<32x64xf32>
    %10 = arith.subf %8, %9 : vector<32x64xf32>
    %11 = arith.select %7, %5, %10 : vector<32x64xi1>, vector<32x64xf32>
    %12 = arith.truncf %11 : vector<32x64xf32> to vector<32x64xbf16>
    %c0_7 = arith.constant 0 : index
    %c0_8 = arith.constant 0 : index
    %13 = vector.load %arg4[%c0_7, %c0_8] : memref<32x64xbf16, #tpu.memory_space<vmem>>, vector<32x64xbf16>
    tpu.vector_store %arg4[%c0_7, %c0_8], %12 {strides = array<i32>} : memref<32x64xbf16, #tpu.memory_space<vmem>>, vector<32x64xbf16>,
    return
  }
  func.func @transform_0(%arg0: i32) -> (i32, i32) {
    %c0_i32 = arith.constant 0 : i32
    %c0_i32_0 = arith.constant 0 : i32
    %c0_i32_1 = arith.constant 0 : i32
    return %c0_i32, %c0_i32_0 : i32, i32
  }
  func.func @transform_1(%arg0: i32) -> (i32, i32) {
    %c0_i32 = arith.constant 0 : i32
    %c0_i32_0 = arith.constant 0 : i32
    %c0_i32_1 = arith.constant 0 : i32
    return %c0_i32, %c0_i32_0 : i32, i32
  }
  func.func @transform_2(%arg0: i32) -> (i32, i32) {
    %c0_i32 = arith.constant 0 : i32
    %c0_i32_0 = arith.constant 0 : i32
    return %c0_i32, %arg0 : i32, i32
  }
  func.func @transform_3(%arg0: i32) -> (i32, i32) {
    %c0_i32 = arith.constant 0 : i32
    %c0_i32_0 = arith.constant 0 : i32
    return %c0_i32, %arg0 : i32, i32
  }
}

module attributes {stable_mosaic.version = 11 : i64} {
  func.func @_conv_elu_kernel(%arg0: i32, %arg1: memref<32x288xbf16, #tpu.memory_space<vmem>>, %arg2: memref<32x1xf32, #tpu.memory_space<vmem>>, %arg3: memref<288x16xbf16, #tpu.memory_space<vmem>>, %arg4: memref<32x16xbf16, #tpu.memory_space<vmem>>) attributes {dimension_semantics = [#tpu.dimension_semantics<parallel>], iteration_bounds = array<i64: 1>, scalar_prefetch = 0 : i64, scratch_operands = 0 : i64, tpu.core_type = #tpu.core_type<tc>, window_params = [{pipeline_mode = #tpu.pipeline_mode<synchronous>, transform_indices = @transform_0, window_bounds = array<i64: 32, 288>}, {pipeline_mode = #tpu.pipeline_mode<synchronous>, transform_indices = @transform_1, window_bounds = array<i64: 32, 1>}, {transform_indices = @transform_2, window_bounds = array<i64: 288, 16>}, {transform_indices = @transform_3, window_bounds = array<i64: 32, 16>}]} {
    %c0 = arith.constant 0 : index
    %c0_0 = arith.constant 0 : index
    %0 = vector.load %arg1[%c0, %c0_0] : memref<32x288xbf16, #tpu.memory_space<vmem>>, vector<32x288xbf16>
    %c0_1 = arith.constant 0 : index
    %c0_2 = arith.constant 0 : index
    %1 = vector.load %arg3[%c0_1, %c0_2] : memref<288x16xbf16, #tpu.memory_space<vmem>>, vector<288x16xbf16>
    %cst = arith.constant dense<0.000000e+00> : vector<32x16xf32>
    %2 = tpu.matmul %0, %1, %cst {dimension_numbers = #tpu.dot_dimension_numbers<[1], [0], [0], [1], [0, 0, 1, 1], [], []>} : vector<32x288xbf16>, vector<288x16xbf16>, vector<32x16xf32> -> vector<32x16xf32>
    %c0_3 = arith.constant 0 : index
    %c0_4 = arith.constant 0 : index
    %3 = vector.load %arg2[%c0_3, %c0_4] : memref<32x1xf32, #tpu.memory_space<vmem>>, vector<32x1xf32>
    %4 = vector.broadcast %3 : vector<32x1xf32> to vector<32x16xf32>
    %5 = arith.addf %2, %4 : vector<32x16xf32>
    %cst_5 = arith.constant 0.000000e+00 : f32
    %6 = vector.broadcast %cst_5 : f32 to vector<32x16xf32>
    %7 = arith.cmpf ogt, %5, %6 : vector<32x16xf32>
    %8 = math.exp %5 : vector<32x16xf32>
    %cst_6 = arith.constant 1.000000e+00 : f32
    %9 = vector.broadcast %cst_6 : f32 to vector<32x16xf32>
    %10 = arith.subf %8, %9 : vector<32x16xf32>
    %11 = arith.select %7, %5, %10 : vector<32x16xi1>, vector<32x16xf32>
    %12 = arith.truncf %11 : vector<32x16xf32> to vector<32x16xbf16>
    %c0_7 = arith.constant 0 : index
    %c0_8 = arith.constant 0 : index
    %13 = vector.load %arg4[%c0_7, %c0_8] : memref<32x16xbf16, #tpu.memory_space<vmem>>, vector<32x16xbf16>
    tpu.vector_store %arg4[%c0_7, %c0_8], %12 {strides = array<i32>} : memref<32x16xbf16, #tpu.memory_space<vmem>>, vector<32x16xbf16>,
    return
  }
  func.func @transform_0(%arg0: i32) -> (i32, i32) {
    %c0_i32 = arith.constant 0 : i32
    %c0_i32_0 = arith.constant 0 : i32
    %c0_i32_1 = arith.constant 0 : i32
    return %c0_i32, %c0_i32_0 : i32, i32
  }
  func.func @transform_1(%arg0: i32) -> (i32, i32) {
    %c0_i32 = arith.constant 0 : i32
    %c0_i32_0 = arith.constant 0 : i32
    %c0_i32_1 = arith.constant 0 : i32
    return %c0_i32, %c0_i32_0 : i32, i32
  }
  func.func @transform_2(%arg0: i32) -> (i32, i32) {
    %c0_i32 = arith.constant 0 : i32
    %c0_i32_0 = arith.constant 0 : i32
    return %c0_i32, %arg0 : i32, i32
  }
  func.func @transform_3(%arg0: i32) -> (i32, i32) {
    %c0_i32 = arith.constant 0 : i32
    %c0_i32_0 = arith.constant 0 : i32
    return %c0_i32, %arg0 : i32, i32
  }
}

module attributes {stable_mosaic.version = 11 : i64} {
  func.func @_conv_elu_kernel(%arg0: i32, %arg1: memref<32x288xbf16, #tpu.memory_space<vmem>>, %arg2: memref<32x1xf32, #tpu.memory_space<vmem>>, %arg3: memref<288x4xbf16, #tpu.memory_space<vmem>>, %arg4: memref<32x4xbf16, #tpu.memory_space<vmem>>) attributes {dimension_semantics = [#tpu.dimension_semantics<parallel>], iteration_bounds = array<i64: 1>, scalar_prefetch = 0 : i64, scratch_operands = 0 : i64, tpu.core_type = #tpu.core_type<tc>, window_params = [{pipeline_mode = #tpu.pipeline_mode<synchronous>, transform_indices = @transform_0, window_bounds = array<i64: 32, 288>}, {pipeline_mode = #tpu.pipeline_mode<synchronous>, transform_indices = @transform_1, window_bounds = array<i64: 32, 1>}, {transform_indices = @transform_2, window_bounds = array<i64: 288, 4>}, {transform_indices = @transform_3, window_bounds = array<i64: 32, 4>}]} {
    %c0 = arith.constant 0 : index
    %c0_0 = arith.constant 0 : index
    %0 = vector.load %arg1[%c0, %c0_0] : memref<32x288xbf16, #tpu.memory_space<vmem>>, vector<32x288xbf16>
    %c0_1 = arith.constant 0 : index
    %c0_2 = arith.constant 0 : index
    %1 = vector.load %arg3[%c0_1, %c0_2] : memref<288x4xbf16, #tpu.memory_space<vmem>>, vector<288x4xbf16>
    %cst = arith.constant dense<0.000000e+00> : vector<32x4xf32>
    %2 = tpu.matmul %0, %1, %cst {dimension_numbers = #tpu.dot_dimension_numbers<[1], [0], [0], [1], [0, 0, 1, 1], [], []>} : vector<32x288xbf16>, vector<288x4xbf16>, vector<32x4xf32> -> vector<32x4xf32>
    %c0_3 = arith.constant 0 : index
    %c0_4 = arith.constant 0 : index
    %3 = vector.load %arg2[%c0_3, %c0_4] : memref<32x1xf32, #tpu.memory_space<vmem>>, vector<32x1xf32>
    %4 = vector.broadcast %3 : vector<32x1xf32> to vector<32x4xf32>
    %5 = arith.addf %2, %4 : vector<32x4xf32>
    %cst_5 = arith.constant 0.000000e+00 : f32
    %6 = vector.broadcast %cst_5 : f32 to vector<32x4xf32>
    %7 = arith.cmpf ogt, %5, %6 : vector<32x4xf32>
    %8 = math.exp %5 : vector<32x4xf32>
    %cst_6 = arith.constant 1.000000e+00 : f32
    %9 = vector.broadcast %cst_6 : f32 to vector<32x4xf32>
    %10 = arith.subf %8, %9 : vector<32x4xf32>
    %11 = arith.select %7, %5, %10 : vector<32x4xi1>, vector<32x4xf32>
    %12 = arith.truncf %11 : vector<32x4xf32> to vector<32x4xbf16>
    %c0_7 = arith.constant 0 : index
    %c0_8 = arith.constant 0 : index
    %13 = vector.load %arg4[%c0_7, %c0_8] : memref<32x4xbf16, #tpu.memory_space<vmem>>, vector<32x4xbf16>
    tpu.vector_store %arg4[%c0_7, %c0_8], %12 {strides = array<i32>} : memref<32x4xbf16, #tpu.memory_space<vmem>>, vector<32x4xbf16>,
    return
  }
  func.func @transform_0(%arg0: i32) -> (i32, i32) {
    %c0_i32 = arith.constant 0 : i32
    %c0_i32_0 = arith.constant 0 : i32
    %c0_i32_1 = arith.constant 0 : i32
    return %c0_i32, %c0_i32_0 : i32, i32
  }
  func.func @transform_1(%arg0: i32) -> (i32, i32) {
    %c0_i32 = arith.constant 0 : i32
    %c0_i32_0 = arith.constant 0 : i32
    %c0_i32_1 = arith.constant 0 : i32
    return %c0_i32, %c0_i32_0 : i32, i32
  }
  func.func @transform_2(%arg0: i32) -> (i32, i32) {
    %c0_i32 = arith.constant 0 : i32
    %c0_i32_0 = arith.constant 0 : i32
    return %c0_i32, %arg0 : i32, i32
  }
  func.func @transform_3(%arg0: i32) -> (i32, i32) {
    %c0_i32 = arith.constant 0 : i32
    %c0_i32_0 = arith.constant 0 : i32
    return %c0_i32, %arg0 : i32, i32
  }
}

module attributes {stable_mosaic.version = 11 : i64} {
  func.func @_conv_tail_kernel(%arg0: memref<32x288xbf16, #tpu.memory_space<vmem>>, %arg1: memref<32x1xf32, #tpu.memory_space<vmem>>, %arg2: memref<288x4xbf16, #tpu.memory_space<vmem>>, %arg3: memref<64x32xf32, #tpu.memory_space<vmem>>, %arg4: memref<64x32xf32, #tpu.memory_space<vmem>>, %arg5: memref<64x1xf32, #tpu.memory_space<vmem>>, %arg6: memref<64x64xf32, #tpu.memory_space<vmem>>, %arg7: memref<64x1xf32, #tpu.memory_space<vmem>>, %arg8: memref<7x64xf32, #tpu.memory_space<vmem>>, %arg9: memref<7x1xf32, #tpu.memory_space<vmem>>, %arg10: memref<7x2xf32, #tpu.memory_space<vmem>>) attributes {dimension_semantics = [], scalar_prefetch = 0 : i64, scratch_operands = 0 : i64, tpu.core_type = #tpu.core_type<tc>} {
    %c0 = arith.constant 0 : index
    %c0_0 = arith.constant 0 : index
    %0 = vector.load %arg0[%c0, %c0_0] : memref<32x288xbf16, #tpu.memory_space<vmem>>, vector<32x288xbf16>
    %c0_1 = arith.constant 0 : index
    %c0_2 = arith.constant 0 : index
    %1 = vector.load %arg2[%c0_1, %c0_2] : memref<288x4xbf16, #tpu.memory_space<vmem>>, vector<288x4xbf16>
    %cst = arith.constant dense<0.000000e+00> : vector<32x4xf32>
    %2 = tpu.matmul %0, %1, %cst {dimension_numbers = #tpu.dot_dimension_numbers<[1], [0], [0], [1], [0, 0, 1, 1], [], []>} : vector<32x288xbf16>, vector<288x4xbf16>, vector<32x4xf32> -> vector<32x4xf32>
    %c0_3 = arith.constant 0 : index
    %c0_4 = arith.constant 0 : index
    %3 = vector.load %arg1[%c0_3, %c0_4] : memref<32x1xf32, #tpu.memory_space<vmem>>, vector<32x1xf32>
    %4 = vector.broadcast %3 : vector<32x1xf32> to vector<32x4xf32>
    %5 = arith.addf %2, %4 : vector<32x4xf32>
    %cst_5 = arith.constant 0.000000e+00 : f32
    %6 = vector.broadcast %cst_5 : f32 to vector<32x4xf32>
    %7 = arith.cmpf ogt, %5, %6 : vector<32x4xf32>
    %8 = math.exp %5 : vector<32x4xf32>
    %cst_6 = arith.constant 1.000000e+00 : f32
    %9 = vector.broadcast %cst_6 : f32 to vector<32x4xf32>
    %10 = arith.subf %8, %9 : vector<32x4xf32>
    %11 = arith.select %7, %5, %10 : vector<32x4xi1>, vector<32x4xf32>
    %12 = tpu.iota {dimensions = array<i32: 0>} : vector<4x2xi32>
    %13 = tpu.iota {dimensions = array<i32: 1>} : vector<4x2xi32>
    %c1_i32 = arith.constant 1 : i32
    %14 = vector.broadcast %c1_i32 : i32 to vector<4x2xi32>
    %15 = arith.muli %13, %14 : vector<4x2xi32>
    %c2_i32 = arith.constant 2 : i32
    %16 = vector.broadcast %c2_i32 : i32 to vector<4x2xi32>
    %17 = arith.addi %13, %16 : vector<4x2xi32>
    %c1_i32_7 = arith.constant 1 : i32
    %18 = vector.broadcast %c1_i32_7 : i32 to vector<4x2xi32>
    %19 = arith.muli %17, %18 : vector<4x2xi32>
    %20 = arith.cmpi sge, %12, %15 : vector<4x2xi32>
    %c1_i32_8 = arith.constant 1 : i32
    %21 = vector.broadcast %c1_i32_8 : i32 to vector<4x2xi32>
    %22 = arith.addi %15, %21 : vector<4x2xi32>
    %23 = arith.cmpi slt, %12, %22 : vector<4x2xi32>
    %24 = arith.andi %20, %23 : vector<4x2xi1>
    %cst_9 = arith.constant 1.000000e+00 : f32
    %cst_10 = arith.constant 0.000000e+00 : f32
    %25 = vector.broadcast %cst_9 : f32 to vector<4x2xf32>
    %26 = vector.broadcast %cst_10 : f32 to vector<4x2xf32>
    %27 = arith.select %24, %25, %26 : vector<4x2xi1>, vector<4x2xf32>
    %28 = arith.cmpi sge, %12, %19 : vector<4x2xi32>
    %c1_i32_11 = arith.constant 1 : i32
    %29 = vector.broadcast %c1_i32_11 : i32 to vector<4x2xi32>
    %30 = arith.addi %19, %29 : vector<4x2xi32>
    %31 = arith.cmpi slt, %12, %30 : vector<4x2xi32>
    %32 = arith.andi %28, %31 : vector<4x2xi1>
    %cst_12 = arith.constant 1.000000e+00 : f32
    %cst_13 = arith.constant 0.000000e+00 : f32
    %33 = vector.broadcast %cst_12 : f32 to vector<4x2xf32>
    %34 = vector.broadcast %cst_13 : f32 to vector<4x2xf32>
    %35 = arith.select %32, %33, %34 : vector<4x2xi1>, vector<4x2xf32>
    %cst_14 = arith.constant dense<0.000000e+00> : vector<32x2xf32>
    %36 = tpu.matmul %11, %27, %cst_14 {dimension_numbers = #tpu.dot_dimension_numbers<[1], [0], [0], [1], [0, 0, 1, 1], [], []>} : vector<32x4xf32>, vector<4x2xf32>, vector<32x2xf32> -> vector<32x2xf32>
    %cst_15 = arith.constant dense<0.000000e+00> : vector<32x2xf32>
    %37 = tpu.matmul %11, %35, %cst_15 {dimension_numbers = #tpu.dot_dimension_numbers<[1], [0], [0], [1], [0, 0, 1, 1], [], []>} : vector<32x4xf32>, vector<4x2xf32>, vector<32x2xf32> -> vector<32x2xf32>
    %c0_16 = arith.constant 0 : index
    %c0_17 = arith.constant 0 : index
    %38 = vector.load %arg3[%c0_16, %c0_17] : memref<64x32xf32, #tpu.memory_space<vmem>>, vector<64x32xf32>
    %cst_18 = arith.constant dense<0.000000e+00> : vector<64x2xf32>
    %39 = tpu.matmul %38, %36, %cst_18 {dimension_numbers = #tpu.dot_dimension_numbers<[1], [0], [0], [1], [0, 0, 1, 1], [], []>} : vector<64x32xf32>, vector<32x2xf32>, vector<64x2xf32> -> vector<64x2xf32>
    %c0_19 = arith.constant 0 : index
    %c0_20 = arith.constant 0 : index
    %40 = vector.load %arg4[%c0_19, %c0_20] : memref<64x32xf32, #tpu.memory_space<vmem>>, vector<64x32xf32>
    %cst_21 = arith.constant dense<0.000000e+00> : vector<64x2xf32>
    %41 = tpu.matmul %40, %37, %cst_21 {dimension_numbers = #tpu.dot_dimension_numbers<[1], [0], [0], [1], [0, 0, 1, 1], [], []>} : vector<64x32xf32>, vector<32x2xf32>, vector<64x2xf32> -> vector<64x2xf32>
    %42 = arith.addf %39, %41 : vector<64x2xf32>
    %c0_22 = arith.constant 0 : index
    %c0_23 = arith.constant 0 : index
    %43 = vector.load %arg5[%c0_22, %c0_23] : memref<64x1xf32, #tpu.memory_space<vmem>>, vector<64x1xf32>
    %44 = vector.broadcast %43 : vector<64x1xf32> to vector<64x2xf32>
    %45 = arith.addf %42, %44 : vector<64x2xf32>
    %cst_24 = arith.constant 0.000000e+00 : f32
    %46 = vector.broadcast %cst_24 : f32 to vector<64x2xf32>
    %47 = arith.cmpf ogt, %45, %46 : vector<64x2xf32>
    %48 = math.exp %45 : vector<64x2xf32>
    %cst_25 = arith.constant 1.000000e+00 : f32
    %49 = vector.broadcast %cst_25 : f32 to vector<64x2xf32>
    %50 = arith.subf %48, %49 : vector<64x2xf32>
    %51 = arith.select %47, %45, %50 : vector<64x2xi1>, vector<64x2xf32>
    %c0_26 = arith.constant 0 : index
    %c0_27 = arith.constant 0 : index
    %52 = vector.load %arg6[%c0_26, %c0_27] : memref<64x64xf32, #tpu.memory_space<vmem>>, vector<64x64xf32>
    %cst_28 = arith.constant dense<0.000000e+00> : vector<64x2xf32>
    %53 = tpu.matmul %52, %51, %cst_28 {dimension_numbers = #tpu.dot_dimension_numbers<[1], [0], [0], [1], [0, 0, 1, 1], [], []>} : vector<64x64xf32>, vector<64x2xf32>, vector<64x2xf32> -> vector<64x2xf32>
    %c0_29 = arith.constant 0 : index
    %c0_30 = arith.constant 0 : index
    %54 = vector.load %arg7[%c0_29, %c0_30] : memref<64x1xf32, #tpu.memory_space<vmem>>, vector<64x1xf32>
    %55 = vector.broadcast %54 : vector<64x1xf32> to vector<64x2xf32>
    %56 = arith.addf %53, %55 : vector<64x2xf32>
    %cst_31 = arith.constant 0.000000e+00 : f32
    %57 = vector.broadcast %cst_31 : f32 to vector<64x2xf32>
    %58 = arith.cmpf ogt, %56, %57 : vector<64x2xf32>
    %59 = math.exp %56 : vector<64x2xf32>
    %cst_32 = arith.constant 1.000000e+00 : f32
    %60 = vector.broadcast %cst_32 : f32 to vector<64x2xf32>
    %61 = arith.subf %59, %60 : vector<64x2xf32>
    %62 = arith.select %58, %56, %61 : vector<64x2xi1>, vector<64x2xf32>
    %c0_33 = arith.constant 0 : index
    %c0_34 = arith.constant 0 : index
    %63 = vector.load %arg8[%c0_33, %c0_34] : memref<7x64xf32, #tpu.memory_space<vmem>>, vector<7x64xf32>
    %cst_35 = arith.constant dense<0.000000e+00> : vector<7x2xf32>
    %64 = tpu.matmul %63, %62, %cst_35 {dimension_numbers = #tpu.dot_dimension_numbers<[1], [0], [0], [1], [0, 0, 1, 1], [], []>} : vector<7x64xf32>, vector<64x2xf32>, vector<7x2xf32> -> vector<7x2xf32>
    %c0_36 = arith.constant 0 : index
    %c0_37 = arith.constant 0 : index
    %65 = vector.load %arg9[%c0_36, %c0_37] : memref<7x1xf32, #tpu.memory_space<vmem>>, vector<7x1xf32>
    %66 = vector.broadcast %65 : vector<7x1xf32> to vector<7x2xf32>
    %67 = arith.addf %64, %66 : vector<7x2xf32>
    %68 = tpu.iota {dimensions = array<i32: 0>} : vector<7x2xi32>
    %69 = math.tanh %67 : vector<7x2xf32>
    %c2_i32_38 = arith.constant 2 : i32
    %70 = vector.broadcast %c2_i32_38 : i32 to vector<7x2xi32>
    %71 = arith.cmpi slt, %68, %70 : vector<7x2xi32>
    %c3_i32 = arith.constant 3 : i32
    %72 = vector.broadcast %c3_i32 : i32 to vector<7x2xi32>
    %73 = arith.cmpi slt, %68, %72 : vector<7x2xi32>
    %cst_39 = arith.constant 1.57079637 : f32
    %74 = vector.broadcast %cst_39 : f32 to vector<7x2xf32>
    %75 = arith.mulf %74, %69 : vector<7x2xf32>
    %c5_i32 = arith.constant 5 : i32
    %76 = vector.broadcast %c5_i32 : i32 to vector<7x2xi32>
    %77 = arith.cmpi slt, %68, %76 : vector<7x2xi32>
    %cst_40 = arith.constant 0.693147182 : f32
    %78 = vector.broadcast %cst_40 : f32 to vector<7x2xf32>
    %79 = arith.mulf %69, %78 : vector<7x2xf32>
    %80 = math.exp %79 : vector<7x2xf32>
    %cst_41 = arith.constant 0.785398185 : f32
    %81 = vector.broadcast %cst_41 : f32 to vector<7x2xf32>
    %82 = arith.mulf %81, %69 : vector<7x2xf32>
    %83 = arith.select %77, %80, %82 : vector<7x2xi1>, vector<7x2xf32>
    %84 = arith.select %73, %75, %83 : vector<7x2xi1>, vector<7x2xf32>
    %85 = arith.select %71, %67, %84 : vector<7x2xi1>, vector<7x2xf32>
    %c0_42 = arith.constant 0 : index
    %c0_43 = arith.constant 0 : index
    %86 = vector.load %arg10[%c0_42, %c0_43] : memref<7x2xf32, #tpu.memory_space<vmem>>, vector<7x2xf32>
    tpu.vector_store %arg10[%c0_42, %c0_43], %85 {strides = array<i32>} : memref<7x2xf32, #tpu.memory_space<vmem>>, vector<7x2xf32>,
    return
  }
}

module attributes {stable_mosaic.version = 11 : i64} {
  func.func @_warp_kernel(%arg0: i32, %arg1: i32, %arg2: memref<2x6xf32, #tpu.memory_space<smem>>, %arg3: memref<1x16x16xf32, #tpu.memory_space<vmem>>, %arg4: memref<1x1x256xf32, #tpu.memory_space<vmem>>) attributes {dimension_semantics = [#tpu.dimension_semantics<parallel>, #tpu.dimension_semantics<parallel>], iteration_bounds = array<i64: 2, 1>, scalar_prefetch = 0 : i64, scratch_operands = 0 : i64, tpu.core_type = #tpu.core_type<tc>, window_params = [{transform_indices = @transform_0, window_bounds = array<i64: 2, 6>}, {transform_indices = @transform_1, window_bounds = array<i64: 1, 16, 16>}, {transform_indices = @transform_2, window_bounds = array<i64: 1, 1, 256>}]} {
    %0 = arith.index_cast %arg0 : i32 to index
    %c0 = arith.constant 0 : index
    %1 = memref.load %arg2[%0, %c0] : memref<2x6xf32, #tpu.memory_space<smem>>
    %2 = arith.index_cast %arg0 : i32 to index
    %c1 = arith.constant 1 : index
    %3 = memref.load %arg2[%2, %c1] : memref<2x6xf32, #tpu.memory_space<smem>>
    %4 = arith.index_cast %arg0 : i32 to index
    %c2 = arith.constant 2 : index
    %5 = memref.load %arg2[%4, %c2] : memref<2x6xf32, #tpu.memory_space<smem>>
    %6 = arith.index_cast %arg0 : i32 to index
    %c3 = arith.constant 3 : index
    %7 = memref.load %arg2[%6, %c3] : memref<2x6xf32, #tpu.memory_space<smem>>
    %8 = arith.index_cast %arg0 : i32 to index
    %c4 = arith.constant 4 : index
    %9 = memref.load %arg2[%8, %c4] : memref<2x6xf32, #tpu.memory_space<smem>>
    %10 = arith.index_cast %arg0 : i32 to index
    %c5 = arith.constant 5 : index
    %11 = memref.load %arg2[%10, %c5] : memref<2x6xf32, #tpu.memory_space<smem>>
    %c256_i32 = arith.constant 256 : i32
    %12 = arith.muli %arg1, %c256_i32 : i32
    %13 = tpu.iota {dimensions = array<i32: 1>} : vector<1x256xi32>
    %14 = vector.broadcast %12 : i32 to vector<1x256xi32>
    %15 = arith.addi %14, %13 : vector<1x256xi32>
    %16 = arith.sitofp %15 : vector<1x256xi32> to vector<1x256xf32>
    %cst = arith.constant 1.600000e+01 : f32
    %17 = vector.broadcast %cst : f32 to vector<1x256xf32>
    %18 = arith.divf %16, %17 : vector<1x256xf32>
    %19 = math.floor %18 : vector<1x256xf32>
    %cst_0 = arith.constant 1.600000e+01 : f32
    %20 = vector.broadcast %cst_0 : f32 to vector<1x256xf32>
    %21 = arith.mulf %19, %20 : vector<1x256xf32>
    %22 = arith.subf %16, %21 : vector<1x256xf32>
    %cst_1 = arith.constant 1.600000e+01 : f32
    %23 = vector.broadcast %cst_1 : f32 to vector<1x256xf32>
    %24 = arith.cmpf oge, %22, %23 : vector<1x256xf32>
    %cst_2 = arith.constant 1.000000e+00 : f32
    %25 = vector.broadcast %cst_2 : f32 to vector<1x256xf32>
    %26 = arith.addf %19, %25 : vector<1x256xf32>
    %cst_3 = arith.constant 0.000000e+00 : f32
    %27 = vector.broadcast %cst_3 : f32 to vector<1x256xf32>
    %28 = arith.cmpf olt, %22, %27 : vector<1x256xf32>
    %cst_4 = arith.constant 1.000000e+00 : f32
    %29 = vector.broadcast %cst_4 : f32 to vector<1x256xf32>
    %30 = arith.subf %19, %29 : vector<1x256xf32>
    %31 = arith.select %28, %30, %19 : vector<1x256xi1>, vector<1x256xf32>
    %32 = arith.select %24, %26, %31 : vector<1x256xi1>, vector<1x256xf32>
    %cst_5 = arith.constant 1.600000e+01 : f32
    %33 = vector.broadcast %cst_5 : f32 to vector<1x256xf32>
    %34 = arith.cmpf oge, %22, %33 : vector<1x256xf32>
    %cst_6 = arith.constant 1.600000e+01 : f32
    %35 = vector.broadcast %cst_6 : f32 to vector<1x256xf32>
    %36 = arith.subf %22, %35 : vector<1x256xf32>
    %cst_7 = arith.constant 0.000000e+00 : f32
    %37 = vector.broadcast %cst_7 : f32 to vector<1x256xf32>
    %38 = arith.cmpf olt, %22, %37 : vector<1x256xf32>
    %cst_8 = arith.constant 1.600000e+01 : f32
    %39 = vector.broadcast %cst_8 : f32 to vector<1x256xf32>
    %40 = arith.addf %22, %39 : vector<1x256xf32>
    %41 = arith.select %38, %40, %22 : vector<1x256xi1>, vector<1x256xf32>
    %42 = arith.select %34, %36, %41 : vector<1x256xi1>, vector<1x256xf32>
    %cst_9 = arith.constant 2.000000e+00 : f32
    %43 = vector.broadcast %cst_9 : f32 to vector<1x256xf32>
    %44 = arith.mulf %43, %42 : vector<1x256xf32>
    %cst_10 = arith.constant 1.000000e+00 : f32
    %45 = vector.broadcast %cst_10 : f32 to vector<1x256xf32>
    %46 = arith.addf %44, %45 : vector<1x256xf32>
    %cst_11 = arith.constant 1.600000e+01 : f32
    %47 = vector.broadcast %cst_11 : f32 to vector<1x256xf32>
    %48 = arith.divf %46, %47 : vector<1x256xf32>
    %cst_12 = arith.constant 1.000000e+00 : f32
    %49 = vector.broadcast %cst_12 : f32 to vector<1x256xf32>
    %50 = arith.subf %48, %49 : vector<1x256xf32>
    %cst_13 = arith.constant 2.000000e+00 : f32
    %51 = vector.broadcast %cst_13 : f32 to vector<1x256xf32>
    %52 = arith.mulf %51, %32 : vector<1x256xf32>
    %cst_14 = arith.constant 1.000000e+00 : f32
    %53 = vector.broadcast %cst_14 : f32 to vector<1x256xf32>
    %54 = arith.addf %52, %53 : vector<1x256xf32>
    %cst_15 = arith.constant 1.600000e+01 : f32
    %55 = vector.broadcast %cst_15 : f32 to vector<1x256xf32>
    %56 = arith.divf %54, %55 : vector<1x256xf32>
    %cst_16 = arith.constant 1.000000e+00 : f32
    %57 = vector.broadcast %cst_16 : f32 to vector<1x256xf32>
    %58 = arith.subf %56, %57 : vector<1x256xf32>
    %59 = vector.broadcast %1 : f32 to vector<1x256xf32>
    %60 = arith.mulf %59, %50 : vector<1x256xf32>
    %61 = vector.broadcast %3 : f32 to vector<1x256xf32>
    %62 = arith.mulf %61, %58 : vector<1x256xf32>
    %63 = arith.addf %60, %62 : vector<1x256xf32>
    %64 = vector.broadcast %5 : f32 to vector<1x256xf32>
    %65 = arith.addf %63, %64 : vector<1x256xf32>
    %66 = vector.broadcast %7 : f32 to vector<1x256xf32>
    %67 = arith.mulf %66, %50 : vector<1x256xf32>
    %68 = vector.broadcast %9 : f32 to vector<1x256xf32>
    %69 = arith.mulf %68, %58 : vector<1x256xf32>
    %70 = arith.addf %67, %69 : vector<1x256xf32>
    %71 = vector.broadcast %11 : f32 to vector<1x256xf32>
    %72 = arith.addf %70, %71 : vector<1x256xf32>
    %cst_17 = arith.constant 1.000000e+00 : f32
    %73 = vector.broadcast %cst_17 : f32 to vector<1x256xf32>
    %74 = arith.addf %65, %73 : vector<1x256xf32>
    %cst_18 = arith.constant 1.600000e+01 : f32
    %75 = vector.broadcast %cst_18 : f32 to vector<1x256xf32>
    %76 = arith.mulf %74, %75 : vector<1x256xf32>
    %cst_19 = arith.constant 1.000000e+00 : f32
    %77 = vector.broadcast %cst_19 : f32 to vector<1x256xf32>
    %78 = arith.subf %76, %77 : vector<1x256xf32>
    %cst_20 = arith.constant 5.000000e-01 : f32
    %79 = vector.broadcast %cst_20 : f32 to vector<1x256xf32>
    %80 = arith.mulf %78, %79 : vector<1x256xf32>
    %cst_21 = arith.constant 1.000000e+00 : f32
    %81 = vector.broadcast %cst_21 : f32 to vector<1x256xf32>
    %82 = arith.addf %72, %81 : vector<1x256xf32>
    %cst_22 = arith.constant 1.600000e+01 : f32
    %83 = vector.broadcast %cst_22 : f32 to vector<1x256xf32>
    %84 = arith.mulf %82, %83 : vector<1x256xf32>
    %cst_23 = arith.constant 1.000000e+00 : f32
    %85 = vector.broadcast %cst_23 : f32 to vector<1x256xf32>
    %86 = arith.subf %84, %85 : vector<1x256xf32>
    %cst_24 = arith.constant 5.000000e-01 : f32
    %87 = vector.broadcast %cst_24 : f32 to vector<1x256xf32>
    %88 = arith.mulf %86, %87 : vector<1x256xf32>
    %89 = math.floor %80 : vector<1x256xf32>
    %90 = math.floor %88 : vector<1x256xf32>
    %91 = arith.subf %80, %89 : vector<1x256xf32>
    %92 = arith.subf %88, %90 : vector<1x256xf32>
    %93 = tpu.iota {dimensions = array<i32: 0>} : vector<16x256xi32>
    %94 = tpu.iota {dimensions = array<i32: 0>} : vector<16x256xi32>
    %cst_25 = arith.constant 1.000000e+00 : f32
    %95 = vector.broadcast %cst_25 : f32 to vector<1x256xf32>
    %96 = arith.subf %95, %92 : vector<1x256xf32>
    %cst_26 = arith.constant 0.000000e+00 : f32
    %97 = vector.broadcast %cst_26 : f32 to vector<1x256xf32>
    %98 = arith.cmpf oge, %90, %97 : vector<1x256xf32>
    %cst_27 = arith.constant 1.500000e+01 : f32
    %99 = vector.broadcast %cst_27 : f32 to vector<1x256xf32>
    %100 = arith.cmpf ole, %90, %99 : vector<1x256xf32>
    %101 = arith.andi %98, %100 : vector<1x256xi1>
    %cst_28 = arith.constant 0.000000e+00 : f32
    %102 = vector.broadcast %cst_28 : f32 to vector<1x256xf32>
    %103 = arith.select %101, %96, %102 : vector<1x256xi1>, vector<1x256xf32>
    %cst_29 = arith.constant 0.000000e+00 : f32
    %cst_30 = arith.constant 1.500000e+01 : f32
    %104 = vector.broadcast %cst_29 : f32 to vector<1x256xf32>
    %105 = arith.maximumf %104, %90 : vector<1x256xf32>
    %106 = vector.broadcast %cst_30 : f32 to vector<1x256xf32>
    %107 = arith.minimumf %106, %105 : vector<1x256xf32>
    %108 = arith.fptosi %107 : vector<1x256xf32> to vector<1x256xi32>
    %109 = vector.broadcast %108 : vector<1x256xi32> to vector<16x256xi32>
    %110 = arith.cmpi eq, %93, %109 : vector<16x256xi32>
    %cst_31 = arith.constant 0.000000e+00 : f32
    %111 = vector.shape_cast %103 : vector<1x256xf32> to vector<1x256xf32>
    %112 = vector.broadcast %111 : vector<1x256xf32> to vector<16x256xf32>
    %113 = vector.broadcast %cst_31 : f32 to vector<16x256xf32>
    %114 = arith.select %110, %112, %113 : vector<16x256xi1>, vector<16x256xf32>
    %cst_32 = arith.constant 1.000000e+00 : f32
    %115 = vector.broadcast %cst_32 : f32 to vector<1x256xf32>
    %116 = arith.addf %90, %115 : vector<1x256xf32>
    %cst_33 = arith.constant 0.000000e+00 : f32
    %117 = vector.broadcast %cst_33 : f32 to vector<1x256xf32>
    %118 = arith.cmpf oge, %116, %117 : vector<1x256xf32>
    %cst_34 = arith.constant 1.500000e+01 : f32
    %119 = vector.broadcast %cst_34 : f32 to vector<1x256xf32>
    %120 = arith.cmpf ole, %116, %119 : vector<1x256xf32>
    %121 = arith.andi %118, %120 : vector<1x256xi1>
    %cst_35 = arith.constant 0.000000e+00 : f32
    %122 = vector.broadcast %cst_35 : f32 to vector<1x256xf32>
    %123 = arith.select %121, %92, %122 : vector<1x256xi1>, vector<1x256xf32>
    %cst_36 = arith.constant 0.000000e+00 : f32
    %cst_37 = arith.constant 1.500000e+01 : f32
    %124 = vector.broadcast %cst_36 : f32 to vector<1x256xf32>
    %125 = arith.maximumf %124, %116 : vector<1x256xf32>
    %126 = vector.broadcast %cst_37 : f32 to vector<1x256xf32>
    %127 = arith.minimumf %126, %125 : vector<1x256xf32>
    %128 = arith.fptosi %127 : vector<1x256xf32> to vector<1x256xi32>
    %129 = vector.broadcast %128 : vector<1x256xi32> to vector<16x256xi32>
    %130 = arith.cmpi eq, %93, %129 : vector<16x256xi32>
    %cst_38 = arith.constant 0.000000e+00 : f32
    %131 = vector.shape_cast %123 : vector<1x256xf32> to vector<1x256xf32>
    %132 = vector.broadcast %131 : vector<1x256xf32> to vector<16x256xf32>
    %133 = vector.broadcast %cst_38 : f32 to vector<16x256xf32>
    %134 = arith.select %130, %132, %133 : vector<16x256xi1>, vector<16x256xf32>
    %135 = arith.addf %114, %134 : vector<16x256xf32>
    %cst_39 = arith.constant 1.000000e+00 : f32
    %136 = vector.broadcast %cst_39 : f32 to vector<1x256xf32>
    %137 = arith.subf %136, %91 : vector<1x256xf32>
    %cst_40 = arith.constant 0.000000e+00 : f32
    %138 = vector.broadcast %cst_40 : f32 to vector<1x256xf32>
    %139 = arith.cmpf oge, %89, %138 : vector<1x256xf32>
    %cst_41 = arith.constant 1.500000e+01 : f32
    %140 = vector.broadcast %cst_41 : f32 to vector<1x256xf32>
    %141 = arith.cmpf ole, %89, %140 : vector<1x256xf32>
    %142 = arith.andi %139, %141 : vector<1x256xi1>
    %cst_42 = arith.constant 0.000000e+00 : f32
    %143 = vector.broadcast %cst_42 : f32 to vector<1x256xf32>
    %144 = arith.select %142, %137, %143 : vector<1x256xi1>, vector<1x256xf32>
    %cst_43 = arith.constant 0.000000e+00 : f32
    %cst_44 = arith.constant 1.500000e+01 : f32
    %145 = vector.broadcast %cst_43 : f32 to vector<1x256xf32>
    %146 = arith.maximumf %145, %89 : vector<1x256xf32>
    %147 = vector.broadcast %cst_44 : f32 to vector<1x256xf32>
    %148 = arith.minimumf %147, %146 : vector<1x256xf32>
    %149 = arith.fptosi %148 : vector<1x256xf32> to vector<1x256xi32>
    %150 = vector.broadcast %149 : vector<1x256xi32> to vector<16x256xi32>
    %151 = arith.cmpi eq, %94, %150 : vector<16x256xi32>
    %cst_45 = arith.constant 0.000000e+00 : f32
    %152 = vector.shape_cast %144 : vector<1x256xf32> to vector<1x256xf32>
    %153 = vector.broadcast %152 : vector<1x256xf32> to vector<16x256xf32>
    %154 = vector.broadcast %cst_45 : f32 to vector<16x256xf32>
    %155 = arith.select %151, %153, %154 : vector<16x256xi1>, vector<16x256xf32>
    %cst_46 = arith.constant 1.000000e+00 : f32
    %156 = vector.broadcast %cst_46 : f32 to vector<1x256xf32>
    %157 = arith.addf %89, %156 : vector<1x256xf32>
    %cst_47 = arith.constant 0.000000e+00 : f32
    %158 = vector.broadcast %cst_47 : f32 to vector<1x256xf32>
    %159 = arith.cmpf oge, %157, %158 : vector<1x256xf32>
    %cst_48 = arith.constant 1.500000e+01 : f32
    %160 = vector.broadcast %cst_48 : f32 to vector<1x256xf32>
    %161 = arith.cmpf ole, %157, %160 : vector<1x256xf32>
    %162 = arith.andi %159, %161 : vector<1x256xi1>
    %cst_49 = arith.constant 0.000000e+00 : f32
    %163 = vector.broadcast %cst_49 : f32 to vector<1x256xf32>
    %164 = arith.select %162, %91, %163 : vector<1x256xi1>, vector<1x256xf32>
    %cst_50 = arith.constant 0.000000e+00 : f32
    %cst_51 = arith.constant 1.500000e+01 : f32
    %165 = vector.broadcast %cst_50 : f32 to vector<1x256xf32>
    %166 = arith.maximumf %165, %157 : vector<1x256xf32>
    %167 = vector.broadcast %cst_51 : f32 to vector<1x256xf32>
    %168 = arith.minimumf %167, %166 : vector<1x256xf32>
    %169 = arith.fptosi %168 : vector<1x256xf32> to vector<1x256xi32>
    %170 = vector.broadcast %169 : vector<1x256xi32> to vector<16x256xi32>
    %171 = arith.cmpi eq, %94, %170 : vector<16x256xi32>
    %cst_52 = arith.constant 0.000000e+00 : f32
    %172 = vector.shape_cast %164 : vector<1x256xf32> to vector<1x256xf32>
    %173 = vector.broadcast %172 : vector<1x256xf32> to vector<16x256xf32>
    %174 = vector.broadcast %cst_52 : f32 to vector<16x256xf32>
    %175 = arith.select %171, %173, %174 : vector<16x256xi1>, vector<16x256xf32>
    %176 = arith.addf %155, %175 : vector<16x256xf32>
    %c0_53 = arith.constant 0 : index
    %c0_54 = arith.constant 0 : index
    %c0_55 = arith.constant 0 : index
    %177 = vector.load %arg3[%c0_53, %c0_54, %c0_55] : memref<1x16x16xf32, #tpu.memory_space<vmem>>, vector<1x16x16xf32>
    %178 = vector.shape_cast %177 : vector<1x16x16xf32> to vector<16x16xf32>
    %cst_56 = arith.constant dense<0.000000e+00> : vector<16x256xf32>
    %179 = tpu.matmul %178, %135, %cst_56 {dimension_numbers = #tpu.dot_dimension_numbers<[1], [0], [0], [1], [0, 0, 1, 1], [], []>} : vector<16x16xf32>, vector<16x256xf32>, vector<16x256xf32> -> vector<16x256xf32>
    %180 = arith.mulf %179, %176 : vector<16x256xf32>
    %cst_57 = arith.constant dense<0.000000e+00> : vector<256xf32>
    %181 = vector.multi_reduction <add>, %180, %cst_57 [0] : vector<16x256xf32> to vector<256xf32>
    %182 = vector.shape_cast %181 : vector<256xf32> to vector<1x256xf32>
    %183 = vector.shape_cast %182 : vector<1x256xf32> to vector<1x1x256xf32>
    %c0_58 = arith.constant 0 : index
    %c0_59 = arith.constant 0 : index
    %c0_60 = arith.constant 0 : index
    %184 = vector.load %arg4[%c0_58, %c0_59, %c0_60] : memref<1x1x256xf32, #tpu.memory_space<vmem>>, vector<1x1x256xf32>
    tpu.vector_store %arg4[%c0_58, %c0_59, %c0_60], %183 {strides = array<i32>} : memref<1x1x256xf32, #tpu.memory_space<vmem>>, vector<1x1x256xf32>,
    return
  }
  func.func @transform_0(%arg0: i32, %arg1: i32) -> (i32, i32) {
    %c0_i32 = arith.constant 0 : i32
    %c0_i32_0 = arith.constant 0 : i32
    %c0_i32_1 = arith.constant 0 : i32
    return %c0_i32, %c0_i32_0 : i32, i32
  }
  func.func @transform_1(%arg0: i32, %arg1: i32) -> (i32, i32, i32) {
    %c0_i32 = arith.constant 0 : i32
    %c0_i32_0 = arith.constant 0 : i32
    %c0_i32_1 = arith.constant 0 : i32
    return %arg0, %c0_i32, %c0_i32_0 : i32, i32, i32
  }
  func.func @transform_2(%arg0: i32, %arg1: i32) -> (i32, i32, i32) {
    %c0_i32 = arith.constant 0 : i32
    %c0_i32_0 = arith.constant 0 : i32
    return %arg0, %c0_i32, %arg1 : i32, i32, i32
  }
}

</mosaic_0001>

<bundles_post_ra>
// kernel: airnet_forward.7
= control target key start
LH: loop header
LB: loop body
LE: loop exit
PB: predicated region body
PF: predicated region fallthrough
CT: control target
= control target key end

     0   :  { %vm70_vm0 = vcmask 1043456   ;;  %vm71_vm1 = vcmask 1044480   ;;  %v224_v2 = vmov 65535   ;;  %v225_v12 = vmov 0   ;;  %s288_s2 = inlined_call_operand.vmem [shape: bf16[9,256], index: 2, kind: input, shape index: {}]   ;;  %s289_s1 = inlined_call_operand.vmem [shape: f32[32,1], index: 1, kind: input, shape index: {}]   ;;  %s290_s0 = inlined_call_operand.vmem [shape: bf16[32,9], index: 0, kind: input, shape index: {}]   ;;  %s291_s3 = inlined_call_operand.vmem [shape: bf16[32,256], index: 3, kind: output, shape index: {}]  }
   0x1   :  { %v180_v0 = vld [vmem:[%s288_s2] sm:$0xf]  ;;  %v201_v1 = vld [vmem:[%s288_s2 + $0x4] sm:$0x10]  ;;  %v72_v3 = vsel %vm70_vm0, 4294967295, %v224_v2  ;;  %v23_v9 = vld [vmem:[%s289_s1 + $0x10] sm:$0xff]  ;;  %207 = vset.pattern.permute.xlu1 %v225_v12  ;;  %206 = vset.pattern.permute.xlu0 %v225_v12 }
   0x2   :  { %v181_v4 = vor.u32 %v201_v1, %v180_v0  ;;  %v73_v5 = vsel %vm71_vm1, %v72_v3, 0  ;;  %v200_v6 = vld [vmem:[%s288_s2 + $0x4] sm:$0xf]  ;;  %v182_v7 = vld [vmem:[%s288_s2 + $0x8] sm:$0x10]  ;;  %37 = vperm.xlu1 %207, %v23_v9   ;;  %vm63_vm2 = vcmask 72704  }
   0x3   :  { %v185_v8 = vor.u32 %v200_v6, %v182_v7  ;;  %v21_v10 = vld [vmem:[%s289_s1] sm:$0xff]  ;;  %v199_v15 = vld [vmem:[%s290_s0 + $0x8] sm:$0xff]  ;;  %v24_v16 = vld [vmem:[%s289_s1 + $0x18] sm:$0xff] }
   0x4   :  { %v75_v11 = vand.u32 %v181_v4, %v73_v5  ;;  %v198_v14 = vld [vmem:[%s290_s0] sm:$0xff]  ;;  %27 = vperm.xlu0 %206, %v21_v10   ;;  %v22_v17 = vld [vmem:[%s289_s1 + $0x8] sm:$0xff] }
   0x5   :  { %v78_v13 = vand.u32 %v185_v8, %v73_v5 }
   0x6   :  { %87 = vmatpush.bf16.msra.mxu0 %v75_v11  ;;  %202 = vmatpush.bf16.msra.mxu2 %v75_v11 }
   0x7   :  { %106 = vmatpush.bf16.msra.mxu1 %v78_v13  ;;  %203 = vmatpush.bf16.msra.mxu3 %v78_v13 }
   0x9   :  { %186 = vmatmul.msk.bf16.vlgmr.msra.gmra.mxu0 %vm63_vm2, %v198_v14  ;;  %187 = vmatmul.msk.bf16.vlgmr.msra.gmra.mxu2 %vm63_vm2, %v199_v15 }
   0xa   :  { %188 = vmatmul.msk.bf16.vlgmr.msra.gmra.mxu1 %vm63_vm2, %v198_v14  ;;  %189 = vmatmul.msk.bf16.vlgmr.msra.gmra.mxu3 %vm63_vm2, %v199_v15 }
   0xb   :  { %42 = vperm.xlu1 %207, %v24_v16  }
   0xc   :  { %32 = vperm.xlu0 %206, %v22_v17  }
  0x74   :  { %v38_v24 = vpop.permute.xlu1 %37 }
  0x76   :  { %v28_v18 = vpop.permute.xlu0 %27 }
  0x7d   :  { %v43_v44 = vpop.permute.xlu1 %42 }
  0x7e   :  { %v33_v29 = vpop.permute.xlu0 %32 }
  0x86   :  { %v89_v19 = vpop.f32.mrf.mxu0 }
  0x87   :  { %v90_v20 = vadd.f32 %v89_v19, %v28_v18  ;;  %v108_v21 = vpop.f32.mrf.mxu1 }
  0x88   :  { %v109_v22 = vadd.f32 %v108_v21, %v28_v18 }
  0x89   :  { %v126_v23 = vmul.f32 1.442695, %v90_v20  ;;  %vm118_vm3 = vcmp.gt.f32.partialorder %v90_v20, 0.0 }
  0x8a   :  { %v128_v25 = vmul.f32 1.442695, %v109_v22  ;;  %vm119_vm4 = vcmp.gt.f32.partialorder %v109_v22, 0.0 }
  0x8b   :  { %208 = vpow2.f32 %v126_v23 }
  0x8c   :  { %210 = vpow2.f32 %v128_v25  ;;  %v94_v26 = vpop.f32.mrf.mxu2 }
  0x8d   :  { %v95_v27 = vadd.f32 %v94_v26, %v38_v24  ;;  %v113_v28 = vpop.f32.mrf.mxu3 }
  0x8e   :  { %v114_v30 = vadd.f32 %v113_v28, %v38_v24  ;;  %v91_v31 = vpop.f32.mrf.mxu0 }
  0x8f   :  { %v134_v32 = vmul.f32 1.442695, %v95_v27  ;;  %v92_v33 = vadd.f32 %v91_v31, %v33_v29  ;;  %v110_v34 = vpop.f32.mrf.mxu1  ;;  %vm122_vm5 = vcmp.gt.f32.partialorder %v95_v27, 0.0 }
  0x90   :  { %v136_v35 = vmul.f32 1.442695, %v114_v30  ;;  %v111_v36 = vadd.f32 %v110_v34, %v33_v29  ;;  %vm123_vm6 = vcmp.gt.f32.partialorder %v114_v30, 0.0 }
  0x91   :  { %v209_v37 = vpop.eup %208  ;;  %212 = vpow2.f32 %v134_v32  ;;  %v130_v38 = vmul.f32 1.442695, %v92_v33  ;;  %vm120_vm7 = vcmp.gt.f32.partialorder %v92_v33, 0.0 }
  0x92   :  { %v211_v39 = vpop.eup %210  ;;  %v190_v40 = vadd.f32 -1.0, %v209_v37  ;;  %214 = vpow2.f32 %v136_v35  ;;  %v132_v41 = vmul.f32 1.442695, %v111_v36  ;;  %vm121_vm8 = vcmp.gt.f32.partialorder %v111_v36, 0.0 }
  0x93   :  { %v191_v42 = vadd.f32 -1.0, %v211_v39  ;;  %216 = vpow2.f32 %v130_v38 }
  0x94   :  { %v150_v43 = vsel %vm118_vm3, %v90_v20, %v190_v40  ;;  %218 = vpow2.f32 %v132_v41  ;;  %v96_v45 = vpop.f32.mrf.mxu2 }
  0x95   :  { %v151_v46 = vsel %vm119_vm4, %v109_v22, %v191_v42  ;;  %v97_v47 = vadd.f32 %v96_v45, %v43_v44  ;;  %v115_v48 = vpop.f32.mrf.mxu3 }
  0x96   :  { %v158_v49 = vpack.c.bf16 %v151_v46, %v150_v43  ;;  %v116_v50 = vadd.f32 %v115_v48, %v43_v44 }
  0x97   :  { %v213_v51 = vpop.eup %212  ;;  %v138_v52 = vmul.f32 1.442695, %v97_v47  ;;  %vm124_vm9 = vcmp.gt.f32.partialorder %v97_v47, 0.0 }
  0x98   :  { %v215_v53 = vpop.eup %214  ;;  %162 = vst [vmem:[%s291_s3] sm:$0xff] %v158_v49  ;;  %v194_v54 = vadd.f32 -1.0, %v213_v51  ;;  %v140_v55 = vmul.f32 1.442695, %v116_v50  ;;  %vm125_vm10 = vcmp.gt.f32.partialorder %v116_v50, 0.0 }
  0x99   :  { %v217_v56 = vpop.eup %216  ;;  %v195_v57 = vadd.f32 -1.0, %v215_v53  ;;  %220 = vpow2.f32 %v138_v52 }
  0x9a   :  { %v219_v58 = vpop.eup %218  ;;  %v154_v59 = vsel %vm122_vm5, %v95_v27, %v194_v54  ;;  %v192_v60 = vadd.f32 -1.0, %v217_v56  ;;  %222 = vpow2.f32 %v140_v55 }
  0x9b   :  { %v155_v61 = vsel %vm123_vm6, %v114_v30, %v195_v57  ;;  %v193_v62 = vadd.f32 -1.0, %v219_v58 }
  0x9c   :  { %v160_v63 = vpack.c.bf16 %v155_v61, %v154_v59  ;;  %v152_v0 = vsel %vm120_vm7, %v92_v33, %v192_v60 }
  0x9d   :  { %v153_v1 = vsel %vm121_vm8, %v111_v36, %v193_v62 }
  0x9e   :  { %164 = vst [vmem:[%s291_s3 + $0x10] sm:$0xff] %v160_v63  ;;  %v159_v2 = vpack.c.bf16 %v153_v1, %v152_v0 }
  0x9f   :  { %v221_v3 = vpop.eup %220 }
  0xa0   :  { %v223_v4 = vpop.eup %222  ;;  %163 = vst [vmem:[%s291_s3 + $0x8] sm:$0xff] %v159_v2  ;;  %v196_v5 = vadd.f32 -1.0, %v221_v3 }
  0xa1   :  { %v197_v6 = vadd.f32 -1.0, %v223_v4 }
  0xa2   :  { %v156_v7 = vsel %vm124_vm9, %v97_v47, %v196_v5 }
  0xa3   :  { %v157_v8 = vsel %vm125_vm10, %v116_v50, %v197_v6 }
  0xa4   :  { %v161_v9 = vpack.c.bf16 %v157_v8, %v156_v7 }
  0xa6   :  { %165 = vst [vmem:[%s291_s3 + $0x18] sm:$0xff] %v161_v9 }

// kernel: airnet_forward.8
= control target key start
LH: loop header
LB: loop body
LE: loop exit
PB: predicated region body
PF: predicated region fallthrough
CT: control target
= control target key end

     0   :  { %v463_v5 = vmov 0   ;;  %vm221_vm0 = vcmask 261120   ;;  %vm309_vm2 = vcmask 519168   ;;  %s604_s2 = inlined_call_operand.vmem [shape: bf16[288,64], index: 2, kind: input, shape index: {}]   ;;  %s605_s0 = inlined_call_operand.vmem [shape: bf16[32,288], index: 0, kind: input, shape index: {}]   ;;  %s606_s1 = inlined_call_operand.vmem [shape: f32[32,1], index: 1, kind: input, shape index: {}]   ;;  %s607_s3 = inlined_call_operand.vmem [shape: bf16[32,64], index: 3, kind: output, shape index: {}]  }
   0x1   :  { %v433_v0 = vld [vmem:[%s604_s2 + $0x38] sm:$0xff]  ;;  %v432_v2 = vld [vmem:[%s604_s2 + $0x30] sm:$0xff]  ;;  %v443_v3 = vld [vmem:[%s604_s2 + $0x88] sm:$0xff]  ;;  %453 = vset.pattern.permute.xlu0 %v463_v5  ;;  %454 = vset.pattern.permute.xlu1 %v463_v5 }
   0x2   :  { %v441_v1 = vld [vmem:[%s604_s2 + $0x78] sm:$0xff]  ;;  %228 = vmatpush.bf16.msra.mxu0 %v433_v0  ;;  %444 = vmatpush.bf16.msra.mxu3 %v433_v0  ;;  %v440_v4 = vld [vmem:[%s604_s2 + $0x70] sm:$0xff]  ;;  %v442_v6 = vld [vmem:[%s604_s2 + $0x80] sm:$0xff] }
   0x3   :  { %247 = vmatpush.bf16.msra.mxu1 %v441_v1  ;;  %272 = vmatpush.bf16.msra.mxu2 %v443_v3  ;;  %v328_v7 = vld [vmem:[%s605_s0 + $0x8] sm:$0xf]  ;;  %v422_v8 = vld [vmem:[%s605_s0 + $0x10] sm:$0xf0]  ;;  %v59_v12 = vld [vmem:[%s606_s1] sm:$0xff] }
   0x4   :  { %v431_v9 = vld [vmem:[%s604_s2 + $0x28] sm:$0xff]  ;;  %v329_v11 = vor.u32 %v422_v8, %v328_v7  ;;  %v430_v13 = vld [vmem:[%s604_s2 + $0x20] sm:$0xff]  ;;  %65 = vperm.xlu0 %453, %v59_v12   ;;  %v429_v15 = vld [vmem:[%s604_s2 + $0x18] sm:$0xff] }
   0x5   :  { %v439_v10 = vld [vmem:[%s604_s2 + $0x68] sm:$0xff]  ;;  %v438_v14 = vld [vmem:[%s604_s2 + $0x60] sm:$0xff]  ;;  %v437_v16 = vld [vmem:[%s604_s2 + $0x58] sm:$0xff] }
   0x6   :  { %229 = vmatpush.bf16.msra.mxu0 %v432_v2  ;;  %445 = vmatpush.bf16.msra.mxu3 %v432_v2  ;;  %v428_v17 = vld [vmem:[%s604_s2 + $0x10] sm:$0xff]  ;;  %v60_v19 = vld [vmem:[%s606_s1 + $0x8] sm:$0xff]  ;;  %v340_v21 = vld [vmem:[%s605_s0 + $0x20] sm:$0xf] }
   0x7   :  { %248 = vmatpush.bf16.msra.mxu1 %v440_v4  ;;  %273 = vmatpush.bf16.msra.mxu2 %v442_v6  ;;  %v61_v18 = vld [vmem:[%s606_s1 + $0x10] sm:$0xff]  ;;  %v425_v22 = vld [vmem:[%s605_s0 + $0x28] sm:$0xf0]  ;;  %v426_v26 = vld [vmem:[%s604_s2] sm:$0xff] }
   0x8   :  { %v436_v20 = vld [vmem:[%s604_s2 + $0x50] sm:$0xff]  ;;  %75 = vperm.xlu1 %454, %v61_v18   ;;  %v427_v23 = vld [vmem:[%s604_s2 + $0x8] sm:$0xff]  ;;  %v341_v25 = vor.u32 %v425_v22, %v340_v21  ;;  %v320_v27 = vld [vmem:[%s605_s0] sm:$0xf] }
   0x9   :  { %v435_v24 = vld [vmem:[%s604_s2 + $0x48] sm:$0xff]  ;;  %v62_v28 = vld [vmem:[%s606_s1 + $0x18] sm:$0xff]  ;;  %v424_v31 = vld [vmem:[%s605_s0 + $0x20] sm:$0xf0] }
   0xa   :  { %230 = vmatpush.bf16.msra.mxu0 %v431_v9  ;;  %446 = vmatpush.bf16.msra.mxu3 %v431_v9  ;;  %v421_v29 = vld [vmem:[%s605_s0 + $0x8] sm:$0xf0]  ;;  %v332_v30 = vld [vmem:[%s605_s0 + $0x18] sm:$0xf]  ;;  %v434_v32 = vld [vmem:[%s604_s2 + $0x40] sm:$0xff] }
   0xb   :  { %249 = vmatpush.bf16.msra.mxu1 %v439_v10  ;;  %414 = vmatmul.msk.bf16.vlgmr.msra.gmra.mxu2 %vm221_vm0, %v329_v11  ;;  %v420_v33 = vld [vmem:[%s605_s0 + $0x4] sm:$0xf]  ;;  %v322_v34 = vld [vmem:[%s605_s0 + $0xc] sm:$0xf0]  ;;  %v321_v35 = vor.u32 %v421_v29, %v320_v27  ;;  %v333_v36 = vor.u32 %v424_v31, %v332_v30  ;;  %v423_v38 = vld [vmem:[%s605_s0 + $0x1c] sm:$0xf] }
   0xc   :  { %70 = vperm.xlu0 %453, %v60_v19   ;;  %v325_v37 = vor.u32 %v420_v33, %v322_v34  ;;  %v334_v39 = vld [vmem:[%s605_s0 + $0x24] sm:$0xf0] }
   0xd   :  { %v337_v40 = vor.u32 %v423_v38, %v334_v39 }
   0xe   :  { %231 = vmatpush.bf16.msra.mxu0 %v430_v13  ;;  %447 = vmatpush.bf16.msra.mxu3 %v430_v13 }
   0xf   :  { %250 = vmatpush.bf16.msra.mxu1 %v438_v14 }
  0x10   :  { %80 = vperm.xlu1 %454, %v62_v28  }
  0x12   :  { %232 = vmatpush.bf16.msra.mxu0 %v429_v15  ;;  %448 = vmatpush.bf16.msra.mxu3 %v429_v15 }
  0x13   :  { %251 = vmatpush.bf16.msra.mxu1 %v437_v16 }
  0x16   :  { %233 = vmatpush.bf16.msra.mxu0 %v428_v17  ;;  %449 = vmatpush.bf16.msra.mxu3 %v428_v17 }
  0x17   :  { %252 = vmatpush.bf16.msra.mxu1 %v436_v20 }
  0x1a   :  { %234 = vmatpush.bf16.msra.mxu0 %v427_v23  ;;  %450 = vmatpush.bf16.msra.mxu3 %v427_v23 }
  0x1b   :  { %253 = vmatpush.bf16.msra.mxu1 %v435_v24  ;;  %415 = vmatmul.msk.bf16.gmra.mxu2 %vm221_vm0, %v341_v25 }
  0x1e   :  { %235 = vmatpush.bf16.msra.mxu0 %v426_v26  ;;  %451 = vmatpush.bf16.msra.mxu3 %v426_v26 }
  0x1f   :  { %254 = vmatpush.bf16.msra.mxu1 %v434_v32 }
  0x21   :  { %236 = vmatmul.bf16.vlgmr.msra.gmra.mxu0 %v321_v35  ;;  %241 = vmatmul.bf16.vlgmr.msra.gmra.mxu3 %v333_v36 }
  0x22   :  { %255 = vmatmul.bf16.vlgmr.msra.gmra.mxu1 %v325_v37 }
  0x32   :  { %260 = vmatmul.bf16.gmra.mxu1 %v337_v40 }
  0x76   :  { %v66_v41 = vpop.permute.xlu0 %65 }
  0x7a   :  { %v76_v54 = vpop.permute.xlu1 %75 }
  0x7e   :  { %v71_v48 = vpop.permute.xlu0 %70 }
  0x82   :  { %v81_v4 = vpop.permute.xlu1 %80 }
  0x8e   :  { %v275_v42 = vpop.f32.mrf.mxu2 }
  0x96   :  { %v277_v50 = vpop.f32.mrf.mxu2 }
  0x9e   :  { %v237_v43 = vpop.f32.mrf.mxu0  ;;  %v280_v62 = vpop.f32.mrf.mxu2 }
  0x9f   :  { %v238_v44 = vadd.f32 %v237_v43, %v66_v41  ;;  %v256_v45 = vpop.f32.mrf.mxu1 }
  0xa1   :  { %v257_v46 = vadd.f32 %v256_v45, %v238_v44 }
  0xa3   :  { %v276_v47 = vadd.f32 %v275_v42, %v257_v46 }
  0xa4   :  { %v242_v55 = vpop.f32.mrf.mxu3 }
  0xa5   :  { %v289_v49 = vmul.f32 1.442695, %v276_v47  ;;  %v243_v58 = vadd.f32 %v242_v55, %v76_v54  ;;  %vm285_vm1 = vcmp.gt.f32.partialorder %v276_v47, 0.0 }
  0xa6   :  { %v239_v51 = vpop.f32.mrf.mxu0  ;;  %v282_v14 = vpop.f32.mrf.mxu2 }
  0xa7   :  { %455 = vpow2.f32 %v289_v49  ;;  %v240_v52 = vadd.f32 %v239_v51, %v71_v48  ;;  %v258_v53 = vpop.f32.mrf.mxu1 }
  0xa9   :  { %v259_v56 = vadd.f32 %v258_v53, %v240_v52 }
  0xab   :  { %v278_v57 = vadd.f32 %v277_v50, %v259_v56 }
  0xac   :  { %v244_v5 = vpop.f32.mrf.mxu3 }
  0xad   :  { %v456_v59 = vpop.eup %455  ;;  %v291_v60 = vmul.f32 1.442695, %v278_v57  ;;  %v245_v9 = vadd.f32 %v244_v5, %v81_v4  ;;  %vm286_vm3 = vcmp.gt.f32.partialorder %v278_v57, 0.0 }
  0xae   :  { %v416_v61 = vadd.f32 -1.0, %v456_v59 }
  0xaf   :  { %457 = vpow2.f32 %v291_v60  ;;  %v261_v63 = vpop.f32.mrf.mxu1 }
  0xb0   :  { %v301_v0 = vsel %vm285_vm1, %v276_v47, %v416_v61  ;;  %v262_v1 = vadd.f32 %v261_v63, %v243_v58 }
  0xb1   :  { %v305_v2 = vpack.c.bf16 %v301_v0, %v301_v0 }
  0xb2   :  { %v281_v3 = vadd.f32 %v280_v62, %v262_v1 }
  0xb3   :  { %310 = vst.msk [vmem:[%s607_s3] sm:$0xf] %vm309_vm2, %v305_v2 }
  0xb4   :  { %v293_v6 = vmul.f32 1.442695, %v281_v3  ;;  %vm287_vm4 = vcmp.gt.f32.partialorder %v281_v3, 0.0 }
  0xb5   :  { %v458_v7 = vpop.eup %457 }
  0xb6   :  { %v417_v8 = vadd.f32 -1.0, %v458_v7  ;;  %459 = vpow2.f32 %v293_v6 }
  0xb7   :  { %v263_v10 = vpop.f32.mrf.mxu1 }
  0xb8   :  { %v302_v11 = vsel %vm286_vm3, %v278_v57, %v417_v8  ;;  %v264_v12 = vadd.f32 %v263_v10, %v245_v9 }
  0xb9   :  { %v306_v13 = vpack.c.bf16 %v302_v11, %v302_v11 }
  0xba   :  { %v283_v15 = vadd.f32 %v282_v14, %v264_v12 }
  0xbb   :  { %311 = vst.msk [vmem:[%s607_s3 + $0x4] sm:$0xf] %vm309_vm2, %v306_v13 }
  0xbc   :  { %v460_v16 = vpop.eup %459  ;;  %v295_v17 = vmul.f32 1.442695, %v283_v15  ;;  %vm288_vm5 = vcmp.gt.f32.partialorder %v283_v15, 0.0 }
  0xbd   :  { %v418_v18 = vadd.f32 -1.0, %v460_v16 }
  0xbe   :  { %461 = vpow2.f32 %v295_v17 }
  0xbf   :  { %v303_v19 = vsel %vm287_vm4, %v281_v3, %v418_v18 }
  0xc0   :  { %v307_v20 = vpack.c.bf16 %v303_v19, %v303_v19 }
  0xc2   :  { %312 = vst.msk [vmem:[%s607_s3 + $0x8] sm:$0xf] %vm309_vm2, %v307_v20 }
  0xc4   :  { %v462_v21 = vpop.eup %461 }
  0xc5   :  { %v419_v22 = vadd.f32 -1.0, %v462_v21 }
  0xc7   :  { %v304_v23 = vsel %vm288_vm5, %v283_v15, %v419_v22 }
  0xc8   :  { %v308_v24 = vpack.c.bf16 %v304_v23, %v304_v23 }
  0xca   :  { %313 = vst.msk [vmem:[%s607_s3 + $0xc] sm:$0xf] %vm309_vm2, %v308_v24 }

// kernel: airnet_forward.9
= control target key start
LH: loop header
LB: loop body
LE: loop exit
PB: predicated region body
PF: predicated region fallthrough
CT: control target
= control target key end

     0   :  { %v463_v5 = vmov 0   ;;  %vm221_vm0 = vcmask 261120   ;;  %vm309_vm2 = vcmask 125952   ;;  %s604_s2 = inlined_call_operand.vmem [shape: bf16[288,16], index: 2, kind: input, shape index: {}]   ;;  %s605_s0 = inlined_call_operand.vmem [shape: bf16[32,288], index: 0, kind: input, shape index: {}]   ;;  %s606_s1 = inlined_call_operand.vmem [shape: f32[32,1], index: 1, kind: input, shape index: {}]   ;;  %s607_s3 = inlined_call_operand.vmem [shape: bf16[32,16], index: 3, kind: output, shape index: {}]  }
   0x1   :  { %v433_v0 = vld [vmem:[%s604_s2 + $0x38] sm:$0xff]  ;;  %v432_v2 = vld [vmem:[%s604_s2 + $0x30] sm:$0xff]  ;;  %v443_v3 = vld [vmem:[%s604_s2 + $0x88] sm:$0xff]  ;;  %453 = vset.pattern.permute.xlu0 %v463_v5  ;;  %454 = vset.pattern.permute.xlu1 %v463_v5 }
   0x2   :  { %v441_v1 = vld [vmem:[%s604_s2 + $0x78] sm:$0xff]  ;;  %228 = vmatpush.bf16.msra.mxu0 %v433_v0  ;;  %444 = vmatpush.bf16.msra.mxu3 %v433_v0  ;;  %v440_v4 = vld [vmem:[%s604_s2 + $0x70] sm:$0xff]  ;;  %v442_v6 = vld [vmem:[%s604_s2 + $0x80] sm:$0xff] }
   0x3   :  { %247 = vmatpush.bf16.msra.mxu1 %v441_v1  ;;  %272 = vmatpush.bf16.msra.mxu2 %v443_v3  ;;  %v328_v7 = vld [vmem:[%s605_s0 + $0x8] sm:$0xf]  ;;  %v422_v8 = vld [vmem:[%s605_s0 + $0x10] sm:$0xf0]  ;;  %v59_v12 = vld [vmem:[%s606_s1] sm:$0xff] }
   0x4   :  { %v431_v9 = vld [vmem:[%s604_s2 + $0x28] sm:$0xff]  ;;  %v329_v11 = vor.u32 %v422_v8, %v328_v7  ;;  %v430_v13 = vld [vmem:[%s604_s2 + $0x20] sm:$0xff]  ;;  %65 = vperm.xlu0 %453, %v59_v12   ;;  %v429_v15 = vld [vmem:[%s604_s2 + $0x18] sm:$0xff] }
   0x5   :  { %v439_v10 = vld [vmem:[%s604_s2 + $0x68] sm:$0xff]  ;;  %v438_v14 = vld [vmem:[%s604_s2 + $0x60] sm:$0xff]  ;;  %v437_v16 = vld [vmem:[%s604_s2 + $0x58] sm:$0xff] }
   0x6   :  { %229 = vmatpush.bf16.msra.mxu0 %v432_v2  ;;  %445 = vmatpush.bf16.msra.mxu3 %v432_v2  ;;  %v428_v17 = vld [vmem:[%s604_s2 + $0x10] sm:$0xff]  ;;  %v60_v19 = vld [vmem:[%s606_s1 + $0x8] sm:$0xff]  ;;  %v340_v21 = vld [vmem:[%s605_s0 + $0x20] sm:$0xf] }
   0x7   :  { %248 = vmatpush.bf16.msra.mxu1 %v440_v4  ;;  %273 = vmatpush.bf16.msra.mxu2 %v442_v6  ;;  %v61_v18 = vld [vmem:[%s606_s1 + $0x10] sm:$0xff]  ;;  %v425_v22 = vld [vmem:[%s605_s0 + $0x28] sm:$0xf0]  ;;  %v426_v26 = vld [vmem:[%s604_s2] sm:$0xff] }
   0x8   :  { %v436_v20 = vld [vmem:[%s604_s2 + $0x50] sm:$0xff]  ;;  %75 = vperm.xlu1 %454, %v61_v18   ;;  %v427_v23 = vld [vmem:[%s604_s2 + $0x8] sm:$0xff]  ;;  %v341_v25 = vor.u32 %v425_v22, %v340_v21  ;;  %v320_v27 = vld [vmem:[%s605_s0] sm:$0xf] }
   0x9   :  { %v435_v24 = vld [vmem:[%s604_s2 + $0x48] sm:$0xff]  ;;  %v62_v28 = vld [vmem:[%s606_s1 + $0x18] sm:$0xff]  ;;  %v424_v31 = vld [vmem:[%s605_s0 + $0x20] sm:$0xf0] }
   0xa   :  { %230 = vmatpush.bf16.msra.mxu0 %v431_v9  ;;  %446 = vmatpush.bf16.msra.mxu3 %v431_v9  ;;  %v421_v29 = vld [vmem:[%s605_s0 + $0x8] sm:$0xf0]  ;;  %v332_v30 = vld [vmem:[%s605_s0 + $0x18] sm:$0xf]  ;;  %v434_v32 = vld [vmem:[%s604_s2 + $0x40] sm:$0xff] }
   0xb   :  { %249 = vmatpush.bf16.msra.mxu1 %v439_v10  ;;  %414 = vmatmul.msk.bf16.vlgmr.msra.gmra.mxu2 %vm221_vm0, %v329_v11  ;;  %v420_v33 = vld [vmem:[%s605_s0 + $0x4] sm:$0xf]  ;;  %v322_v34 = vld [vmem:[%s605_s0 + $0xc] sm:$0xf0]  ;;  %v321_v35 = vor.u32 %v421_v29, %v320_v27  ;;  %v333_v36 = vor.u32 %v424_v31, %v332_v30  ;;  %v423_v38 = vld [vmem:[%s605_s0 + $0x1c] sm:$0xf] }
   0xc   :  { %70 = vperm.xlu0 %453, %v60_v19   ;;  %v325_v37 = vor.u32 %v420_v33, %v322_v34  ;;  %v334_v39 = vld [vmem:[%s605_s0 + $0x24] sm:$0xf0] }
   0xd   :  { %v337_v40 = vor.u32 %v423_v38, %v334_v39 }
   0xe   :  { %231 = vmatpush.bf16.msra.mxu0 %v430_v13  ;;  %447 = vmatpush.bf16.msra.mxu3 %v430_v13 }
   0xf   :  { %250 = vmatpush.bf16.msra.mxu1 %v438_v14 }
  0x10   :  { %80 = vperm.xlu1 %454, %v62_v28  }
  0x12   :  { %232 = vmatpush.bf16.msra.mxu0 %v429_v15  ;;  %448 = vmatpush.bf16.msra.mxu3 %v429_v15 }
  0x13   :  { %251 = vmatpush.bf16.msra.mxu1 %v437_v16 }
  0x16   :  { %233 = vmatpush.bf16.msra.mxu0 %v428_v17  ;;  %449 = vmatpush.bf16.msra.mxu3 %v428_v17 }
  0x17   :  { %252 = vmatpush.bf16.msra.mxu1 %v436_v20 }
  0x1a   :  { %234 = vmatpush.bf16.msra.mxu0 %v427_v23  ;;  %450 = vmatpush.bf16.msra.mxu3 %v427_v23 }
  0x1b   :  { %253 = vmatpush.bf16.msra.mxu1 %v435_v24  ;;  %415 = vmatmul.msk.bf16.gmra.mxu2 %vm221_vm0, %v341_v25 }
  0x1e   :  { %235 = vmatpush.bf16.msra.mxu0 %v426_v26  ;;  %451 = vmatpush.bf16.msra.mxu3 %v426_v26 }
  0x1f   :  { %254 = vmatpush.bf16.msra.mxu1 %v434_v32 }
  0x21   :  { %236 = vmatmul.bf16.vlgmr.msra.gmra.mxu0 %v321_v35  ;;  %241 = vmatmul.bf16.vlgmr.msra.gmra.mxu3 %v333_v36 }
  0x22   :  { %255 = vmatmul.bf16.vlgmr.msra.gmra.mxu1 %v325_v37 }
  0x32   :  { %260 = vmatmul.bf16.gmra.mxu1 %v337_v40 }
  0x76   :  { %v66_v41 = vpop.permute.xlu0 %65 }
  0x7a   :  { %v76_v54 = vpop.permute.xlu1 %75 }
  0x7e   :  { %v71_v48 = vpop.permute.xlu0 %70 }
  0x82   :  { %v81_v4 = vpop.permute.xlu1 %80 }
  0x8e   :  { %v275_v42 = vpop.f32.mrf.mxu2 }
  0x96   :  { %v277_v50 = vpop.f32.mrf.mxu2 }
  0x9e   :  { %v237_v43 = vpop.f32.mrf.mxu0  ;;  %v280_v62 = vpop.f32.mrf.mxu2 }
  0x9f   :  { %v238_v44 = vadd.f32 %v237_v43, %v66_v41  ;;  %v256_v45 = vpop.f32.mrf.mxu1 }
  0xa1   :  { %v257_v46 = vadd.f32 %v256_v45, %v238_v44 }
  0xa3   :  { %v276_v47 = vadd.f32 %v275_v42, %v257_v46 }
  0xa4   :  { %v242_v55 = vpop.f32.mrf.mxu3 }
  0xa5   :  { %v289_v49 = vmul.f32 1.442695, %v276_v47  ;;  %v243_v58 = vadd.f32 %v242_v55, %v76_v54  ;;  %vm285_vm1 = vcmp.gt.f32.partialorder %v276_v47, 0.0 }
  0xa6   :  { %v239_v51 = vpop.f32.mrf.mxu0  ;;  %v282_v14 = vpop.f32.mrf.mxu2 }
  0xa7   :  { %455 = vpow2.f32 %v289_v49  ;;  %v240_v52 = vadd.f32 %v239_v51, %v71_v48  ;;  %v258_v53 = vpop.f32.mrf.mxu1 }
  0xa9   :  { %v259_v56 = vadd.f32 %v258_v53, %v240_v52 }
  0xab   :  { %v278_v57 = vadd.f32 %v277_v50, %v259_v56 }
  0xac   :  { %v244_v5 = vpop.f32.mrf.mxu3 }
  0xad   :  { %v456_v59 = vpop.eup %455  ;;  %v291_v60 = vmul.f32 1.442695, %v278_v57  ;;  %v245_v9 = vadd.f32 %v244_v5, %v81_v4  ;;  %vm286_vm3 = vcmp.gt.f32.partialorder %v278_v57, 0.0 }
  0xae   :  { %v416_v61 = vadd.f32 -1.0, %v456_v59 }
  0xaf   :  { %457 = vpow2.f32 %v291_v60  ;;  %v261_v63 = vpop.f32.mrf.mxu1 }
  0xb0   :  { %v301_v0 = vsel %vm285_vm1, %v276_v47, %v416_v61  ;;  %v262_v1 = vadd.f32 %v261_v63, %v243_v58 }
  0xb1   :  { %v305_v2 = vpack.c.bf16 %v301_v0, %v301_v0 }
  0xb2   :  { %v281_v3 = vadd.f32 %v280_v62, %v262_v1 }
  0xb3   :  { %310 = vst.msk [vmem:[%s607_s3] sm:$0xf] %vm309_vm2, %v305_v2 }
  0xb4   :  { %v293_v6 = vmul.f32 1.442695, %v281_v3  ;;  %vm287_vm4 = vcmp.gt.f32.partialorder %v281_v3, 0.0 }
  0xb5   :  { %v458_v7 = vpop.eup %457 }
  0xb6   :  { %v417_v8 = vadd.f32 -1.0, %v458_v7  ;;  %459 = vpow2.f32 %v293_v6 }
  0xb7   :  { %v263_v10 = vpop.f32.mrf.mxu1 }
  0xb8   :  { %v302_v11 = vsel %vm286_vm3, %v278_v57, %v417_v8  ;;  %v264_v12 = vadd.f32 %v263_v10, %v245_v9 }
  0xb9   :  { %v306_v13 = vpack.c.bf16 %v302_v11, %v302_v11 }
  0xba   :  { %v283_v15 = vadd.f32 %v282_v14, %v264_v12 }
  0xbb   :  { %311 = vst.msk [vmem:[%s607_s3 + $0x4] sm:$0xf] %vm309_vm2, %v306_v13 }
  0xbc   :  { %v460_v16 = vpop.eup %459  ;;  %v295_v17 = vmul.f32 1.442695, %v283_v15  ;;  %vm288_vm5 = vcmp.gt.f32.partialorder %v283_v15, 0.0 }
  0xbd   :  { %v418_v18 = vadd.f32 -1.0, %v460_v16 }
  0xbe   :  { %461 = vpow2.f32 %v295_v17 }
  0xbf   :  { %v303_v19 = vsel %vm287_vm4, %v281_v3, %v418_v18 }
  0xc0   :  { %v307_v20 = vpack.c.bf16 %v303_v19, %v303_v19 }
  0xc2   :  { %312 = vst.msk [vmem:[%s607_s3 + $0x8] sm:$0xf] %vm309_vm2, %v307_v20 }
  0xc4   :  { %v462_v21 = vpop.eup %461 }
  0xc5   :  { %v419_v22 = vadd.f32 -1.0, %v462_v21 }
  0xc7   :  { %v304_v23 = vsel %vm288_vm5, %v283_v15, %v419_v22 }
  0xc8   :  { %v308_v24 = vpack.c.bf16 %v304_v23, %v304_v23 }
  0xca   :  { %313 = vst.msk [vmem:[%s607_s3 + $0xc] sm:$0xf] %vm309_vm2, %v308_v24 }

// kernel: cos.0
= control target key start
LH: loop header
LB: loop body
LE: loop exit
PB: predicated region body
PF: predicated region fallthrough
CT: control target
= control target key end

     0   :  { %v169_v12 = vmov 683565275   ;;  %v170_v14 = vmov 2475754826   ;;  %v171_v16 = vmov 2131351028   ;;  %s246_s0 = inlined_call_operand.vmem [shape: f32[2,1], index: 0, kind: input, shape index: {}]   ;;  %s247_s1 = inlined_call_operand.vmem [shape: bf16[2,1], index: 1, kind: output, shape index: {}]  }
   0x1   :  { %v189_v0 = vld [vmem:[%s246_s0] sm:$0x1]  ;;  %v172_v18 = vmov 2102212464   ;;  %v173_v20 = vmov 920167782  }
   0x2   :  { %v6_v1 = vand.u32 2139095040, %v189_v0  ;;  %v3_v3 = vand.u32 2147483647, %v189_v0  ;;  %v174_v26 = vmov 1326507024   ;;  %vm5_vm12 = vcmp.lt.s32.totalorder %v189_v0, 0 }
   0x4   :  { %v7_v2 = vshrl.u32 %v6_v1, 23  ;;  %v10_v6 = vand.u32 8388607, %v3_v3  ;;  %v175_v1 = vmov 0   ;;  %vm233_vm13 = vcmp.le.f32.partialorder %v3_v3, 0.7853982 }
   0x6   :  { %v159_v4 = vadd.s32 4294967169, %v7_v2  ;;  %v11_v9 = vor.u32 8388608, %v10_v6 }
   0x8   :  { %v13_v5 = vadd.s32 1, %v159_v4  ;;  %v198_v28 = vshll.u32 %v11_v9, 8 }
   0xa   :  { %vm14_vm0 = vcmp.gt.s32.totalorder %v13_v5, 0  ;;  %v52_v40 = vand.u32 65535, %v198_v28  ;;  %v53_v41 = vshrl.u32 %v198_v28, 16 }
   0xb   :  { %v15_v7 = vsel %vm14_vm0, %v13_v5, 0 }
   0xc   :  { %v17_v8 = vand.u32 31, %v15_v7  ;;  %v195_v10 = vshrl.u32 %v15_v7, 5 }
   0xe   :  { %v18_v11 = vsub.s32 32, %v17_v8  ;;  %v20_v13 = vshll.u32 %v169_v12, %v17_v8  ;;  %v23_v15 = vshll.u32 %v170_v14, %v17_v8  ;;  %v26_v17 = vshll.u32 %v171_v16, %v17_v8 }
   0xf   :  { %v29_v19 = vshll.u32 %v172_v18, %v17_v8  ;;  %v32_v21 = vshll.u32 %v173_v20, %v17_v8  ;;  %vm35_vm1 = vcmp.lt.s32.totalorder %v195_v10, 1  ;;  %vm38_vm2 = vcmp.lt.s32.totalorder %v195_v10, 4 }
  0x10   :  { %v21_v22 = vshrl.u32 %v170_v14, %v18_v11  ;;  %v24_v23 = vshrl.u32 %v171_v16, %v18_v11  ;;  %v27_v24 = vshrl.u32 %v172_v18, %v18_v11  ;;  %v30_v25 = vshrl.u32 %v173_v20, %v18_v11 }
  0x11   :  { %v33_v27 = vshrl.u32 %v174_v26, %v18_v11  ;;  %vm37_vm3 = vcmp.lt.s32.totalorder %v195_v10, 3  ;;  %vm36_vm4 = vcmp.lt.s32.totalorder %v195_v10, 2  ;;  %v19_v48 = vshrl.u32 %v169_v12, %v18_v11 }
  0x12   :  { %v22_v29 = vor.u32 %v21_v22, %v20_v13  ;;  %v25_v30 = vor.u32 %v24_v23, %v23_v15  ;;  %v28_v31 = vor.u32 %v27_v24, %v26_v17  ;;  %v31_v32 = vor.u32 %v30_v25, %v29_v19 }
  0x13   :  { %v34_v33 = vor.u32 %v33_v27, %v32_v21 }
  0x14   :  { %v43_v34 = vsel %vm35_vm1, %v22_v29, %v25_v30  ;;  %v47_v35 = vsel %vm35_vm1, %v25_v30, %v28_v31  ;;  %v44_v36 = vsel %vm38_vm2, %v31_v32, 920167782  ;;  %v39_v61 = vsel %vm35_vm1, %v19_v48, %v22_v29 }
  0x15   :  { %v48_v37 = vsel %vm38_vm2, %v34_v33, 1326507024  ;;  %v45_v38 = vsel %vm37_vm3, %v28_v31, %v44_v36  ;;  %v40_v63 = vsel %vm38_vm2, %v28_v31, 2102212464  ;;  %vm146_vm1 = vweird.f32 %v189_v0 }
  0x16   :  { %v49_v39 = vsel %vm37_vm3, %v31_v32, %v48_v37  ;;  %v46_v42 = vsel %vm36_vm4, %v43_v34, %v45_v38  ;;  %v41_v12 = vsel %vm37_vm3, %v25_v30, %v40_v63 }
  0x17   :  { %v50_v43 = vsel %vm36_vm4, %v47_v35, %v49_v39  ;;  %v76_v46 = vand.u32 65535, %v46_v42  ;;  %v77_v47 = vshrl.u32 %v46_v42, 16  ;;  %v42_v10 = vsel %vm36_vm4, %v39_v61, %v41_v12 }
  0x18   :  { %v54_v44 = vand.u32 65535, %v50_v43  ;;  %v55_v45 = vshrl.u32 %v50_v43, 16  ;;  %v96_v23 = vmul.u32 %v198_v28, %v42_v10 }
  0x19   :  { %v78_v52 = vmul.u32 %v76_v46, %v52_v40  ;;  %v79_v53 = vmul.u32 %v77_v47, %v52_v40  ;;  %v80_v54 = vmul.u32 %v76_v46, %v53_v41  ;;  %v81_v58 = vmul.u32 %v77_v47, %v53_v41 }
  0x1a   :  { %v56_v49 = vmul.u32 %v54_v44, %v52_v40  ;;  %v57_v50 = vmul.u32 %v55_v45, %v52_v40  ;;  %v58_v51 = vmul.u32 %v54_v44, %v53_v41  ;;  %v59_v55 = vmul.u32 %v55_v45, %v53_v41 }
  0x1b   :  { %v82_v59 = vshll.u32 %v79_v53, 16  ;;  %v84_v60 = vshll.u32 %v80_v54, 16  ;;  %v83_v9 = vshrl.u32 %v79_v53, 16  ;;  %v85_v16 = vshrl.u32 %v80_v54, 16 }
  0x1c   :  { %v60_v56 = vshll.u32 %v57_v50, 16  ;;  %v62_v57 = vshll.u32 %v58_v51, 16  ;;  %v61_v5 = vshrl.u32 %v57_v50, 16  ;;  %v63_v13 = vshrl.u32 %v58_v51, 16 }
  0x1d   :  { %vm86_vm6 = vc.u32 %v78_v52, %v82_v59  ;;  %v88_v4 = vadd.s32 %v82_v59, %v78_v52 }
  0x1e   :  { %vm64_vm5 = vc.u32 %v56_v49, %v60_v56  ;;  %v66_v62 = vadd.s32 %v60_v56, %v56_v49  ;;  %v87_v7 = vsel %vm86_vm6, 1, %v175_v1 }
  0x1f   :  { %v65_v2 = vsel %vm64_vm5, 1, %v175_v1  ;;  %v89_v11 = vadd.s32 %v87_v7, %v81_v58  ;;  %vm90_vm8 = vc.u32 %v88_v4, %v84_v60  ;;  %v92_v19 = vadd.s32 %v88_v4, %v84_v60 }
  0x20   :  { %v67_v6 = vadd.s32 %v65_v2, %v59_v55  ;;  %vm68_vm7 = vc.u32 %v66_v62, %v62_v57  ;;  %v91_v15 = vsel %vm90_vm8, 1, %v175_v1 }
  0x21   :  { %v69_v8 = vsel %vm68_vm7, 1, %v175_v1  ;;  %v93_v17 = vadd.s32 %v91_v15, %v89_v11 }
  0x22   :  { %v71_v14 = vadd.s32 %v69_v8, %v67_v6 }
  0x23   :  { %v94_v20 = vadd.s32 %v93_v17, %v83_v9 }
  0x24   :  { %v72_v18 = vadd.s32 %v71_v14, %v61_v5 }
  0x25   :  { %v95_v22 = vadd.s32 %v94_v20, %v85_v16 }
  0x26   :  { %v73_v21 = vadd.s32 %v72_v18, %v63_v13 }
  0x27   :  { %v99_v24 = vadd.s32 1, %v95_v22 }
  0x28   :  { %vm98_vm9 = vc.u32 %v73_v21, %v92_v19  ;;  %v97_v35 = vadd.s32 %v92_v19, %v73_v21 }
  0x29   :  { %v100_v25 = vsel %vm98_vm9, %v99_v24, %v95_v22 }
  0x2a   :  { %v101_v26 = vadd.s32 %v100_v25, %v96_v23 }
  0x2c   :  { %v102_v27 = vadd.s32 536870912, %v101_v26 }
  0x2e   :  { %v103_v28 = vshrl.u32 %v102_v27, 30 }
  0x30   :  { %v104_v29 = vshll.u32 %v103_v28, 30  ;;  %v127_v50 = vsub.s32 4, %v103_v28 }
  0x32   :  { %v105_v30 = vsub.s32 %v101_v26, %v104_v29  ;;  %v128_v55 = vsel %vm5_vm12, %v127_v50, %v103_v28 }
  0x33   :  { %v130_v58 = vsel %vm233_vm13, 0, %v128_v55 }
  0x34   :  { %vm106_vm10 = vcmp.lt.s32.totalorder %v105_v30, 0  ;;  %v107_v31 = vsub.s32 0, %v105_v30  ;;  %v147_v63 = vand.u32 3, %v130_v58 }
  0x36   :  { %v108_v32 = vsel %vm106_vm10, %v107_v31, %v105_v30  ;;  %vm152_vm14 = vcmp.eq.s32.totalorder %v147_v63, 2  ;;  %vm149_vm15 = vcmp.eq.s32.totalorder %v147_v63, 0  ;;  %vm148_vm0 = vcmp.lt.s32.totalorder %v147_v63, 2 }
  0x37   :  { %v109_v33 = vclz %v108_v32 }
  0x39   :  { %v160_v34 = vadd.s32 4294967294, %v109_v33 }
  0x3b   :  { %vm161_vm11 = vcmp.lt.s32.totalorder %v160_v34, 0 }
  0x3c   :  { %v112_v36 = vsel %vm161_vm11, 0, %v160_v34 }
  0x3d   :  { %v113_v37 = vsub.s32 32, %v112_v36  ;;  %v114_v38 = vshll.u32 %v105_v30, %v112_v36  ;;  %v117_v39 = vsub.s32 4294967266, %v112_v36 }
  0x3f   :  { %v115_v40 = vshrl.u32 %v97_v35, %v113_v37  ;;  %v118_v41 = vadd.s32 127, %v117_v39 }
  0x41   :  { %v116_v42 = vor.u32 %v115_v40, %v114_v38  ;;  %v119_v43 = vshll.u32 %v118_v41, 23 }
  0x43   :  { %v120_v44 = vor.u32 4788187, %v119_v43  ;;  %v123_v45 = vcvt.s32.f32 %v116_v42 }
  0x45   :  { %v121_v46 = vand.u32 2147483647, %v120_v44 }
  0x47   :  { %v124_v47 = vmul.f32 %v123_v45, %v121_v46 }
  0x49   :  { %v125_v48 = vxor.u32 2147483648, %v124_v47 }
  0x4b   :  { %v126_v49 = vsel %vm5_vm12, %v125_v48, %v124_v47 }
  0x4c   :  { %v129_v51 = vsel %vm233_vm13, %v189_v0, %v126_v49 }
  0x4d   :  { %v131_v52 = vmul.f32 %v129_v51, %v129_v51 }
  0x4f   :  { %v132_v53 = vmul.f32 -0.001358992, %v131_v52  ;;  %v139_v54 = vmul.f32 -0.00019511016, %v131_v52 }
  0x51   :  { %v133_v56 = vadd.f32 0.041655596, %v132_v53  ;;  %v140_v57 = vadd.f32 0.008332121, %v139_v54 }
  0x53   :  { %v134_v59 = vmul.f32 %v133_v56, %v131_v52  ;;  %v141_v60 = vmul.f32 %v140_v57, %v131_v52 }
  0x55   :  { %v135_v61 = vadd.f32 -0.4999988, %v134_v59  ;;  %v142_v62 = vadd.f32 -0.16666654, %v141_v60 }
  0x57   :  { %v136_v1 = vmul.f32 %v135_v61, %v131_v52  ;;  %v143_v2 = vmul.f32 %v142_v62, %v131_v52 }
  0x59   :  { %v137_v4 = vadd.f32 1.0, %v136_v1  ;;  %v144_v5 = vadd.f32 1.0, %v143_v2 }
  0x5b   :  { %v145_v6 = vmul.f32 %v144_v5, %v129_v51  ;;  %v153_v7 = vxor.u32 2147483648, %v137_v4 }
  0x5d   :  { %v150_v8 = vxor.u32 2147483648, %v145_v6  ;;  %v154_v9 = vsel %vm152_vm14, %v153_v7, %v145_v6 }
  0x5f   :  { %v151_v0 = vsel %vm149_vm15, %v137_v4, %v150_v8 }
  0x60   :  { %v155_v11 = vsel %vm148_vm0, %v151_v0, %v154_v9 }
  0x61   :  { %v156_v12 = vsel %vm146_vm1, nan, %v155_v11 }
  0x62   :  { %v157_v13 = vpack.c.bf16 0.0, %v156_v12 }
  0x64   :  { %158 = vst [vmem:[%s247_s1] sm:$0x1] %v157_v13 }

// kernel: neg.0
= control target key start
LH: loop header
LB: loop body
LE: loop exit
PB: predicated region body
PF: predicated region fallthrough
CT: control target
= control target key end

     0   :  { %s25_s0 = inlined_call_operand.vmem [shape: f32[2,1], index: 0, kind: input, shape index: {}]   ;;  %s26_s1 = inlined_call_operand.vmem [shape: bf16[2,1], index: 1, kind: output, shape index: {}]  }
   0x1   :  { %v2_v0 = vld [vmem:[%s25_s0] sm:$0x1] }
   0x2   :  { %v5_v1 = vxor.u32 2147483648, %v2_v0 }
   0x4   :  { %v7_v2 = vpack.c.bf16 0.0, %v5_v1 }
   0x6   :  { %8 = vst [vmem:[%s26_s1] sm:$0x1] %v7_v2 }

// kernel: airnet_forward.10
= control target key start
LH: loop header
LB: loop body
LE: loop exit
PB: predicated region body
PF: predicated region fallthrough
CT: control target
= control target key end

     0   :  { %v463_v5 = vmov 0   ;;  %vm221_vm0 = vcmask 261120   ;;  %vm309_vm2 = vcmask 27648   ;;  %s604_s2 = inlined_call_operand.vmem [shape: bf16[288,4], index: 2, kind: input, shape index: {}]   ;;  %s605_s0 = inlined_call_operand.vmem [shape: bf16[32,288], index: 0, kind: input, shape index: {}]   ;;  %s606_s1 = inlined_call_operand.vmem [shape: f32[32,1], index: 1, kind: input, shape index: {}]   ;;  %s607_s3 = inlined_call_operand.vmem [shape: bf16[32,4], index: 3, kind: output, shape index: {}]  }
   0x1   :  { %v433_v0 = vld [vmem:[%s604_s2 + $0x38] sm:$0xff]  ;;  %v432_v2 = vld [vmem:[%s604_s2 + $0x30] sm:$0xff]  ;;  %v443_v3 = vld [vmem:[%s604_s2 + $0x88] sm:$0xff]  ;;  %453 = vset.pattern.permute.xlu0 %v463_v5  ;;  %454 = vset.pattern.permute.xlu1 %v463_v5 }
   0x2   :  { %v441_v1 = vld [vmem:[%s604_s2 + $0x78] sm:$0xff]  ;;  %228 = vmatpush.bf16.msra.mxu0 %v433_v0  ;;  %444 = vmatpush.bf16.msra.mxu3 %v433_v0  ;;  %v440_v4 = vld [vmem:[%s604_s2 + $0x70] sm:$0xff]  ;;  %v442_v6 = vld [vmem:[%s604_s2 + $0x80] sm:$0xff] }
   0x3   :  { %247 = vmatpush.bf16.msra.mxu1 %v441_v1  ;;  %272 = vmatpush.bf16.msra.mxu2 %v443_v3  ;;  %v328_v7 = vld [vmem:[%s605_s0 + $0x8] sm:$0xf]  ;;  %v422_v8 = vld [vmem:[%s605_s0 + $0x10] sm:$0xf0]  ;;  %v59_v12 = vld [vmem:[%s606_s1] sm:$0xff] }
   0x4   :  { %v431_v9 = vld [vmem:[%s604_s2 + $0x28] sm:$0xff]  ;;  %v329_v11 = vor.u32 %v422_v8, %v328_v7  ;;  %v430_v13 = vld [vmem:[%s604_s2 + $0x20] sm:$0xff]  ;;  %65 = vperm.xlu0 %453, %v59_v12   ;;  %v429_v15 = vld [vmem:[%s604_s2 + $0x18] sm:$0xff] }
   0x5   :  { %v439_v10 = vld [vmem:[%s604_s2 + $0x68] sm:$0xff]  ;;  %v438_v14 = vld [vmem:[%s604_s2 + $0x60] sm:$0xff]  ;;  %v437_v16 = vld [vmem:[%s604_s2 + $0x58] sm:$0xff] }
   0x6   :  { %229 = vmatpush.bf16.msra.mxu0 %v432_v2  ;;  %445 = vmatpush.bf16.msra.mxu3 %v432_v2  ;;  %v428_v17 = vld [vmem:[%s604_s2 + $0x10] sm:$0xff]  ;;  %v60_v19 = vld [vmem:[%s606_s1 + $0x8] sm:$0xff]  ;;  %v340_v21 = vld [vmem:[%s605_s0 + $0x20] sm:$0xf] }
   0x7   :  { %248 = vmatpush.bf16.msra.mxu1 %v440_v4  ;;  %273 = vmatpush.bf16.msra.mxu2 %v442_v6  ;;  %v61_v18 = vld [vmem:[%s606_s1 + $0x10] sm:$0xff]  ;;  %v425_v22 = vld [vmem:[%s605_s0 + $0x28] sm:$0xf0]  ;;  %v426_v26 = vld [vmem:[%s604_s2] sm:$0xff] }
   0x8   :  { %v436_v20 = vld [vmem:[%s604_s2 + $0x50] sm:$0xff]  ;;  %75 = vperm.xlu1 %454, %v61_v18   ;;  %v427_v23 = vld [vmem:[%s604_s2 + $0x8] sm:$0xff]  ;;  %v341_v25 = vor.u32 %v425_v22, %v340_v21  ;;  %v320_v27 = vld [vmem:[%s605_s0] sm:$0xf] }
   0x9   :  { %v435_v24 = vld [vmem:[%s604_s2 + $0x48] sm:$0xff]  ;;  %v62_v28 = vld [vmem:[%s606_s1 + $0x18] sm:$0xff]  ;;  %v424_v31 = vld [vmem:[%s605_s0 + $0x20] sm:$0xf0] }
   0xa   :  { %230 = vmatpush.bf16.msra.mxu0 %v431_v9  ;;  %446 = vmatpush.bf16.msra.mxu3 %v431_v9  ;;  %v421_v29 = vld [vmem:[%s605_s0 + $0x8] sm:$0xf0]  ;;  %v332_v30 = vld [vmem:[%s605_s0 + $0x18] sm:$0xf]  ;;  %v434_v32 = vld [vmem:[%s604_s2 + $0x40] sm:$0xff] }
   0xb   :  { %249 = vmatpush.bf16.msra.mxu1 %v439_v10  ;;  %414 = vmatmul.msk.bf16.vlgmr.msra.gmra.mxu2 %vm221_vm0, %v329_v11  ;;  %v420_v33 = vld [vmem:[%s605_s0 + $0x4] sm:$0xf]  ;;  %v322_v34 = vld [vmem:[%s605_s0 + $0xc] sm:$0xf0]  ;;  %v321_v35 = vor.u32 %v421_v29, %v320_v27  ;;  %v333_v36 = vor.u32 %v424_v31, %v332_v30  ;;  %v423_v38 = vld [vmem:[%s605_s0 + $0x1c] sm:$0xf] }
   0xc   :  { %70 = vperm.xlu0 %453, %v60_v19   ;;  %v325_v37 = vor.u32 %v420_v33, %v322_v34  ;;  %v334_v39 = vld [vmem:[%s605_s0 + $0x24] sm:$0xf0] }
   0xd   :  { %v337_v40 = vor.u32 %v423_v38, %v334_v39 }
   0xe   :  { %231 = vmatpush.bf16.msra.mxu0 %v430_v13  ;;  %447 = vmatpush.bf16.msra.mxu3 %v430_v13 }
   0xf   :  { %250 = vmatpush.bf16.msra.mxu1 %v438_v14 }
  0x10   :  { %80 = vperm.xlu1 %454, %v62_v28  }
  0x12   :  { %232 = vmatpush.bf16.msra.mxu0 %v429_v15  ;;  %448 = vmatpush.bf16.msra.mxu3 %v429_v15 }
  0x13   :  { %251 = vmatpush.bf16.msra.mxu1 %v437_v16 }
  0x16   :  { %233 = vmatpush.bf16.msra.mxu0 %v428_v17  ;;  %449 = vmatpush.bf16.msra.mxu3 %v428_v17 }
  0x17   :  { %252 = vmatpush.bf16.msra.mxu1 %v436_v20 }
  0x1a   :  { %234 = vmatpush.bf16.msra.mxu0 %v427_v23  ;;  %450 = vmatpush.bf16.msra.mxu3 %v427_v23 }
  0x1b   :  { %253 = vmatpush.bf16.msra.mxu1 %v435_v24  ;;  %415 = vmatmul.msk.bf16.gmra.mxu2 %vm221_vm0, %v341_v25 }
  0x1e   :  { %235 = vmatpush.bf16.msra.mxu0 %v426_v26  ;;  %451 = vmatpush.bf16.msra.mxu3 %v426_v26 }
  0x1f   :  { %254 = vmatpush.bf16.msra.mxu1 %v434_v32 }
  0x21   :  { %236 = vmatmul.bf16.vlgmr.msra.gmra.mxu0 %v321_v35  ;;  %241 = vmatmul.bf16.vlgmr.msra.gmra.mxu3 %v333_v36 }
  0x22   :  { %255 = vmatmul.bf16.vlgmr.msra.gmra.mxu1 %v325_v37 }
  0x32   :  { %260 = vmatmul.bf16.gmra.mxu1 %v337_v40 }
  0x76   :  { %v66_v41 = vpop.permute.xlu0 %65 }
  0x7a   :  { %v76_v54 = vpop.permute.xlu1 %75 }
  0x7e   :  { %v71_v48 = vpop.permute.xlu0 %70 }
  0x82   :  { %v81_v4 = vpop.permute.xlu1 %80 }
  0x8e   :  { %v275_v42 = vpop.f32.mrf.mxu2 }
  0x96   :  { %v277_v50 = vpop.f32.mrf.mxu2 }
  0x9e   :  { %v237_v43 = vpop.f32.mrf.mxu0  ;;  %v280_v62 = vpop.f32.mrf.mxu2 }
  0x9f   :  { %v238_v44 = vadd.f32 %v237_v43, %v66_v41  ;;  %v256_v45 = vpop.f32.mrf.mxu1 }
  0xa1   :  { %v257_v46 = vadd.f32 %v256_v45, %v238_v44 }
  0xa3   :  { %v276_v47 = vadd.f32 %v275_v42, %v257_v46 }
  0xa4   :  { %v242_v55 = vpop.f32.mrf.mxu3 }
  0xa5   :  { %v289_v49 = vmul.f32 1.442695, %v276_v47  ;;  %v243_v58 = vadd.f32 %v242_v55, %v76_v54  ;;  %vm285_vm1 = vcmp.gt.f32.partialorder %v276_v47, 0.0 }
  0xa6   :  { %v239_v51 = vpop.f32.mrf.mxu0  ;;  %v282_v14 = vpop.f32.mrf.mxu2 }
  0xa7   :  { %455 = vpow2.f32 %v289_v49  ;;  %v240_v52 = vadd.f32 %v239_v51, %v71_v48  ;;  %v258_v53 = vpop.f32.mrf.mxu1 }
  0xa9   :  { %v259_v56 = vadd.f32 %v258_v53, %v240_v52 }
  0xab   :  { %v278_v57 = vadd.f32 %v277_v50, %v259_v56 }
  0xac   :  { %v244_v5 = vpop.f32.mrf.mxu3 }
  0xad   :  { %v456_v59 = vpop.eup %455  ;;  %v291_v60 = vmul.f32 1.442695, %v278_v57  ;;  %v245_v9 = vadd.f32 %v244_v5, %v81_v4  ;;  %vm286_vm3 = vcmp.gt.f32.partialorder %v278_v57, 0.0 }
  0xae   :  { %v416_v61 = vadd.f32 -1.0, %v456_v59 }
  0xaf   :  { %457 = vpow2.f32 %v291_v60  ;;  %v261_v63 = vpop.f32.mrf.mxu1 }
  0xb0   :  { %v301_v0 = vsel %vm285_vm1, %v276_v47, %v416_v61  ;;  %v262_v1 = vadd.f32 %v261_v63, %v243_v58 }
  0xb1   :  { %v305_v2 = vpack.c.bf16 %v301_v0, %v301_v0 }
  0xb2   :  { %v281_v3 = vadd.f32 %v280_v62, %v262_v1 }
  0xb3   :  { %310 = vst.msk [vmem:[%s607_s3] sm:$0xf] %vm309_vm2, %v305_v2 }
  0xb4   :  { %v293_v6 = vmul.f32 1.442695, %v281_v3  ;;  %vm287_vm4 = vcmp.gt.f32.partialorder %v281_v3, 0.0 }
  0xb5   :  { %v458_v7 = vpop.eup %457 }
  0xb6   :  { %v417_v8 = vadd.f32 -1.0, %v458_v7  ;;  %459 = vpow2.f32 %v293_v6 }
  0xb7   :  { %v263_v10 = vpop.f32.mrf.mxu1 }
  0xb8   :  { %v302_v11 = vsel %vm286_vm3, %v278_v57, %v417_v8  ;;  %v264_v12 = vadd.f32 %v263_v10, %v245_v9 }
  0xb9   :  { %v306_v13 = vpack.c.bf16 %v302_v11, %v302_v11 }
  0xba   :  { %v283_v15 = vadd.f32 %v282_v14, %v264_v12 }
  0xbb   :  { %311 = vst.msk [vmem:[%s607_s3 + $0x4] sm:$0xf] %vm309_vm2, %v306_v13 }
  0xbc   :  { %v460_v16 = vpop.eup %459  ;;  %v295_v17 = vmul.f32 1.442695, %v283_v15  ;;  %vm288_vm5 = vcmp.gt.f32.partialorder %v283_v15, 0.0 }
  0xbd   :  { %v418_v18 = vadd.f32 -1.0, %v460_v16 }
  0xbe   :  { %461 = vpow2.f32 %v295_v17 }
  0xbf   :  { %v303_v19 = vsel %vm287_vm4, %v281_v3, %v418_v18 }
  0xc0   :  { %v307_v20 = vpack.c.bf16 %v303_v19, %v303_v19 }
  0xc2   :  { %312 = vst.msk [vmem:[%s607_s3 + $0x8] sm:$0xf] %vm309_vm2, %v307_v20 }
  0xc4   :  { %v462_v21 = vpop.eup %461 }
  0xc5   :  { %v419_v22 = vadd.f32 -1.0, %v462_v21 }
  0xc7   :  { %v304_v23 = vsel %vm288_vm5, %v283_v15, %v419_v22 }
  0xc8   :  { %v308_v24 = vpack.c.bf16 %v304_v23, %v304_v23 }
  0xca   :  { %313 = vst.msk [vmem:[%s607_s3 + $0xc] sm:$0xf] %vm309_vm2, %v308_v24 }

// kernel: airnet_forward.12
= control target key start
LH: loop header
LB: loop body
LE: loop exit
PB: predicated region body
PF: predicated region fallthrough
CT: control target
= control target key end

     0   :  { %v1109_v0 = vmov 0   ;;  %vm242_vm0 = vcmask 261120   ;;  %v326_v51 = vlaneseq  ;;  %v1110_v55 = vmov 0.0   ;;  %s1443_s1 = inlined_call_operand.vmem [shape: f32[32,1], index: 1, kind: input, shape index: {}]   ;;  %s1444_s2 = inlined_call_operand.vmem [shape: bf16[288,4], index: 2, kind: input, shape index: {}]   ;;  %s1445_s0 = inlined_call_operand.vmem [shape: bf16[32,288], index: 0, kind: input, shape index: {}]   ;;  %s1446_s5 = inlined_call_operand.vmem [shape: f32[64,1], index: 5, kind: input, shape index: {}]   ;;  %s1447_s7 = inlined_call_operand.vmem [shape: f32[64,1], index: 7, kind: input, shape index: {}]   ;;  %s1448_s3 = inlined_call_operand.vmem [shape: f32[64,32], index: 3, kind: input, shape index: {}]   ;;  %s1449_s4 = inlined_call_operand.vmem [shape: f32[64,32], index: 4, kind: input, shape index: {}]   ;;  %s1450_s9 = inlined_call_operand.vmem [shape: f32[7,1], index: 9, kind: input, shape index: {}]   ;;  %s1451_s6 = inlined_call_operand.vmem [shape: f32[64,64], index: 6, kind: input, shape index: {}]   ;;  %s1452_s8 = inlined_call_operand.vmem [shape: f32[7,64], index: 8, kind: input, shape index: {}]   ;;  %s1453_s10 = inlined_call_operand.vmem [shape: f32[7,2], index: 10, kind: output, shape index: {}]  }
   0x1   :  { %1062 = vset.pattern.permute.xlu0 %v1109_v0  ;;  %v80_v1 = vld [vmem:[%s1443_s1] sm:$0xff]  ;;  %v1037_v2 = vld [vmem:[%s1444_s2 + $0x38] sm:$0xff]  ;;  %1063 = vset.pattern.permute.xlu1 %v1109_v0  ;;  %v1036_v4 = vld [vmem:[%s1444_s2 + $0x30] sm:$0xff]  ;;  %vm354_vm4 = vcmask 1043456   ;;  %vm341_vm7 = vcmask 31744  }
   0x2   :  { %v1045_v3 = vld [vmem:[%s1444_s2 + $0x78] sm:$0xff]  ;;  %86 = vperm.xlu0 %1062, %v80_v1   ;;  %1064 = vset.pattern.permute.xlu2 %v1109_v0  ;;  %v1044_v5 = vld [vmem:[%s1444_s2 + $0x70] sm:$0xff]  ;;  %v1047_v7 = vld [vmem:[%s1444_s2 + $0x88] sm:$0xff]  ;;  %v329_v52 = vand.u32 127, %v326_v51  ;;  %v1300_v53 = vshrl.u32 %v326_v51, 7 }
   0x3   :  { %249 = vmatpush.bf16.msra.mxu0 %v1037_v2  ;;  %268 = vmatpush.bf16.msra.mxu1 %v1045_v3  ;;  %v82_v6 = vld [vmem:[%s1443_s1 + $0x10] sm:$0xff]  ;;  %v81_v8 = vld [vmem:[%s1443_s1 + $0x8] sm:$0xff]  ;;  %v1046_v10 = vld [vmem:[%s1444_s2 + $0x80] sm:$0xff] }
   0x4   :  { %96 = vperm.xlu1 %1063, %v82_v6   ;;  %v1035_v9 = vld [vmem:[%s1444_s2 + $0x28] sm:$0xff]  ;;  %293 = vmatpush.bf16.msra.mxu2 %v1047_v7  ;;  %v1026_v13 = vld [vmem:[%s1445_s0 + $0x10] sm:$0xf0]  ;;  %v83_v14 = vld [vmem:[%s1443_s1 + $0x18] sm:$0xff]  ;;  %v332_v54 = vadd.s32 1, %v329_v52  ;;  %vm331_vm1 = vcmp.ge.s32.totalorder %v1300_v53, %v329_v52  ;;  %v330_v7 = vadd.s32 2, %v329_v52 }
   0x5   :  { %v1043_v11 = vld [vmem:[%s1444_s2 + $0x68] sm:$0xff]  ;;  %v1034_v16 = vld [vmem:[%s1444_s2 + $0x20] sm:$0xff]  ;;  %v1033_v19 = vld [vmem:[%s1444_s2 + $0x18] sm:$0xff] }
   0x6   :  { %v881_v12 = vld [vmem:[%s1445_s0 + $0x8] sm:$0xf]  ;;  %v1042_v17 = vld [vmem:[%s1444_s2 + $0x60] sm:$0xff]  ;;  %v1041_v20 = vld [vmem:[%s1444_s2 + $0x58] sm:$0xff]  ;;  %vm333_vm2 = vcmp.lt.s32.totalorder %v1300_v53, %v332_v54  ;;  %vm336_vm5 = vcmp.ge.s32.totalorder %v1300_v53, %v330_v7 }
   0x7   :  { %250 = vmatpush.bf16.msra.mxu0 %v1036_v4  ;;  %269 = vmatpush.bf16.msra.mxu1 %v1044_v5  ;;  %v882_v15 = vor.u32 %v1026_v13, %v881_v12  ;;  %v570_v18 = vld [vmem:[%s1446_s5 + $0x28] sm:$0xff]  ;;  %v569_v21 = vld [vmem:[%s1446_s5 + $0x20] sm:$0xff]  ;;  %v1032_v22 = vld [vmem:[%s1444_s2 + $0x10] sm:$0xff] }
   0x8   :  { %294 = vmatpush.bf16.msra.mxu2 %v1046_v10  ;;  %v1040_v23 = vld [vmem:[%s1444_s2 + $0x50] sm:$0xff]  ;;  %v893_v24 = vld [vmem:[%s1445_s0 + $0x20] sm:$0xf]  ;;  %v1029_v25 = vld [vmem:[%s1445_s0 + $0x28] sm:$0xf0] }
   0x9   :  { %v567_v26 = vld [vmem:[%s1446_s5 + $0x10] sm:$0xff]  ;;  %v1031_v27 = vld [vmem:[%s1444_s2 + $0x8] sm:$0xff]  ;;  %v894_v30 = vor.u32 %v1029_v25, %v893_v24  ;;  %v1030_v31 = vld [vmem:[%s1444_s2] sm:$0xff] }
   0xa   :  { %91 = vperm.xlu0 %1062, %v81_v8   ;;  %v1039_v28 = vld [vmem:[%s1444_s2 + $0x48] sm:$0xff]  ;;  %v1038_v32 = vld [vmem:[%s1444_s2 + $0x40] sm:$0xff]  ;;  %v875_v36 = vld [vmem:[%s1445_s0 + $0xc] sm:$0xf0] }
   0xb   :  { %251 = vmatpush.bf16.msra.mxu0 %v1035_v9  ;;  %270 = vmatpush.bf16.msra.mxu1 %v1043_v11  ;;  %v566_v29 = vld [vmem:[%s1446_s5 + $0x8] sm:$0xff]  ;;  %v873_v33 = vld [vmem:[%s1445_s0] sm:$0xf]  ;;  %v1024_v35 = vld [vmem:[%s1445_s0 + $0x4] sm:$0xf]  ;;  %v337_v9 = vadd.s32 1, %v330_v7 }
   0xc   :  { %101 = vperm.xlu1 %1063, %v83_v14   ;;  %967 = vmatmul.msk.bf16.vlgmr.msra.gmra.mxu2 %vm242_vm0, %v882_v15  ;;  %v1025_v34 = vld [vmem:[%s1445_s0 + $0x8] sm:$0xf0]  ;;  %v676_v38 = vld [vmem:[%s1447_s7 + $0x38] sm:$0xff]  ;;  %v878_v39 = vor.u32 %v1024_v35, %v875_v36  ;;  %v675_v40 = vld [vmem:[%s1447_s7 + $0x30] sm:$0xff] }
   0xd   :  { %v874_v37 = vor.u32 %v1025_v34, %v873_v33  ;;  %v673_v41 = vld [vmem:[%s1447_s7 + $0x20] sm:$0xff]  ;;  %v672_v42 = vld [vmem:[%s1447_s7 + $0x18] sm:$0xff]  ;;  %v887_v46 = vld [vmem:[%s1445_s0 + $0x24] sm:$0xf0]  ;;  %vm338_vm6 = vcmp.lt.s32.totalorder %v1300_v53, %v337_v9 }
   0xe   :  { %v885_v43 = vld [vmem:[%s1445_s0 + $0x18] sm:$0xf]  ;;  %v1028_v44 = vld [vmem:[%s1445_s0 + $0x20] sm:$0xf0]  ;;  %v1027_v45 = vld [vmem:[%s1445_s0 + $0x1c] sm:$0xf] }
   0xf   :  { %252 = vmatpush.bf16.msra.mxu0 %v1034_v16  ;;  %271 = vmatpush.bf16.msra.mxu1 %v1042_v17  ;;  %v886_v47 = vor.u32 %v1028_v44, %v885_v43  ;;  %v670_v48 = vld [vmem:[%s1447_s7 + $0x8] sm:$0xff]  ;;  %v890_v49 = vor.u32 %v1027_v45, %v887_v46  ;;  %v669_v50 = vld [vmem:[%s1447_s7] sm:$0xff]  ;;  %vm334_vm3 = vmand %vm331_vm1, %vm333_vm2 }
  0x10   :  { %v335_v56 = vsel %vm334_vm3, 1.0, %v1110_v55  ;;  %vm339_vm8 = vmand %vm336_vm5, %vm338_vm6  ;;  %v419_v45 = vld [vmem:[%s1448_s3] sm:$0xff]  ;;  %v571_v52 = vld [vmem:[%s1446_s5 + $0x30] sm:$0xff]  ;;  %vm717_vm5 = vcmask 523264  }
  0x11   :  { %973 = vmatpush.msk.msra.mxu3 %vm354_vm4, %v335_v56  ;;  %v340_v17 = vsel %vm339_vm8, 1.0, %v1110_v55  ;;  %v422_v54 = vld [vmem:[%s1448_s3 + $0x18] sm:$0xff]  ;;  %v427_v55 = vld [vmem:[%s1449_s4] sm:$0xff] }
  0x12   :  { %600 = vperm.xlu0 %1062, %v570_v18   ;;  %v568_v56 = vld [vmem:[%s1446_s5 + $0x18] sm:$0xff] }
  0x13   :  { %253 = vmatpush.bf16.msra.mxu0 %v1033_v19  ;;  %272 = vmatpush.bf16.msra.mxu1 %v1041_v20  ;;  %v434_v7 = vld [vmem:[%s1449_s4 + $0x38] sm:$0xff] }
  0x14   :  { %595 = vperm.xlu1 %1063, %v569_v21   ;;  %978 = vmatpush.msk.msrb.mxu3 %vm354_vm4, %v340_v17 }
  0x17   :  { %254 = vmatpush.bf16.msra.mxu0 %v1032_v22  ;;  %273 = vmatpush.bf16.msra.mxu1 %v1040_v23 }
  0x1a   :  { %585 = vperm.xlu0 %1062, %v567_v26  }
  0x1b   :  { %255 = vmatpush.bf16.msra.mxu0 %v1031_v27  ;;  %274 = vmatpush.bf16.msra.mxu1 %v1039_v28 }
  0x1c   :  { %580 = vperm.xlu1 %1063, %v566_v29   ;;  %968 = vmatmul.msk.bf16.gmra.mxu2 %vm242_vm0, %v894_v30 }
  0x1f   :  { %256 = vmatpush.bf16.msra.mxu0 %v1030_v31  ;;  %275 = vmatpush.bf16.msra.mxu1 %v1038_v32 }
  0x22   :  { %714 = vperm.xlu0 %1062, %v676_v38   ;;  %257 = vmatmul.bf16.vlgmr.msra.gmra.mxu0 %v874_v37 }
  0x23   :  { %276 = vmatmul.bf16.vlgmr.msra.gmra.mxu1 %v878_v39 }
  0x24   :  { %709 = vperm.xlu1 %1063, %v675_v40  }
  0x2a   :  { %699 = vperm.xlu0 %1062, %v673_v41  }
  0x2c   :  { %694 = vperm.xlu1 %1063, %v672_v42  }
  0x32   :  { %684 = vperm.xlu0 %1062, %v670_v48   ;;  %262 = vmatmul.bf16.gmra.mxu0 %v886_v47  ;;  %v420_v47 = vld [vmem:[%s1448_s3 + $0x8] sm:$0xff] }
  0x33   :  { %281 = vmatmul.bf16.gmra.mxu1 %v890_v49  ;;  %v572_v49 = vld [vmem:[%s1446_s5 + $0x38] sm:$0xff] }
  0x34   :  { %679 = vperm.xlu1 %1063, %v669_v50   ;;  %v421_v50 = vld [vmem:[%s1448_s3 + $0x10] sm:$0xff]  ;;  %610 = vperm.xlu2 %1064, %v572_v49  }
  0x3c   :  { %605 = vperm.xlu2 %1064, %v571_v52  }
  0x44   :  { %590 = vperm.xlu2 %1064, %v568_v56  }
  0x74   :  { %v87_v57 = vpop.permute.xlu0 %86 }
  0x76   :  { %v97_v10 = vpop.permute.xlu1 %96 }
  0x7c   :  { %v92_v0 = vpop.permute.xlu0 %91 }
  0x7e   :  { %v102_v24 = vpop.permute.xlu1 %101 }
  0x8f   :  { %v296_v58 = vpop.f32.mrf.mxu2 }
  0x97   :  { %v298_v2 = vpop.f32.mrf.mxu2 }
  0x9f   :  { %v258_v59 = vpop.f32.mrf.mxu0  ;;  %v301_v18 = vpop.f32.mrf.mxu2 }
  0xa0   :  { %v259_v60 = vadd.f32 %v258_v59, %v87_v57  ;;  %v277_v61 = vpop.f32.mrf.mxu1  ;;  %v423_v57 = vld [vmem:[%s1448_s3 + $0x20] sm:$0xff] }
  0xa1   :  { %v565_v59 = vld [vmem:[%s1446_s5] sm:$0xff] }
  0xa2   :  { %v278_v62 = vadd.f32 %v277_v61, %v259_v60  ;;  %v424_v60 = vld [vmem:[%s1448_s3 + $0x28] sm:$0xff]  ;;  %575 = vperm.xlu2 %1064, %v565_v59   ;;  %v429_v61 = vld [vmem:[%s1449_s4 + $0x10] sm:$0xff] }
  0xa4   :  { %v297_v63 = vadd.f32 %v296_v58, %v278_v62  ;;  %v428_v58 = vld [vmem:[%s1449_s4 + $0x8] sm:$0xff]  ;;  %v425_v62 = vld [vmem:[%s1448_s3 + $0x30] sm:$0xff] }
  0xa6   :  { %v310_v1 = vmul.f32 1.442695, %v297_v63  ;;  %vm306_vm9 = vcmp.gt.f32.partialorder %v297_v63, 0.0 }
  0xa7   :  { %v260_v3 = vpop.f32.mrf.mxu0  ;;  %v303_v31 = vpop.f32.mrf.mxu2 }
  0xa8   :  { %1065 = vpow2.f32 %v310_v1  ;;  %v261_v4 = vadd.f32 %v260_v3, %v92_v0  ;;  %v279_v5 = vpop.f32.mrf.mxu1  ;;  %v426_v0 = vld [vmem:[%s1448_s3 + $0x38] sm:$0xff]  ;;  %v674_v1 = vld [vmem:[%s1447_s7 + $0x28] sm:$0xff]  ;;  %v671_v3 = vld [vmem:[%s1447_s7 + $0x10] sm:$0xff] }
  0xaa   :  { %v280_v6 = vadd.f32 %v279_v5, %v261_v4  ;;  %704 = vperm.xlu2 %1064, %v674_v1   ;;  %v432_v4 = vld [vmem:[%s1449_s4 + $0x28] sm:$0xff]  ;;  %v824_v5 = vld [vmem:[%s1450_s9] sm:$0x7f] }
  0xac   :  { %v299_v8 = vadd.f32 %v298_v2, %v280_v6  ;;  %v431_v2 = vld [vmem:[%s1449_s4 + $0x20] sm:$0xff]  ;;  %v433_v6 = vld [vmem:[%s1449_s4 + $0x30] sm:$0xff] }
  0xae   :  { %v1066_v11 = vpop.eup %1065  ;;  %v312_v12 = vmul.f32 1.442695, %v299_v8  ;;  %vm307_vm10 = vcmp.gt.f32.partialorder %v299_v8, 0.0 }
  0xaf   :  { %v263_v13 = vpop.f32.mrf.mxu0  ;;  %v969_v14 = vadd.f32 -1.0, %v1066_v11 }
  0xb0   :  { %1067 = vpow2.f32 %v312_v12  ;;  %v264_v15 = vadd.f32 %v263_v13, %v97_v10  ;;  %v282_v16 = vpop.f32.mrf.mxu1 }
  0xb1   :  { %v322_v19 = vsel %vm306_vm9, %v297_v63, %v969_v14  ;;  %v430_v63 = vld [vmem:[%s1449_s4 + $0x18] sm:$0xff] }
  0xb2   :  { %v283_v20 = vadd.f32 %v282_v16, %v264_v15  ;;  %974 = vmatmul.msk.f32.vlgmr.msra.gmra.mxu3 %vm341_vm7, %v322_v19  ;;  %689 = vperm.xlu2 %1064, %v671_v3   ;;  %v611_v16 = vpop.permute.xlu2 %610 }
  0xb4   :  { %v302_v21 = vadd.f32 %v301_v18, %v283_v20 }
  0xb6   :  { %v1068_v22 = vpop.eup %1067  ;;  %v314_v23 = vmul.f32 1.442695, %v302_v21  ;;  %vm308_vm11 = vcmp.gt.f32.partialorder %v302_v21, 0.0 }
  0xb7   :  { %v265_v25 = vpop.f32.mrf.mxu0  ;;  %v970_v26 = vadd.f32 -1.0, %v1068_v22 }
  0xb8   :  { %1069 = vpow2.f32 %v314_v23  ;;  %v266_v27 = vadd.f32 %v265_v25, %v102_v24  ;;  %v284_v28 = vpop.f32.mrf.mxu1  ;;  %v601_v25 = vpop.permute.xlu0 %600 }
  0xb9   :  { %v323_v29 = vsel %vm307_vm10, %v299_v8, %v970_v26 }
  0xba   :  { %v285_v30 = vadd.f32 %v284_v28, %v266_v27  ;;  %975 = vmatmul.msk.f32.gmra.mxu3 %vm341_vm7, %v323_v29  ;;  %827 = vperm.xlu2 %1064, %v824_v5   ;;  %v606_v20 = vpop.permute.xlu2 %605  ;;  %v596_v27 = vpop.permute.xlu1 %595 }
  0xbc   :  { %v304_v32 = vadd.f32 %v303_v31, %v285_v30 }
  0xbe   :  { %v1070_v33 = vpop.eup %1069  ;;  %v316_v34 = vmul.f32 1.442695, %v304_v32  ;;  %vm309_vm12 = vcmp.gt.f32.partialorder %v304_v32, 0.0 }
  0xbf   :  { %v971_v35 = vadd.f32 -1.0, %v1070_v33 }
  0xc0   :  { %1071 = vpow2.f32 %v316_v34 }
  0xc1   :  { %v324_v36 = vsel %vm308_vm11, %v302_v21, %v971_v35 }
  0xc2   :  { %976 = vmatmul.msk.f32.gmra.mxu3 %vm341_vm7, %v324_v36  ;;  %v591_v28 = vpop.permute.xlu2 %590 }
  0xc6   :  { %v1072_v37 = vpop.eup %1071 }
  0xc7   :  { %v972_v38 = vadd.f32 -1.0, %v1072_v37 }
  0xc9   :  { %v325_v39 = vsel %vm309_vm12, %v304_v32, %v972_v38 }
  0xca   :  { %977 = vmatmul.msk.f32.gmra.mxu3 %vm341_vm7, %v325_v39 }
  0xd2   :  { %979 = vmatmul.msk.f32.vlgmr.msrb.gmra.mxu3 %vm341_vm7, %v322_v19 }
  0xda   :  { %980 = vmatmul.msk.f32.gmra.mxu3 %vm341_vm7, %v323_v29 }
  0xe2   :  { %981 = vmatmul.msk.f32.gmra.mxu3 %vm341_vm7, %v324_v36 }
  0xea   :  { %982 = vmatmul.msk.f32.gmra.mxu3 %vm341_vm7, %v325_v39 }
  0xfc   :  { %v576_v49 = vpop.permute.xlu2 %575 }
 0x135   :  { %v375_v40 = vpop.f32.mrf.mxu3 }
 0x13d   :  { %v378_v41 = vpop.f32.mrf.mxu3 }
 0x145   :  { %v381_v42 = vpop.f32.mrf.mxu3 }
 0x14d   :  { %v384_v43 = vpop.f32.mrf.mxu3 }
 0x14e   :  { %536 = vmatpush.msrb.mxu0 %v384_v43  ;;  %1048 = vmatpush.msra.mxu3 %v384_v43  ;;  %v586_v43 = vpop.permute.xlu0 %585 }
 0x150   :  { %537 = vmatpush.msrb.mxu0 %v381_v42  ;;  %1049 = vmatpush.msra.mxu3 %v381_v42 }
 0x152   :  { %538 = vmatpush.msrb.mxu0 %v378_v41  ;;  %1050 = vmatpush.msra.mxu3 %v378_v41 }
 0x154   :  { %539 = vmatpush.msrb.mxu0 %v375_v40  ;;  %1051 = vmatpush.msra.mxu3 %v375_v40 }
 0x155   :  { %v407_v44 = vpop.f32.mrf.mxu3  ;;  %991 = vmatmul.msk.f32.vlgmr.msrb.gmra.mxu0 %vm242_vm0, %v419_v45  ;;  %997 = vmatmul.msk.f32.vlgmr.msra.gmra.mxu3 %vm242_vm0, %v425_v62 }
 0x15d   :  { %v410_v46 = vpop.f32.mrf.mxu3  ;;  %992 = vmatmul.msk.f32.gmra.mxu0 %vm242_vm0, %v420_v47  ;;  %998 = vmatmul.msk.f32.gmra.mxu3 %vm242_vm0, %v426_v0 }
 0x165   :  { %v413_v48 = vpop.f32.mrf.mxu3  ;;  %993 = vmatmul.msk.f32.gmra.mxu0 %vm242_vm0, %v421_v50 }
 0x16d   :  { %v416_v51 = vpop.f32.mrf.mxu3  ;;  %994 = vmatmul.msk.f32.gmra.mxu0 %vm242_vm0, %v422_v54 }
 0x16e   :  { %471 = vmatpush.msrb.mxu2 %v416_v51 }
 0x170   :  { %472 = vmatpush.msrb.mxu2 %v413_v48  ;;  %v581_v48 = vpop.permute.xlu1 %580 }
 0x172   :  { %473 = vmatpush.msrb.mxu2 %v410_v46 }
 0x174   :  { %474 = vmatpush.msrb.mxu2 %v407_v44 }
 0x175   :  { %983 = vmatmul.msk.f32.vlgmr.msrb.gmra.mxu2 %vm242_vm0, %v427_v55  ;;  %995 = vmatmul.msk.f32.gmra.mxu0 %vm242_vm0, %v423_v57 }
 0x17d   :  { %984 = vmatmul.msk.f32.gmra.mxu2 %vm242_vm0, %v428_v58  ;;  %996 = vmatmul.msk.f32.gmra.mxu0 %vm242_vm0, %v424_v60 }
 0x185   :  { %985 = vmatmul.msk.f32.gmra.mxu2 %vm242_vm0, %v429_v61 }
 0x18d   :  { %986 = vmatmul.msk.f32.gmra.mxu2 %vm242_vm0, %v430_v63 }
 0x195   :  { %987 = vmatmul.msk.f32.gmra.mxu2 %vm242_vm0, %v431_v2 }
 0x19d   :  { %988 = vmatmul.msk.f32.gmra.mxu2 %vm242_vm0, %v432_v4 }
 0x1a5   :  { %989 = vmatmul.msk.f32.gmra.mxu2 %vm242_vm0, %v433_v6 }
 0x1ad   :  { %990 = vmatmul.msk.f32.gmra.mxu2 %vm242_vm0, %v434_v7 }
 0x1d2   :  { %v541_v8 = vpop.f32.mrf.mxu0 }
 0x1d8   :  { %v559_v21 = vpop.f32.mrf.mxu3 }
 0x1da   :  { %v544_v10 = vpop.f32.mrf.mxu0 }
 0x1e0   :  { %v562_v32 = vpop.f32.mrf.mxu3 }
 0x1e2   :  { %v547_v13 = vpop.f32.mrf.mxu0 }
 0x1ea   :  { %v550_v15 = vpop.f32.mrf.mxu0 }
 0x1f2   :  { %v553_v18 = vpop.f32.mrf.mxu0 }
 0x1f8   :  { %v476_v9 = vpop.f32.mrf.mxu2 }
 0x1f9   :  { %v542_v44 = vadd.f32 %v541_v8, %v476_v9 }
 0x1fa   :  { %v556_v22 = vpop.f32.mrf.mxu0 }
 0x1fb   :  { %v613_v52 = vadd.f32 %v576_v49, %v542_v44 }
 0x1fd   :  { %v629_v59 = vmul.f32 1.442695, %v613_v52  ;;  %vm621_vm4 = vcmp.gt.f32.partialorder %v613_v52, 0.0 }
 0x200   :  { %v479_v11 = vpop.f32.mrf.mxu2 }
 0x201   :  { %v545_v40 = vadd.f32 %v544_v10, %v479_v11 }
 0x203   :  { %v614_v50 = vadd.f32 %v581_v48, %v545_v40 }
 0x205   :  { %v631_v56 = vmul.f32 1.442695, %v614_v50  ;;  %vm622_vm3 = vcmp.gt.f32.partialorder %v614_v50, 0.0 }
 0x208   :  { %v482_v12 = vpop.f32.mrf.mxu2 }
 0x209   :  { %v548_v35 = vadd.f32 %v547_v13, %v482_v12 }
 0x20b   :  { %v615_v45 = vadd.f32 %v586_v43, %v548_v35 }
 0x20d   :  { %v633_v54 = vmul.f32 1.442695, %v615_v45  ;;  %vm623_vm2 = vcmp.gt.f32.partialorder %v615_v45, 0.0 }
 0x210   :  { %v485_v14 = vpop.f32.mrf.mxu2 }
 0x211   :  { %v551_v33 = vadd.f32 %v550_v15, %v485_v14 }
 0x213   :  { %v616_v41 = vadd.f32 %v591_v28, %v551_v33 }
 0x215   :  { %v635_v51 = vmul.f32 1.442695, %v616_v41  ;;  %vm624_vm1 = vcmp.gt.f32.partialorder %v616_v41, 0.0 }
 0x218   :  { %v488_v17 = vpop.f32.mrf.mxu2 }
 0x219   :  { %v554_v29 = vadd.f32 %v553_v18, %v488_v17  ;;  %v667_v17 = vld [vmem:[%s1451_s6 + $0x30] sm:$0xff] }
 0x21b   :  { %v617_v36 = vadd.f32 %v596_v27, %v554_v29  ;;  %v710_v27 = vpop.permute.xlu1 %709 }
 0x21d   :  { %v637_v46 = vmul.f32 1.442695, %v617_v36  ;;  %vm625_vm0 = vcmp.gt.f32.partialorder %v617_v36, 0.0 }
 0x220   :  { %v491_v19 = vpop.f32.mrf.mxu2 }
 0x221   :  { %v557_v26 = vadd.f32 %v556_v22, %v491_v19  ;;  %v662_v19 = vld [vmem:[%s1451_s6 + $0x8] sm:$0xff]  ;;  %v664_v22 = vld [vmem:[%s1451_s6 + $0x18] sm:$0xff] }
 0x223   :  { %v618_v31 = vadd.f32 %v601_v25, %v557_v26 }
 0x225   :  { %v639_v39 = vmul.f32 1.442695, %v618_v31  ;;  %vm626_vm15 = vcmp.gt.f32.partialorder %v618_v31, 0.0 }
 0x228   :  { %v494_v23 = vpop.f32.mrf.mxu2 }
 0x229   :  { %v560_v24 = vadd.f32 %v559_v21, %v494_v23  ;;  %v663_v21 = vld [vmem:[%s1451_s6 + $0x10] sm:$0xff]  ;;  %v665_v23 = vld [vmem:[%s1451_s6 + $0x20] sm:$0xff] }
 0x22b   :  { %v619_v30 = vadd.f32 %v606_v20, %v560_v24  ;;  %v668_v20 = vld [vmem:[%s1451_s6 + $0x38] sm:$0xff]  ;;  %v666_v24 = vld [vmem:[%s1451_s6 + $0x28] sm:$0xff] }
 0x22d   :  { %v641_v37 = vmul.f32 1.442695, %v619_v30  ;;  %vm627_vm14 = vcmp.gt.f32.partialorder %v619_v30, 0.0 }
 0x22f   :  { %1073 = vpow2.f32 %v641_v37 }
 0x230   :  { %v497_v34 = vpop.f32.mrf.mxu2  ;;  %1075 = vpow2.f32 %v639_v39 }
 0x231   :  { %v563_v38 = vadd.f32 %v562_v32, %v497_v34 }
 0x233   :  { %v620_v42 = vadd.f32 %v611_v16, %v563_v38  ;;  %v661_v16 = vld [vmem:[%s1451_s6] sm:$0xff] }
 0x235   :  { %v643_v47 = vmul.f32 1.442695, %v620_v42  ;;  %v1074_v55 = vpop.eup %1073  ;;  %vm628_vm13 = vcmp.gt.f32.partialorder %v620_v42, 0.0 }
 0x236   :  { %v1076_v57 = vpop.eup %1075  ;;  %v1005_v61 = vadd.f32 -1.0, %v1074_v55 }
 0x237   :  { %1077 = vpow2.f32 %v643_v47  ;;  %v1004_v0 = vadd.f32 -1.0, %v1076_v57 }
 0x238   :  { %1079 = vpow2.f32 %v637_v46  ;;  %v659_v2 = vsel %vm627_vm14, %v619_v30, %v1005_v61  ;;  %vm857_vm14 = vcmp.lt.s32.totalorder %v1300_v53, 5 }
 0x239   :  { %1081 = vpow2.f32 %v635_v51  ;;  %v658_v5 = vsel %vm626_vm15, %v618_v31, %v1004_v0  ;;  %v715_v31 = vpop.permute.xlu0 %714  ;;  %vm855_vm15 = vcmp.lt.s32.totalorder %v1300_v53, 3 }
 0x23a   :  { %1083 = vpow2.f32 %v633_v54 }
 0x23b   :  { %1085 = vpow2.f32 %v631_v56 }
 0x23c   :  { %1087 = vpow2.f32 %v629_v59 }
 0x23d   :  { %v1078_v58 = vpop.eup %1077 }
 0x23e   :  { %v1006_v60 = vadd.f32 -1.0, %v1078_v58  ;;  %v1080_v62 = vpop.eup %1079 }
 0x23f   :  { %v1082_v1 = vpop.eup %1081  ;;  %v1003_v3 = vadd.f32 -1.0, %v1080_v62 }
 0x240   :  { %v660_v63 = vsel %vm628_vm13, %v620_v42, %v1006_v60  ;;  %v1084_v4 = vpop.eup %1083  ;;  %v1002_v6 = vadd.f32 -1.0, %v1082_v1 }
 0x241   :  { %750 = vmatpush.msrb.mxu1 %v660_v63  ;;  %1052 = vmatpush.msrb.mxu3 %v660_v63  ;;  %v1086_v7 = vpop.eup %1085  ;;  %v657_v8 = vsel %vm625_vm0, %v617_v36, %v1003_v3  ;;  %v1001_v9 = vadd.f32 -1.0, %v1084_v4  ;;  %v700_v43 = vpop.permute.xlu0 %699  ;;  %vm854_vm0 = vcmp.lt.s32.totalorder %v1300_v53, 2 }
 0x242   :  { %v1088_v10 = vpop.eup %1087  ;;  %v656_v11 = vsel %vm624_vm1, %v616_v41, %v1002_v6  ;;  %v1000_v12 = vadd.f32 -1.0, %v1086_v7  ;;  %v705_v41 = vpop.permute.xlu2 %704  ;;  %vm865_vm1 = vcmask 14336  }
 0x243   :  { %751 = vmatpush.msrb.mxu1 %v659_v2  ;;  %1053 = vmatpush.msrb.mxu3 %v659_v2  ;;  %v655_v13 = vsel %vm623_vm2, %v615_v45, %v1001_v9  ;;  %v999_v14 = vadd.f32 -1.0, %v1088_v10  ;;  %v695_v45 = vpop.permute.xlu1 %694 }
 0x244   :  { %v654_v15 = vsel %vm622_vm3, %v614_v50, %v1000_v12 }
 0x245   :  { %752 = vmatpush.msrb.mxu1 %v658_v5  ;;  %1054 = vmatpush.msrb.mxu3 %v658_v5  ;;  %v653_v18 = vsel %vm621_vm4, %v613_v52, %v999_v14 }
 0x247   :  { %753 = vmatpush.msrb.mxu1 %v657_v8  ;;  %1055 = vmatpush.msrb.mxu3 %v657_v8 }
 0x249   :  { %754 = vmatpush.msrb.mxu1 %v656_v11  ;;  %1056 = vmatpush.msrb.mxu3 %v656_v11  ;;  %v685_v52 = vpop.permute.xlu0 %684 }
 0x24a   :  { %v690_v49 = vpop.permute.xlu2 %689 }
 0x24b   :  { %755 = vmatpush.msrb.mxu1 %v655_v13  ;;  %1057 = vmatpush.msrb.mxu3 %v655_v13  ;;  %v680_v58 = vpop.permute.xlu1 %679 }
 0x24d   :  { %756 = vmatpush.msrb.mxu1 %v654_v15  ;;  %1058 = vmatpush.msrb.mxu3 %v654_v15 }
 0x24f   :  { %757 = vmatpush.msrb.mxu1 %v653_v18  ;;  %1059 = vmatpush.msrb.mxu3 %v653_v18 }
 0x250   :  { %1007 = vmatmul.msk.f32.vlgmr.msrb.gmra.mxu1 %vm717_vm5, %v661_v16  ;;  %1013 = vmatmul.msk.f32.vlgmr.msrb.gmra.mxu3 %vm717_vm5, %v667_v17  ;;  %v823_v17 = vld [vmem:[%s1452_s8] sm:$0x7f] }
 0x258   :  { %1008 = vmatmul.msk.f32.gmra.mxu1 %vm717_vm5, %v662_v19  ;;  %1014 = vmatmul.msk.f32.gmra.mxu3 %vm717_vm5, %v668_v20  ;;  %v828_v19 = vpop.permute.xlu2 %827 }
 0x260   :  { %1009 = vmatmul.msk.f32.gmra.mxu1 %vm717_vm5, %v663_v21 }
 0x268   :  { %1010 = vmatmul.msk.f32.gmra.mxu1 %vm717_vm5, %v664_v22 }
 0x270   :  { %1011 = vmatmul.msk.f32.gmra.mxu1 %vm717_vm5, %v665_v23 }
 0x278   :  { %1012 = vmatmul.msk.f32.gmra.mxu1 %vm717_vm5, %v666_v24 }
 0x2cd   :  { %v759_v25 = vpop.f32.mrf.mxu1 }
 0x2ce   :  { %v760_v59 = vadd.f32 %v759_v25, %v680_v58 }
 0x2d0   :  { %v791_v63 = vmul.f32 1.442695, %v760_v59  ;;  %vm783_vm13 = vcmp.gt.f32.partialorder %v760_v59, 0.0 }
 0x2d3   :  { %v777_v26 = vpop.f32.mrf.mxu3 }
 0x2d4   :  { %v778_v29 = vadd.f32 %v777_v26, %v710_v27 }
 0x2d5   :  { %v762_v28 = vpop.f32.mrf.mxu1 }
 0x2d6   :  { %v803_v30 = vmul.f32 1.442695, %v778_v29  ;;  %vm789_vm7 = vcmp.gt.f32.partialorder %v778_v29, 0.0  ;;  %v763_v56 = vadd.f32 %v762_v28, %v685_v52 }
 0x2d8   :  { %1089 = vpow2.f32 %v803_v30  ;;  %v793_v62 = vmul.f32 1.442695, %v763_v56  ;;  %vm784_vm12 = vcmp.gt.f32.partialorder %v763_v56, 0.0 }
 0x2db   :  { %v780_v32 = vpop.f32.mrf.mxu3 }
 0x2dc   :  { %v781_v33 = vadd.f32 %v780_v32, %v715_v31 }
 0x2dd   :  { %v765_v34 = vpop.f32.mrf.mxu1 }
 0x2de   :  { %v805_v35 = vmul.f32 1.442695, %v781_v33  ;;  %v1090_v36 = vpop.eup %1089  ;;  %vm790_vm6 = vcmp.gt.f32.partialorder %v781_v33, 0.0  ;;  %v766_v50 = vadd.f32 %v765_v34, %v690_v49 }
 0x2df   :  { %v1021_v40 = vadd.f32 -1.0, %v1090_v36 }
 0x2e0   :  { %1091 = vpow2.f32 %v805_v35  ;;  %v795_v60 = vmul.f32 1.442695, %v766_v50  ;;  %vm785_vm11 = vcmp.gt.f32.partialorder %v766_v50, 0.0 }
 0x2e1   :  { %v821_v44 = vsel %vm789_vm7, %v778_v29, %v1021_v40 }
 0x2e5   :  { %v768_v37 = vpop.f32.mrf.mxu1 }
 0x2e6   :  { %v1092_v38 = vpop.eup %1091  ;;  %v769_v48 = vadd.f32 %v768_v37, %v695_v45 }
 0x2e7   :  { %v1022_v39 = vadd.f32 -1.0, %v1092_v38 }
 0x2e8   :  { %v797_v54 = vmul.f32 1.442695, %v769_v48  ;;  %vm786_vm10 = vcmp.gt.f32.partialorder %v769_v48, 0.0 }
 0x2e9   :  { %v822_v42 = vsel %vm790_vm6, %v781_v33, %v1022_v39 }
 0x2ea   :  { %841 = vmatpush.msra.mxu3 %v822_v42 }
 0x2ec   :  { %842 = vmatpush.msra.mxu3 %v821_v44 }
 0x2ed   :  { %v771_v46 = vpop.f32.mrf.mxu1 }
 0x2ee   :  { %v772_v47 = vadd.f32 %v771_v46, %v700_v43 }
 0x2f0   :  { %v799_v51 = vmul.f32 1.442695, %v772_v47  ;;  %vm787_vm9 = vcmp.gt.f32.partialorder %v772_v47, 0.0 }
 0x2f2   :  { %1093 = vpow2.f32 %v799_v51 }
 0x2f3   :  { %1095 = vpow2.f32 %v797_v54 }
 0x2f5   :  { %v774_v55 = vpop.f32.mrf.mxu1 }
 0x2f6   :  { %v775_v57 = vadd.f32 %v774_v55, %v705_v41 }
 0x2f8   :  { %v801_v61 = vmul.f32 1.442695, %v775_v57  ;;  %v1094_v0 = vpop.eup %1093  ;;  %vm788_vm8 = vcmp.gt.f32.partialorder %v775_v57, 0.0 }
 0x2f9   :  { %v1096_v1 = vpop.eup %1095  ;;  %v1019_v4 = vadd.f32 -1.0, %v1094_v0 }
 0x2fa   :  { %1097 = vpow2.f32 %v801_v61  ;;  %v1018_v7 = vadd.f32 -1.0, %v1096_v1 }
 0x2fb   :  { %1099 = vpow2.f32 %v795_v60  ;;  %v819_v9 = vsel %vm787_vm9, %v772_v47, %v1019_v4 }
 0x2fc   :  { %1101 = vpow2.f32 %v793_v62  ;;  %v818_v12 = vsel %vm786_vm10, %v769_v48, %v1018_v7 }
 0x2fd   :  { %1103 = vpow2.f32 %v791_v63 }
 0x300   :  { %v1098_v2 = vpop.eup %1097 }
 0x301   :  { %v1020_v3 = vadd.f32 -1.0, %v1098_v2  ;;  %v1100_v5 = vpop.eup %1099 }
 0x302   :  { %v1102_v8 = vpop.eup %1101  ;;  %v1017_v10 = vadd.f32 -1.0, %v1100_v5 }
 0x303   :  { %v820_v6 = vsel %vm788_vm8, %v775_v57, %v1020_v3  ;;  %v1104_v11 = vpop.eup %1103  ;;  %v1016_v13 = vadd.f32 -1.0, %v1102_v8 }
 0x304   :  { %843 = vmatpush.msra.mxu3 %v820_v6  ;;  %v817_v14 = vsel %vm785_vm11, %v766_v50, %v1017_v10  ;;  %v1015_v15 = vadd.f32 -1.0, %v1104_v11 }
 0x305   :  { %v816_v16 = vsel %vm784_vm12, %v763_v56, %v1016_v13 }
 0x306   :  { %844 = vmatpush.msra.mxu3 %v819_v9  ;;  %v815_v18 = vsel %vm783_vm13, %v760_v59, %v1015_v15 }
 0x308   :  { %845 = vmatpush.msra.mxu3 %v818_v12 }
 0x30a   :  { %846 = vmatpush.msra.mxu3 %v817_v14 }
 0x30c   :  { %847 = vmatpush.msra.mxu3 %v816_v16 }
 0x30e   :  { %848 = vmatpush.msra.mxu3 %v815_v18 }
 0x30f   :  { %1023 = vmatmul.msk.f32.vlgmr.msra.gmra.mxu3 %vm717_vm5, %v823_v17 }
 0x392   :  { %v850_v20 = vpop.f32.mrf.mxu3 }
 0x393   :  { %v851_v21 = vadd.f32 %v850_v20, %v828_v19 }
 0x395   :  { %1105 = vtanh.f32 %v851_v21 }
 0x39b   :  { %v1106_v22 = vpop.eup %1105 }
 0x39c   :  { %v858_v23 = vmul.f32 0.6931472, %v1106_v22  ;;  %v861_v25 = vmul.f32 0.7853982, %v1106_v22  ;;  %v856_v27 = vmul.f32 1.5707964, %v1106_v22 }
 0x39e   :  { %v859_v24 = vmul.f32 1.442695, %v858_v23 }
 0x3a0   :  { %1107 = vpow2.f32 %v859_v24 }
 0x3a6   :  { %v1108_v26 = vpop.eup %1107 }
 0x3a7   :  { %v862_v28 = vsel %vm857_vm14, %v1108_v26, %v861_v25 }
 0x3a8   :  { %v863_v29 = vsel %vm855_vm15, %v856_v27, %v862_v28 }
 0x3a9   :  { %v864_v30 = vsel %vm854_vm0, %v851_v21, %v863_v29 }
 0x3aa   :  { %866 = vst.msk [vmem:[%s1453_s10] sm:$0x7f] %vm865_vm1, %v864_v30 }

// kernel: airnet_forward.13
= control target key start
LH: loop header
LB: loop body
LE: loop exit
PB: predicated region body
PF: predicated region fallthrough
CT: control target
= control target key end

     0   :  { %7 = vsyncpa [#allocation3], 0  ;;  %s735_s9 = smov 0   ;;  %s737_s10 = smov 0   ;;  %s903_s0 = inlined_call_operand.vmem [shape: f32[2,6], index: 0, kind: input, shape index: {}]   ;;  %s904_s1 = inlined_call_operand.vmem [shape: f32[2,16,16], index: 1, kind: input, shape index: {}]   ;;  %s905_s2 = inlined_call_operand.vmem [shape: f32[2,1,256], index: 2, kind: output, shape index: {}]  }
   0x1   :  { %s739_s11 = smov 0  }
   0x2 LB: > { %s575_s12 = sadd.s32 4294967295, %s716_s11   ;;  %s25_s13 = sadd.s32 1, %s712_s10  ;;  %s716_s11 = sphi %s739_s11, %s13_s11   ;;  %s712_s10 = sphi %s737_s10, %s921_s10   ;;  %s708_s9 = sphi %s735_s9, %s920_s9  }
   0x3   : > { %p27_p0 = scmp.ge.s32.totalorder %s25_s13, 2  ;;  %p577_p1 = scmp.ge.s32.totalorder %s716_s11, 1 }
   0x4   : > { %p105_p2 = scmp.lt.s32.totalorder %s716_s11, 3  ;;  %p645_p4 = scmp.eq.s32.totalorder %s575_s12, 0 }
   0x5   : > { %s923_s13 = smov (%p27_p0, %s25_s13), 0  ;;  %s117_s16 = sshll.u32 %s903_s0, 4  ;;  %s118_s16 = int_to_ptr.vmem [resolvable:$true] %s117_s16 }
   0x6   : > { %p106_p3 = pnand %p577_p1, %p105_p2  ;;  %s718_s17 = smov [#allocation2]  }
   0x8   : > { %p641_p5 = pneg %p106_p3  ;;  %138 = sbr.rel (%p106_p3) target bundleno = 244 (0xf4), region = 28 }
   0xa   : > { %p642_p6 = pnand %p645_p4, %p641_p5 }
   0xc   : > { %644 = dma.vmem_to_smem (!%p642_p6), %s118_s16, 32, %s718_s17, [#allocation3]  }
   0xd   : > { %703 = dma.done.wait (%p645_p4), [#allocation3], 32  }
   0xe   : > { %705 = vsyncadd (%p645_p4), [#allocation3], 4294967264 }
   0xf   : > { %145 = sfence }
  0x10   : > { %v192_v0 = vlaneseq  ;;  %v719_v1 = vmov 16.0   ;;  %s761_s18 = sshll.u32 %s708_s9, 7  ;;  %p165_p7 = scmp.lt.s32.totalorder %s708_s9, 1 }
  0x11   : > { %673 = vrcp.f32 %v719_v1  ;;  %s187_s19 = sadd.s32 4, %s761_s18  ;;  %s185_s20 = sadd.s32 3, %s761_s18 }
  0x12   : > { %v193_v2 = vand.u32 127, %v192_v0  ;;  %s765_s21 = sld [smem:[#allocation2 + %s187_s19]]  ;;  %s189_s23 = sadd.s32 5, %s761_s18 }
  0x13   : > { %s767_s22 = sld [smem:[#allocation2 + %s185_s20]]  ;;  %s181_s25 = sadd.s32 1, %s761_s18 }
  0x14   : > { %v194_v5 = vadd.s32 128, %v193_v2  ;;  %v198_v8 = vcvt.s32.f32 %v193_v2  ;;  %s771_s24 = sld [smem:[#allocation2 + %s189_s23]]  ;;  %s183_s27 = sadd.s32 2, %s761_s18 }
  0x15   : > { %s784_s26 = sld [smem:[#allocation2 + %s761_s18]]  ;;  %s925_s9 = smov (!%p165_p7, %s708_s9), 1 }
  0x16   : > { %v199_v9 = vcvt.s32.f32 %v194_v5  ;;  %s788_s28 = sld [smem:[#allocation2 + %s181_s25]]  ;;  %s604_s30 = sshll.u32 %s925_s9, 4 }
  0x17   : > { %v674_v3 = vpop.eup %673  ;;  %s790_s29 = sld [smem:[#allocation2 + %s183_s27]]  ;;  %s169_s5 = scalar_lea.vmem %s904_s1, %s604_s30 }
  0x18   : > { %v201_v4 = vmul.f32 16.0, %v674_v3  ;;  %vm205_vm0 = vweird.f32 %v674_v3  ;;  %v265_v45 = vstv %s765_s21  ;;  %s584_s6 = sshll.u32 %s925_s9, 1 }
  0x19   : > { %v262_v49 = vstv %s767_s22  ;;  %s177_s12 = scalar_lea.vmem %s905_s2, %s584_s6 }
  0x1a   : > { %v202_v6 = vsub.f32 1.0, %v201_v4  ;;  %v270_v57 = vstv %s771_s24 }
  0x1b   : > { %v251_v5 = vstv %s784_s26 }
  0x1c   : > { %v203_v7 = vmul.f32 %v674_v3, %v202_v6  ;;  %v254_v6 = vstv %s788_s28 }
  0x1e   : > { %v204_v10 = vadd.f32 %v674_v3, %v203_v7 }
  0x20   : > { %v206_v11 = vsel %vm205_vm0, %v674_v3, %v204_v10 }
  0x21   : > { %v207_v12 = vmul.f32 %v206_v11, %v198_v8  ;;  %v208_v13 = vmul.f32 %v206_v11, %v199_v9 }
  0x23   : > { %v209_v14 = vfloor.f32 %v207_v12  ;;  %v210_v15 = vfloor.f32 %v208_v13 }
  0x25   : > { %v211_v16 = vmul.f32 16.0, %v209_v14  ;;  %v586_v17 = vadd.f32 -1.0, %v209_v14  ;;  %v212_v18 = vmul.f32 16.0, %v210_v15  ;;  %v217_v20 = vadd.f32 1.0, %v209_v14 }
  0x26   : > { %v587_v21 = vadd.f32 -1.0, %v210_v15  ;;  %v218_v23 = vadd.f32 1.0, %v210_v15 }
  0x27   : > { %v213_v19 = vsub.f32 %v198_v8, %v211_v16  ;;  %v214_v22 = vsub.f32 %v199_v9, %v212_v18 }
  0x29   : > { %vm215_vm1 = vcmp.ge.f32.partialorder %v213_v19, 16.0  ;;  %vm219_vm2 = vcmp.lt.f32.partialorder %v213_v19, 0.0  ;;  %v588_v24 = vadd.f32 -16.0, %v213_v19  ;;  %v229_v25 = vadd.f32 16.0, %v213_v19 }
  0x2a   : > { %v223_v26 = vsel %vm219_vm2, %v586_v17, %v209_v14  ;;  %vm216_vm3 = vcmp.ge.f32.partialorder %v214_v22, 16.0  ;;  %vm220_vm4 = vcmp.lt.f32.partialorder %v214_v22, 0.0  ;;  %v589_v27 = vadd.f32 -16.0, %v214_v22 }
  0x2b   : > { %v225_v28 = vsel %vm215_vm1, %v217_v20, %v223_v26  ;;  %v231_v29 = vsel %vm219_vm2, %v229_v25, %v213_v19  ;;  %v224_v30 = vsel %vm220_vm4, %v587_v21, %v210_v15  ;;  %v230_v31 = vadd.f32 16.0, %v214_v22 }
  0x2c   : > { %v233_v32 = vsel %vm215_vm1, %v588_v24, %v231_v29  ;;  %v243_v33 = vmul.f32 2.0, %v225_v28  ;;  %v226_v34 = vsel %vm216_vm3, %v218_v23, %v224_v30  ;;  %v800_v15 = vshrl.u32 %v192_v0, 7 }
  0x2d   : > { %v235_v35 = vmul.f32 2.0, %v233_v32  ;;  %v232_v36 = vsel %vm220_vm4, %v230_v31, %v214_v22  ;;  %v244_v37 = vmul.f32 2.0, %v226_v34 }
  0x2e   : > { %v245_v38 = vadd.f32 1.0, %v243_v33  ;;  %v234_v39 = vsel %vm216_vm3, %v589_v27, %v232_v36  ;;  %v808_v23 = vadd.s32 8, %v800_v15 }
  0x2f   : > { %v237_v40 = vadd.f32 1.0, %v235_v35  ;;  %v236_v41 = vmul.f32 2.0, %v234_v39  ;;  %v246_v42 = vadd.f32 1.0, %v244_v37 }
  0x30   : > { %v247_v43 = vmul.f32 %v245_v38, %v206_v11 }
  0x31   : > { %v239_v44 = vmul.f32 %v237_v40, %v206_v11  ;;  %v238_v46 = vadd.f32 1.0, %v236_v41  ;;  %v248_v47 = vmul.f32 %v246_v42, %v206_v11 }
  0x32   : > { %v592_v48 = vadd.f32 -1.0, %v247_v43 }
  0x33   : > { %v590_v50 = vadd.f32 -1.0, %v239_v44  ;;  %v240_v51 = vmul.f32 %v238_v46, %v206_v11  ;;  %v776_v52 = vadd.f32 -1.0, %v248_v47  ;;  %v259_v11 = vstv %s790_s29 }
  0x34   : > { %v266_v53 = vmul.f32 %v592_v48, %v265_v45  ;;  %v255_v8 = vmul.f32 %v592_v48, %v254_v6 }
  0x35   : > { %v263_v54 = vmul.f32 %v590_v50, %v262_v49  ;;  %v779_v55 = vadd.f32 -1.0, %v240_v51  ;;  %v267_v56 = vmul.f32 %v776_v52, %v265_v45  ;;  %v252_v7 = vmul.f32 %v590_v50, %v251_v5 }
  0x37   : > { %v268_v58 = vadd.f32 %v266_v53, %v263_v54  ;;  %v264_v59 = vmul.f32 %v779_v55, %v262_v49  ;;  %v257_v12 = vadd.f32 %v255_v8, %v252_v7  ;;  %v256_v7 = vmul.f32 %v776_v52, %v254_v6 }
  0x39   : > { %v271_v60 = vadd.f32 %v270_v57, %v268_v58  ;;  %v269_v61 = vadd.f32 %v267_v56, %v264_v59  ;;  %v804_v16 = vadd.f32 %v259_v11, %v257_v12  ;;  %v404_v58 = vld [vmem:[%s169_s5] sm:$0xff] }
  0x3b   : > { %v281_v62 = vadd.f32 1.0, %v271_v60  ;;  %v272_v63 = vadd.f32 %v270_v57, %v269_v61  ;;  %v405_v57 = vld [vmem:[%s169_s5 + $0x8] sm:$0xff]  ;;  %v273_v8 = vadd.f32 1.0, %v804_v16 }
  0x3d   : > { %v283_v1 = vmul.f32 16.0, %v281_v62  ;;  %v282_v2 = vadd.f32 1.0, %v272_v63  ;;  %v275_v12 = vmul.f32 16.0, %v273_v8 }
  0x3f   : > { %v596_v3 = vadd.f32 -1.0, %v283_v1  ;;  %v284_v4 = vmul.f32 16.0, %v282_v2 }
  0x41   : > { %v287_v9 = vmul.f32 0.5, %v596_v3  ;;  %v597_v10 = vadd.f32 -1.0, %v284_v4  ;;  %v253_v4 = vmul.f32 %v779_v55, %v251_v5 }
  0x43   : > { %v291_v13 = vfloor.f32 %v287_v9  ;;  %v288_v14 = vmul.f32 0.5, %v597_v10 }
  0x45   : > { %v295_v17 = vsub.f32 %v287_v9, %v291_v13  ;;  %vm302_vm5 = vcmp.ge.f32.partialorder %v291_v13, 0.0  ;;  %vm304_vm6 = vcmp.le.f32.partialorder %v291_v13, 15.0  ;;  %v310_v18 = vmax.f32 %v291_v13, 0.0 }
  0x46   : > { %v324_v19 = vadd.f32 1.0, %v291_v13  ;;  %v292_v22 = vfloor.f32 %v288_v14  ;;  %vm306_vm7 = vmand %vm302_vm5, %vm304_vm6  ;;  %v258_v9 = vadd.f32 %v256_v7, %v253_v4 }
  0x47   : > { %v300_v20 = vsub.f32 1.0, %v295_v17  ;;  %v312_v21 = vmin.f32 %v310_v18, 15.0 }
  0x48   : > { %v334_v24 = vmax.f32 %v324_v19, 0.0  ;;  %vm326_vm8 = vcmp.ge.f32.partialorder %v324_v19, 0.0  ;;  %vm328_vm9 = vcmp.le.f32.partialorder %v324_v19, 15.0  ;;  %v311_v27 = vmax.f32 %v292_v22, 0.0 }
  0x49   : > { %v610_v25 = vcvt.f32.s32 %v312_v21  ;;  %v308_v28 = vsel %vm306_vm7, %v300_v20, 0.0  ;;  %v296_v29 = vsub.f32 %v288_v14, %v292_v22  ;;  %v325_v30 = vadd.f32 1.0, %v292_v22  ;;  %vm330_vm11 = vmand %vm326_vm8, %vm328_vm9 }
  0x4a   : > { %v336_v26 = vmin.f32 %v334_v24, 15.0  ;;  %vm303_vm13 = vcmp.ge.f32.partialorder %v292_v22, 0.0  ;;  %v313_v34 = vmin.f32 %v311_v27, 15.0  ;;  %vm305_vm14 = vcmp.le.f32.partialorder %v292_v22, 15.0 }
  0x4b   : > { %vm814_vm10 = vcmp.eq.s32.totalorder %v808_v23, %v610_v25  ;;  %v335_v36 = vmax.f32 %v325_v30, 0.0  ;;  %vm819_vm15 = vcmp.eq.s32.totalorder %v800_v15, %v610_v25  ;;  %v332_v39 = vsel %vm330_vm11, %v295_v17, 0.0  ;;  %vm307_vm3 = vmand %vm303_vm13, %vm305_vm14 }
  0x4c   : > { %vm613_vm12 = vcmp.lt.s32.totalorder %v336_v26, 0  ;;  %v614_v32 = vceil.f32 %v336_v26  ;;  %v615_v33 = vfloor.f32 %v336_v26  ;;  %v322_v38 = vsel %vm814_vm10, %v308_v28, 0.0 }
  0x4d   : > { %v301_v41 = vsub.f32 1.0, %v296_v29  ;;  %v612_v42 = vcvt.f32.s32 %v313_v34  ;;  %vm327_vm0 = vcmp.ge.f32.partialorder %v325_v30, 0.0  ;;  %vm329_vm1 = vcmp.le.f32.partialorder %v325_v30, 15.0 }
  0x4e   : > { %v616_v35 = vsel %vm613_vm12, %v614_v32, %v615_v33  ;;  %v337_v43 = vmin.f32 %v335_v36, 15.0  ;;  %v320_v44 = vsel %vm819_vm15, %v308_v28, 0.0  ;;  %vm331_vm6 = vmand %vm327_vm0, %vm329_vm1  ;;  %vm406_vm9 = vcmask 130048  }
  0x4f   : > { %v617_v40 = vcvt.f32.s32 %v616_v35  ;;  %v309_v50 = vsel %vm307_vm3, %v301_v41, 0.0  ;;  %vm835_vm7 = vcmp.eq.s32.totalorder %v808_v23, %v612_v42  ;;  %vm840_vm8 = vcmp.eq.s32.totalorder %v800_v15, %v612_v42 }
  0x50   : > { %vm618_vm5 = vcmp.lt.s32.totalorder %v337_v43, 0  ;;  %v619_v46 = vceil.f32 %v337_v43  ;;  %v620_v48 = vfloor.f32 %v337_v43  ;;  %v333_v59 = vsel %vm331_vm6, %v296_v29, 0.0 }
  0x51   : > { %vm342_vm2 = vcmp.eq.s32.totalorder %v808_v23, %v617_v40  ;;  %vm340_vm4 = vcmp.eq.s32.totalorder %v800_v15, %v617_v40  ;;  %v323_v61 = vsel %vm835_vm7, %v309_v50, 0.0  ;;  %v321_v62 = vsel %vm840_vm8, %v309_v50, 0.0 }
  0x52   : > { %v346_v45 = vsel %vm342_vm2, %v332_v39, 0.0  ;;  %v344_v49 = vsel %vm340_vm4, %v332_v39, 0.0  ;;  %v621_v56 = vsel %vm618_vm5, %v619_v46, %v620_v48  ;;  %v261_v10 = vadd.f32 %v259_v11, %v258_v9 }
  0x53   : > { %v350_v47 = vadd.f32 %v346_v45, %v322_v38  ;;  %v348_v53 = vadd.f32 %v344_v49, %v320_v44  ;;  %v622_v60 = vcvt.f32.s32 %v621_v56  ;;  %v594_v14 = vadd.f32 -1.0, %v275_v12 }
  0x54   : > { %v274_v13 = vadd.f32 1.0, %v261_v10 }
  0x55   : > { %605 = vmatpush.msra.mxu2 %v350_v47  ;;  %427 = vmatpush.msra.mxu0 %v350_v47  ;;  %vm343_vm10 = vcmp.eq.s32.totalorder %v808_v23, %v622_v60  ;;  %vm341_vm11 = vcmp.eq.s32.totalorder %v800_v15, %v622_v60  ;;  %v279_v18 = vmul.f32 0.5, %v594_v14 }
  0x56   : > { %v347_v63 = vsel %vm343_vm10, %v333_v59, 0.0  ;;  %v345_v1 = vsel %vm341_vm11, %v333_v59, 0.0  ;;  %v276_v17 = vmul.f32 16.0, %v274_v13 }
  0x57   : > { %606 = vmatpush.msra.mxu2 %v348_v53  ;;  %428 = vmatpush.msra.mxu0 %v348_v53  ;;  %v351_v2 = vadd.f32 %v347_v63, %v323_v61  ;;  %v349_v3 = vadd.f32 %v345_v1, %v321_v62  ;;  %v289_v20 = vfloor.f32 %v279_v18 }
  0x58   : > { %599 = vmatmul.msk.f32.vlgmr.msra.gmra.mxu2 %vm406_vm9, %v405_v57  ;;  %598 = vmatmul.msk.f32.vlgmr.msra.gmra.mxu0 %vm406_vm9, %v404_v58  ;;  %v595_v19 = vadd.f32 -1.0, %v276_v17 }
  0x59   : > { %607 = vmatpush.msra.mxu3 %v351_v2  ;;  %450 = vmatpush.msra.mxu1 %v351_v2  ;;  %v376_v22 = vadd.f32 1.0, %v289_v20  ;;  %v362_v26 = vmax.f32 %v289_v20, 0.0  ;;  %v293_v27 = vsub.f32 %v279_v18, %v289_v20  ;;  %vm354_vm13 = vcmp.ge.f32.partialorder %v289_v20, 0.0 }
  0x5a   : > { %v280_v21 = vmul.f32 0.5, %v595_v19  ;;  %vm356_vm14 = vcmp.le.f32.partialorder %v289_v20, 15.0 }
  0x5b   : > { %608 = vmatpush.msra.mxu3 %v349_v3  ;;  %451 = vmatpush.msra.mxu1 %v349_v3  ;;  %v386_v25 = vmax.f32 %v376_v22, 0.0  ;;  %v364_v11 = vmin.f32 %v362_v26, 15.0  ;;  %vm378_vm15 = vcmp.ge.f32.partialorder %v376_v22, 0.0  ;;  %vm380_vm0 = vcmp.le.f32.partialorder %v376_v22, 15.0  ;;  %vm358_vm1 = vmand %vm354_vm13, %vm356_vm14 }
  0x5c   : > { %601 = vmatmul.msk.f32.vlgmr.msra.gmra.mxu3 %vm406_vm9, %v405_v57  ;;  %600 = vmatmul.msk.f32.vlgmr.msra.gmra.mxu1 %vm406_vm9, %v404_v58  ;;  %v290_v24 = vfloor.f32 %v280_v21  ;;  %v352_v30 = vsub.f32 1.0, %v293_v27  ;;  %vm382_vm2 = vmand %vm378_vm15, %vm380_vm0 }
  0x5d   : > { %v388_v5 = vmin.f32 %v386_v25, 15.0  ;;  %v624_v31 = vcvt.f32.s32 %v364_v11  ;;  %v384_v38 = vsel %vm382_vm2, %v293_v27, 0.0  ;;  %vm480_vm2 = vcmask 1040384  }
  0x5e   : > { %v377_v55 = vadd.f32 1.0, %v290_v24  ;;  %v363_v32 = vmax.f32 %v290_v24, 0.0  ;;  %v360_v36 = vsel %vm358_vm1, %v352_v30, 0.0  ;;  %v294_v39 = vsub.f32 %v280_v21, %v290_v24 }
  0x5f   : > { %v628_v6 = vceil.f32 %v388_v5  ;;  %v629_v16 = vfloor.f32 %v388_v5  ;;  %vm627_vm12 = vcmp.lt.s32.totalorder %v388_v5, 0  ;;  %vm864_vm4 = vcmp.eq.s32.totalorder %v800_v15, %v624_v31 }
  0x60   : > { %v387_v52 = vmax.f32 %v377_v55, 0.0  ;;  %v365_v40 = vmin.f32 %v363_v32, 15.0  ;;  %vm355_vm6 = vcmp.ge.f32.partialorder %v290_v24, 0.0  ;;  %vm357_vm7 = vcmp.le.f32.partialorder %v290_v24, 15.0 }
  0x61   : > { %v630_v29 = vsel %vm627_vm12, %v628_v6, %v629_v16  ;;  %vm379_vm8 = vcmp.ge.f32.partialorder %v377_v55, 0.0  ;;  %vm381_vm9 = vcmp.le.f32.partialorder %v377_v55, 15.0  ;;  %v372_v43 = vsel %vm864_vm4, %v360_v36, 0.0  ;;  %vm359_vm12 = vmand %vm355_vm6, %vm357_vm7 }
  0x62   : > { %v389_v28 = vmin.f32 %v387_v52, 15.0  ;;  %v631_v33 = vcvt.f32.s32 %v630_v29  ;;  %vm876_vm10 = vcmp.eq.s32.totalorder %v808_v23, %v624_v31  ;;  %v353_v46 = vsub.f32 1.0, %v294_v39  ;;  %vm383_vm13 = vmand %vm379_vm8, %vm381_vm9 }
  0x63   : > { %v626_v47 = vcvt.f32.s32 %v365_v40  ;;  %v374_v49 = vsel %vm876_vm10, %v360_v36, 0.0  ;;  %v385_v56 = vsel %vm383_vm13, %v294_v39, 0.0 }
  0x64   : > { %v633_v34 = vceil.f32 %v389_v28  ;;  %v634_v35 = vfloor.f32 %v389_v28  ;;  %vm632_vm3 = vcmp.lt.s32.totalorder %v389_v28, 0  ;;  %vm869_vm5 = vcmp.eq.s32.totalorder %v800_v15, %v631_v33 }
  0x65   : > { %vm394_vm11 = vcmp.eq.s32.totalorder %v808_v23, %v631_v33  ;;  %v396_v45 = vsel %vm869_vm5, %v384_v38, 0.0  ;;  %v361_v54 = vsel %vm359_vm12, %v353_v46, 0.0  ;;  %vm369_vm14 = vcmp.eq.s32.totalorder %v800_v15, %v626_v47 }
  0x66   : > { %v635_v42 = vsel %vm632_vm3, %v633_v34, %v634_v35  ;;  %v398_v50 = vsel %vm394_vm11, %v384_v38, 0.0  ;;  %v400_v51 = vadd.f32 %v396_v45, %v372_v43  ;;  %vm371_vm0 = vcmp.eq.s32.totalorder %v808_v23, %v626_v47 }
  0x67   : > { %v636_v48 = vcvt.f32.s32 %v635_v42  ;;  %v402_v57 = vadd.f32 %v398_v50, %v374_v49  ;;  %v373_v59 = vsel %vm369_vm14, %v361_v54, 0.0  ;;  %v375_v63 = vsel %vm371_vm0, %v361_v54, 0.0 }
  0x68   : > { %vm485_vm3 = vcmp.lt.s32.totalorder %v192_v0, 256 }
  0x69   : > { %vm393_vm15 = vcmp.eq.s32.totalorder %v800_v15, %v636_v48  ;;  %vm395_vm1 = vcmp.eq.s32.totalorder %v808_v23, %v636_v48 }
  0x6a   : > { %v397_v60 = vsel %vm393_vm15, %v385_v56, 0.0  ;;  %v399_v1 = vsel %vm395_vm1, %v385_v56, 0.0 }
  0x6b   : > { %v401_v2 = vadd.f32 %v397_v60, %v373_v59  ;;  %v403_v7 = vadd.f32 %v399_v1, %v375_v63 }
  0xd5   : > { %v430_v53 = vpop.f32.mrf.mxu0 }
  0xd6   : > { %v459_v58 = vmul.f32 %v430_v53, %v400_v51 }
  0xd9   : > { %v453_v4 = vpop.f32.mrf.mxu1 }
  0xda   : > { %v460_v9 = vmul.f32 %v453_v4, %v401_v2 }
  0xdb   : > { %v433_v61 = vpop.f32.mrf.mxu2 }
  0xdc   : > { %v461_v62 = vmul.f32 %v433_v61, %v402_v57 }
  0xde   : > { %v463_v3 = vadd.f32 %v461_v62, %v459_v58 }
  0xdf   : > { %v456_v15 = vpop.f32.mrf.mxu3 }
  0xe0   : > { %v464_v8 = vrot.slane %v463_v3, 4  ;;  %v462_v12 = vmul.f32 %v456_v15, %v403_v7 }
  0xe2   : > { %v465_v10 = vadd.f32 %v464_v8, %v463_v3  ;;  %v470_v13 = vadd.f32 %v462_v12, %v460_v9 }
  0xe4   : > { %v466_v14 = vrot.slane %v465_v10, 2  ;;  %v471_v23 = vrot.slane %v470_v13, 4 }
  0xe6   : > { %v472_v17 = vadd.f32 %v471_v23, %v470_v13  ;;  %v467_v18 = vadd.f32 %v466_v14, %v465_v10 }
  0xe8   : > { %v473_v19 = vrot.slane %v472_v17, 2  ;;  %v468_v21 = vrot.slane %v467_v18, 1 }
  0xea   : > { %v474_v20 = vadd.f32 %v473_v19, %v472_v17  ;;  %v469_v25 = vadd.f32 %v468_v21, %v467_v18 }
  0xec   : > { %v475_v22 = vrot.slane %v474_v20, 1 }
  0xee   : > { %v476_v24 = vadd.f32 %v475_v22, %v474_v20 }
  0xf0   : > { %v479_v55 = vrot.slane %v476_v24, 7 }
  0xf2   : > { %v481_v5 = vsel %vm480_vm2, %v469_v25, %v479_v55 }
  0xf3   : > { %487 = vst.msk [vmem:[%s177_s12] sm:$0x3] %vm485_vm3, %v481_v5 }
  0xf4 PF: > { %s13_s11 = sadd.s32 1, %s716_s11   ;;  %s920_s9 = smov %s712_s10 }
  0xf5   : > { %p10_p8 = scmp.ge.s32.totalorder %s13_s11, 4   ;;  %s921_s10 = smov %s923_s13 }
  0xf7   :  { %12 = sbr.rel (!%p10_p8) target bundleno = 2 (0x2), region = 63 }
  0xfc   :  { %516 = vsyncpa [#allocation3], 1 }
  0xfd   :  { %518 = vsyncpa [#allocation3 + $0x1], 1 }

</bundles_post_ra>
